<compile_context>
chip_gen: v6e
topology: v6e:2x2x1
jax: 0.10.0
libtpu: 0.0.40
codegen_flags: <defaults>
</compile_context>

<pallas_src>
import numpy as np
import jax
import jax.numpy as jnp
from jax import lax
from jax.experimental import pallas as pl
from jax.experimental.pallas import tpu as pltpu

H = 28                  # STSTNet needs 28x28 inputs so that 16 * 5 * 5 == 400
C_OUT = 16              # 3 + 5 + 8 concatenated stream output channels
K_TOEP = 270            # kh-im2col depth: 3 (kh) * 30 (padded cols) * 3 (ci)
N_CONV = H * C_OUT      # 448 conv-output lanes per image row: (col, channel)
N_HID = 512             # Linear(400,400) output width, padded for MXU/lanes
N_OUT_PAD = 128         # Linear(400,3) output width, padded to a full lane tile
# maxpool(k=3,s=3,p=1) o maxpool(k=2,s=2) == max over these row/col index ranges
POOL_BOUNDS = ((0, 5), (5, 11), (11, 17), (17, 23), (23, 28))


def _make_fused_kernel(b_blk):
    """conv3x3 (Toeplitz matmul) + fused double max-pool + Linear+ReLU+Linear."""

    def kernel(p_ref, wt_ref, w1_ref, b1_ref, w2_ref, b2_ref, o_ref, conv_scr):
        # p_ref:    (28, b_blk, 270) bf16   kh-im2col, r-major: [r, e, (kh,cc,ci)]
        # wt_ref:   (270, 448) bf16         Toeplitz conv weight -> lanes (col, ch)
        # w1_ref:   (400, 512) f32          permuted Linear(400,400) weight (padded)
        # b1_ref:   (1, 512)   f32          Linear bias with conv bias folded in
        # w2_ref:   (512, 128) f32          padded Linear(400,3) weight
        # b2_ref:   (1, 128)   f32
        # o_ref:    (b_blk, 128) f32        lane-dense output block
        # conv_scr: (28*b_blk, 448) f32     conv output scratch, row = r*b_blk + e

        # ---- conv: ONE MXU matmul for the whole block, lane-dense output ----
        p2 = p_ref[...].reshape(H * b_blk, K_TOEP)          # tile-preserving merge
        conv_scr[...] = jnp.dot(p2, wt_ref[...],
                                preferred_element_type=jnp.float32)

        # ---- fused double max-pool, slab-wise over all b_blk examples ----
        pooled = []
        for (rs, re) in POOL_BOUNDS:      # row groups: aligned (b_blk, 448) slabs
            m = conv_scr[rs * b_blk:(rs + 1) * b_blk, :]
            for r in range(rs + 1, re):
                m = jnp.maximum(m, conv_scr[r * b_blk:(r + 1) * b_blk, :])
            for (cs, ce) in POOL_BOUNDS:  # column groups: static 16-lane slices
                pc = m[:, cs * C_OUT:(cs + 1) * C_OUT]
                for c in range(cs + 1, ce):
                    pc = jnp.maximum(pc, m[:, c * C_OUT:(c + 1) * C_OUT])
                pooled.append(pc)
        feat = jnp.concatenate(pooled, axis=-1)              # (b_blk, 400) f32

        # ---- dense head: two VMEM-resident matmuls + one lane-dense store ----
        h = jnp.dot(feat, w1_ref[...],
                    preferred_element_type=jnp.float32) + b1_ref[...]
        h = jnp.maximum(h, 0.0)
        o_ref[...] = jnp.dot(h, w2_ref[...],
                             preferred_element_type=jnp.float32) + b2_ref[...]

    return kernel


def ststnet_forward(x_nchw, kernel_params):
    """x_nchw: (N, 3, 28, 28) float32 -> (N, 3) float32."""
    n = x_nchw.shape[0]
    wt, w1, b1, w2, b2 = kernel_params

    b_blk = 16 if n <= 16 else 32            # multiple of 16 (bf16 sublane tile)
    n_pad = -(-n // b_blk) * b_blk

    # Host glue (fused under jit): NCHW -> zero-padded NHWC -> kh-only im2col in
    # r-major order: x3[r, e, kh*90 + cc*3 + ci] = x_pad[e, r + kh, cc, ci].
    x = jnp.transpose(x_nchw, (0, 2, 3, 1)).astype(jnp.float32)
    x = jnp.pad(x, ((0, n_pad - n), (1, 1), (1, 1), (0, 0)))      # (n_pad,30,30,3)
    rows = jnp.stack([x[:, kh:kh + H, :, :] for kh in range(3)], axis=2)
    x3 = jnp.transpose(rows, (1, 0, 2, 3, 4)).reshape(H, n_pad, K_TOEP)
    x3 = x3.astype(jnp.bfloat16)                                  # (28, n_pad, 270)

    flops = 2 * n_pad * (H * K_TOEP * N_CONV + 400 * N_HID + N_HID * N_OUT_PAD)
    bytes_accessed = (x3.size * 2 + wt.size * 2
                      + (w1.size + b1.size + w2.size + b2.size
                         + n_pad * N_OUT_PAD) * 4)

    out = pl.pallas_call(
        _make_fused_kernel(b_blk),
        out_shape=jax.ShapeDtypeStruct((n_pad, N_OUT_PAD), jnp.float32),
        grid=(n_pad // b_blk,),
        in_specs=[
            pl.BlockSpec((H, b_blk, K_TOEP), lambda b: (0, b, 0)),
            pl.BlockSpec((K_TOEP, N_CONV), lambda b: (0, 0)),
            pl.BlockSpec((400, N_HID), lambda b: (0, 0)),
            pl.BlockSpec((1, N_HID), lambda b: (0, 0)),
            pl.BlockSpec((N_HID, N_OUT_PAD), lambda b: (0, 0)),
            pl.BlockSpec((1, N_OUT_PAD), lambda b: (0, 0)),
        ],
        out_specs=pl.BlockSpec((b_blk, N_OUT_PAD), lambda b: (b, 0)),
        scratch_shapes=[pltpu.VMEM((H * b_blk, N_CONV), jnp.float32)],
        compiler_params=pltpu.CompilerParams(dimension_semantics=("parallel",)),
        cost_estimate=pl.CostEstimate(flops=flops, transcendentals=0,
                                      bytes_accessed=bytes_accessed),
    )(x3, wt, w1, b1, w2, b2)
    return out[:n, :3]


def init_torch_style_params(key):
    """Deterministic parameters with PyTorch-convention shapes."""
    ks = jax.random.split(key, 10)
    w1c = 0.2 * jax.random.normal(ks[0], (3, 3, 3, 3), jnp.float32)   # Conv2d(3,3)  OIHW
    b1c = 0.1 * jax.random.normal(ks[1], (3,), jnp.float32)
    w2c = 0.2 * jax.random.normal(ks[2], (5, 3, 3, 3), jnp.float32)   # Conv2d(3,5)
    b2c = 0.1 * jax.random.normal(ks[3], (5,), jnp.float32)
    w3c = 0.2 * jax.random.normal(ks[4], (8, 3, 3, 3), jnp.float32)   # Conv2d(3,8)
    b3c = 0.1 * jax.random.normal(ks[5], (8,), jnp.float32)
    W1 = 0.05 * jax.random.normal(ks[6], (400, 400), jnp.float32)     # Linear(400,400) (out,in)
    B1 = 0.05 * jax.random.normal(ks[7], (400,), jnp.float32)
    W2 = 0.05 * jax.random.normal(ks[8], (3, 400), jnp.float32)       # Linear(400,3)
    B2 = 0.05 * jax.random.normal(ks[9], (3,), jnp.float32)
    return (w1c, b1c, w2c, b2c, w3c, b3c, W1, B1, W2, B2)


def pack_kernel_params(torch_params):
    w1c, b1c, w2c, b2c, w3c, b3c, W1, B1, W2, B2 = torch_params
    # torch.cat([x1, x2, x3], dim=1) == one conv with concatenated filters
    w_cat = np.asarray(jnp.concatenate([w1c, w2c, w3c], axis=0))      # (16,3,3,3) OIHW
    b_cat = jnp.concatenate([b1c, b2c, b3c], axis=0)                  # (16,)

    # Toeplitz conv weight: folds kw/ci taps and the output-column layout so the
    # conv becomes one (rows, 270) x (270, 448) matmul with lanes = (out col, ch).
    # wt[kh*90 + cc*3 + ci, c*16 + co] = w_cat[co, ci, kh, cc - c]  (0 <= cc-c <= 2)
    wt = np.zeros((K_TOEP, N_CONV), np.float32)
    for kh in range(3):
        for kw in range(3):
            for ci in range(3):
                taps = w_cat[:, ci, kh, kw]                           # (16,) over co
                for c in range(H):
                    cc = c + kw                                       # padded input col
                    wt[kh * 90 + cc * 3 + ci, c * C_OUT:(c + 1) * C_OUT] = taps
    wt = jnp.asarray(wt, dtype=jnp.bfloat16)

    # kernel feature order q = p*16 + ch (p = i*5 + j) must read the torch
    # flattened (NCHW) index k = ch*25 + p -> permute rows of W1^T.
    q = np.arange(400)
    perm = (q % C_OUT) * 25 + (q // C_OUT)
    w1 = jnp.transpose(W1)[perm, :]                                   # (400, 400)
    w1 = jnp.pad(w1, ((0, 0), (0, N_HID - 400)))                      # (400, 512) f32

    # fold the conv bias into the first dense bias: max-pool commutes with the
    # per-channel constant, so pool(conv+b)@W1^T + B1 == pool(conv)@W1^T + (bfeat@w1 + B1)
    bfeat = jnp.tile(b_cat, 25).reshape(1, 400)                       # bfeat[0, q] = b_cat[q%16]
    b1 = jnp.pad(B1.reshape(1, 400), ((0, 0), (0, N_HID - 400))) + bfeat @ w1   # (1, 512)

    # second dense layer zero-padded to (512, 128); extra rows hit zeroed hidden cols.
    w2 = jnp.pad(jnp.transpose(W2), ((0, N_HID - 400), (0, N_OUT_PAD - 3)))     # (512, 128)
    b2 = jnp.pad(B2.reshape(1, 3), ((0, 0), (0, N_OUT_PAD - 3)))                # (1, 128)
    return (wt, w1, b1, w2, b2)


def reference_forward(x_nchw, torch_params):
    """Pure-JAX replica of the PyTorch forward (for validation only)."""
    w1c, b1c, w2c, b2c, w3c, b3c, W1, B1, W2, B2 = torch_params
    w_cat = jnp.concatenate([w1c, w2c, w3c], axis=0)
    b_cat = jnp.concatenate([b1c, b2c, b3c], axis=0)
    y = lax.conv_general_dilated(
        x_nchw, w_cat, window_strides=(1, 1), padding=((1, 1), (1, 1)),
        dimension_numbers=("NCHW", "OIHW", "NCHW"))
    y = y + b_cat[None, :, None, None]
    y = lax.reduce_window(y, -jnp.inf, lax.max, (1, 1, 3, 3), (1, 1, 3, 3),
                          ((0, 0), (0, 0), (1, 1), (1, 1)))
    y = lax.reduce_window(y, -jnp.inf, lax.max, (1, 1, 2, 2), (1, 1, 2, 2),
                          ((0, 0), (0, 0), (0, 0), (0, 0)))
    f = y.reshape(-1, 400)
    h = jnp.maximum(f @ W1.T + B1, 0.0)
    return h @ W2.T + B2


if __name__ == "__main__":
    key = jax.random.PRNGKey(0)
    kx, kp = jax.random.split(key)
    # input must be 28x28 so that 16 channels * 5 * 5 == 400 for the dense layer
    x = jax.random.normal(kx, (2, 3, 28, 28), jnp.float32)

    torch_params = init_torch_style_params(kp)
    kernel_params = pack_kernel_params(torch_params)

    fwd = jax.jit(ststnet_forward)
    out = jax.block_until_ready(fwd(x, kernel_params))

    ref = jax.block_until_ready(reference_forward(x, torch_params))
    np.testing.assert_allclose(np.asarray(out), np.asarray(ref), rtol=5e-2, atol=5e-2)

    print("KERNEL_OK")
</pallas_src>

<mosaic_0001>
module attributes {stable_mosaic.version = 11 : i64} {
  func.func @kernel(%arg0: i32, %arg1: memref<28x16x270xbf16, #tpu.memory_space<vmem>>, %arg2: memref<270x448xbf16, #tpu.memory_space<vmem>>, %arg3: memref<400x512xf32, #tpu.memory_space<vmem>>, %arg4: memref<1x512xf32, #tpu.memory_space<vmem>>, %arg5: memref<512x128xf32, #tpu.memory_space<vmem>>, %arg6: memref<1x128xf32, #tpu.memory_space<vmem>>, %arg7: memref<16x128xf32, #tpu.memory_space<vmem>>, %arg8: memref<448x448xf32, #tpu.memory_space<vmem>>) attributes {dimension_semantics = [#tpu.dimension_semantics<parallel>], iteration_bounds = array<i64: 1>, scalar_prefetch = 0 : i64, scratch_operands = 1 : i64, tpu.core_type = #tpu.core_type<tc>, window_params = [{transform_indices = @transform_0, window_bounds = array<i64: 28, 16, 270>}, {pipeline_mode = #tpu.pipeline_mode<synchronous>, transform_indices = @transform_1, window_bounds = array<i64: 270, 448>}, {pipeline_mode = #tpu.pipeline_mode<synchronous>, transform_indices = @transform_2, window_bounds = array<i64: 400, 512>}, {pipeline_mode = #tpu.pipeline_mode<synchronous>, transform_indices = @transform_3, window_bounds = array<i64: 1, 512>}, {pipeline_mode = #tpu.pipeline_mode<synchronous>, transform_indices = @transform_4, window_bounds = array<i64: 512, 128>}, {pipeline_mode = #tpu.pipeline_mode<synchronous>, transform_indices = @transform_5, window_bounds = array<i64: 1, 128>}, {transform_indices = @transform_6, window_bounds = array<i64: 16, 128>}]} {
    %c0 = arith.constant 0 : index
    %c0_0 = arith.constant 0 : index
    %c0_1 = arith.constant 0 : index
    %0 = vector.load %arg1[%c0, %c0_0, %c0_1] : memref<28x16x270xbf16, #tpu.memory_space<vmem>>, vector<28x16x270xbf16>
    %1 = vector.shape_cast %0 : vector<28x16x270xbf16> to vector<448x270xbf16>
    %c0_2 = arith.constant 0 : index
    %c0_3 = arith.constant 0 : index
    %2 = vector.load %arg2[%c0_2, %c0_3] : memref<270x448xbf16, #tpu.memory_space<vmem>>, vector<270x448xbf16>
    %cst = arith.constant dense<0.000000e+00> : vector<448x448xf32>
    %3 = tpu.matmul %1, %2, %cst {dimension_numbers = #tpu.dot_dimension_numbers<[1], [0], [0], [1], [0, 0, 1, 1], [], []>} : vector<448x270xbf16>, vector<270x448xbf16>, vector<448x448xf32> -> vector<448x448xf32>
    %c0_4 = arith.constant 0 : index
    %c0_5 = arith.constant 0 : index
    %4 = vector.load %arg8[%c0_4, %c0_5] : memref<448x448xf32, #tpu.memory_space<vmem>>, vector<448x448xf32>
    tpu.vector_store %arg8[%c0_4, %c0_5], %3 {strides = array<i32>} : memref<448x448xf32, #tpu.memory_space<vmem>>, vector<448x448xf32>,
    %c0_6 = arith.constant 0 : index
    %c0_7 = arith.constant 0 : index
    %5 = vector.load %arg8[%c0_6, %c0_7] : memref<448x448xf32, #tpu.memory_space<vmem>>, vector<16x448xf32>
    %c16 = arith.constant 16 : index
    %c0_8 = arith.constant 0 : index
    %6 = vector.load %arg8[%c16, %c0_8] : memref<448x448xf32, #tpu.memory_space<vmem>>, vector<16x448xf32>
    %7 = arith.maximumf %5, %6 : vector<16x448xf32>
    %c32 = arith.constant 32 : index
    %c0_9 = arith.constant 0 : index
    %8 = vector.load %arg8[%c32, %c0_9] : memref<448x448xf32, #tpu.memory_space<vmem>>, vector<16x448xf32>
    %9 = arith.maximumf %7, %8 : vector<16x448xf32>
    %c48 = arith.constant 48 : index
    %c0_10 = arith.constant 0 : index
    %10 = vector.load %arg8[%c48, %c0_10] : memref<448x448xf32, #tpu.memory_space<vmem>>, vector<16x448xf32>
    %11 = arith.maximumf %9, %10 : vector<16x448xf32>
    %c64 = arith.constant 64 : index
    %c0_11 = arith.constant 0 : index
    %12 = vector.load %arg8[%c64, %c0_11] : memref<448x448xf32, #tpu.memory_space<vmem>>, vector<16x448xf32>
    %13 = arith.maximumf %11, %12 : vector<16x448xf32>
    %14 = vector.extract_strided_slice %13 {offsets = [0, 0], sizes = [16, 16], strides = [1, 1]} : vector<16x448xf32> to vector<16x16xf32>
    %15 = vector.extract_strided_slice %13 {offsets = [0, 16], sizes = [16, 16], strides = [1, 1]} : vector<16x448xf32> to vector<16x16xf32>
    %16 = arith.maximumf %14, %15 : vector<16x16xf32>
    %17 = vector.extract_strided_slice %13 {offsets = [0, 32], sizes = [16, 16], strides = [1, 1]} : vector<16x448xf32> to vector<16x16xf32>
    %18 = arith.maximumf %16, %17 : vector<16x16xf32>
    %19 = vector.extract_strided_slice %13 {offsets = [0, 48], sizes = [16, 16], strides = [1, 1]} : vector<16x448xf32> to vector<16x16xf32>
    %20 = arith.maximumf %18, %19 : vector<16x16xf32>
    %21 = vector.extract_strided_slice %13 {offsets = [0, 64], sizes = [16, 16], strides = [1, 1]} : vector<16x448xf32> to vector<16x16xf32>
    %22 = arith.maximumf %20, %21 : vector<16x16xf32>
    %23 = vector.extract_strided_slice %13 {offsets = [0, 80], sizes = [16, 16], strides = [1, 1]} : vector<16x448xf32> to vector<16x16xf32>
    %24 = vector.extract_strided_slice %13 {offsets = [0, 96], sizes = [16, 16], strides = [1, 1]} : vector<16x448xf32> to vector<16x16xf32>
    %25 = arith.maximumf %23, %24 : vector<16x16xf32>
    %26 = vector.extract_strided_slice %13 {offsets = [0, 112], sizes = [16, 16], strides = [1, 1]} : vector<16x448xf32> to vector<16x16xf32>
    %27 = arith.maximumf %25, %26 : vector<16x16xf32>
    %28 = vector.extract_strided_slice %13 {offsets = [0, 128], sizes = [16, 16], strides = [1, 1]} : vector<16x448xf32> to vector<16x16xf32>
    %29 = arith.maximumf %27, %28 : vector<16x16xf32>
    %30 = vector.extract_strided_slice %13 {offsets = [0, 144], sizes = [16, 16], strides = [1, 1]} : vector<16x448xf32> to vector<16x16xf32>
    %31 = arith.maximumf %29, %30 : vector<16x16xf32>
    %32 = vector.extract_strided_slice %13 {offsets = [0, 160], sizes = [16, 16], strides = [1, 1]} : vector<16x448xf32> to vector<16x16xf32>
    %33 = arith.maximumf %31, %32 : vector<16x16xf32>
    %34 = vector.extract_strided_slice %13 {offsets = [0, 176], sizes = [16, 16], strides = [1, 1]} : vector<16x448xf32> to vector<16x16xf32>
    %35 = vector.extract_strided_slice %13 {offsets = [0, 192], sizes = [16, 16], strides = [1, 1]} : vector<16x448xf32> to vector<16x16xf32>
    %36 = arith.maximumf %34, %35 : vector<16x16xf32>
    %37 = vector.extract_strided_slice %13 {offsets = [0, 208], sizes = [16, 16], strides = [1, 1]} : vector<16x448xf32> to vector<16x16xf32>
    %38 = arith.maximumf %36, %37 : vector<16x16xf32>
    %39 = vector.extract_strided_slice %13 {offsets = [0, 224], sizes = [16, 16], strides = [1, 1]} : vector<16x448xf32> to vector<16x16xf32>
    %40 = arith.maximumf %38, %39 : vector<16x16xf32>
    %41 = vector.extract_strided_slice %13 {offsets = [0, 240], sizes = [16, 16], strides = [1, 1]} : vector<16x448xf32> to vector<16x16xf32>
    %42 = arith.maximumf %40, %41 : vector<16x16xf32>
    %43 = vector.extract_strided_slice %13 {offsets = [0, 256], sizes = [16, 16], strides = [1, 1]} : vector<16x448xf32> to vector<16x16xf32>
    %44 = arith.maximumf %42, %43 : vector<16x16xf32>
    %45 = vector.extract_strided_slice %13 {offsets = [0, 272], sizes = [16, 16], strides = [1, 1]} : vector<16x448xf32> to vector<16x16xf32>
    %46 = vector.extract_strided_slice %13 {offsets = [0, 288], sizes = [16, 16], strides = [1, 1]} : vector<16x448xf32> to vector<16x16xf32>
    %47 = arith.maximumf %45, %46 : vector<16x16xf32>
    %48 = vector.extract_strided_slice %13 {offsets = [0, 304], sizes = [16, 16], strides = [1, 1]} : vector<16x448xf32> to vector<16x16xf32>
    %49 = arith.maximumf %47, %48 : vector<16x16xf32>
    %50 = vector.extract_strided_slice %13 {offsets = [0, 320], sizes = [16, 16], strides = [1, 1]} : vector<16x448xf32> to vector<16x16xf32>
    %51 = arith.maximumf %49, %50 : vector<16x16xf32>
    %52 = vector.extract_strided_slice %13 {offsets = [0, 336], sizes = [16, 16], strides = [1, 1]} : vector<16x448xf32> to vector<16x16xf32>
    %53 = arith.maximumf %51, %52 : vector<16x16xf32>
    %54 = vector.extract_strided_slice %13 {offsets = [0, 352], sizes = [16, 16], strides = [1, 1]} : vector<16x448xf32> to vector<16x16xf32>
    %55 = arith.maximumf %53, %54 : vector<16x16xf32>
    %56 = vector.extract_strided_slice %13 {offsets = [0, 368], sizes = [16, 16], strides = [1, 1]} : vector<16x448xf32> to vector<16x16xf32>
    %57 = vector.extract_strided_slice %13 {offsets = [0, 384], sizes = [16, 16], strides = [1, 1]} : vector<16x448xf32> to vector<16x16xf32>
    %58 = arith.maximumf %56, %57 : vector<16x16xf32>
    %59 = vector.extract_strided_slice %13 {offsets = [0, 400], sizes = [16, 16], strides = [1, 1]} : vector<16x448xf32> to vector<16x16xf32>
    %60 = arith.maximumf %58, %59 : vector<16x16xf32>
    %61 = vector.extract_strided_slice %13 {offsets = [0, 416], sizes = [16, 16], strides = [1, 1]} : vector<16x448xf32> to vector<16x16xf32>
    %62 = arith.maximumf %60, %61 : vector<16x16xf32>
    %63 = vector.extract_strided_slice %13 {offsets = [0, 432], sizes = [16, 16], strides = [1, 1]} : vector<16x448xf32> to vector<16x16xf32>
    %64 = arith.maximumf %62, %63 : vector<16x16xf32>
    %c80 = arith.constant 80 : index
    %c0_12 = arith.constant 0 : index
    %65 = vector.load %arg8[%c80, %c0_12] : memref<448x448xf32, #tpu.memory_space<vmem>>, vector<16x448xf32>
    %c96 = arith.constant 96 : index
    %c0_13 = arith.constant 0 : index
    %66 = vector.load %arg8[%c96, %c0_13] : memref<448x448xf32, #tpu.memory_space<vmem>>, vector<16x448xf32>
    %67 = arith.maximumf %65, %66 : vector<16x448xf32>
    %c112 = arith.constant 112 : index
    %c0_14 = arith.constant 0 : index
    %68 = vector.load %arg8[%c112, %c0_14] : memref<448x448xf32, #tpu.memory_space<vmem>>, vector<16x448xf32>
    %69 = arith.maximumf %67, %68 : vector<16x448xf32>
    %c128 = arith.constant 128 : index
    %c0_15 = arith.constant 0 : index
    %70 = vector.load %arg8[%c128, %c0_15] : memref<448x448xf32, #tpu.memory_space<vmem>>, vector<16x448xf32>
    %71 = arith.maximumf %69, %70 : vector<16x448xf32>
    %c144 = arith.constant 144 : index
    %c0_16 = arith.constant 0 : index
    %72 = vector.load %arg8[%c144, %c0_16] : memref<448x448xf32, #tpu.memory_space<vmem>>, vector<16x448xf32>
    %73 = arith.maximumf %71, %72 : vector<16x448xf32>
    %c160 = arith.constant 160 : index
    %c0_17 = arith.constant 0 : index
    %74 = vector.load %arg8[%c160, %c0_17] : memref<448x448xf32, #tpu.memory_space<vmem>>, vector<16x448xf32>
    %75 = arith.maximumf %73, %74 : vector<16x448xf32>
    %76 = vector.extract_strided_slice %75 {offsets = [0, 0], sizes = [16, 16], strides = [1, 1]} : vector<16x448xf32> to vector<16x16xf32>
    %77 = vector.extract_strided_slice %75 {offsets = [0, 16], sizes = [16, 16], strides = [1, 1]} : vector<16x448xf32> to vector<16x16xf32>
    %78 = arith.maximumf %76, %77 : vector<16x16xf32>
    %79 = vector.extract_strided_slice %75 {offsets = [0, 32], sizes = [16, 16], strides = [1, 1]} : vector<16x448xf32> to vector<16x16xf32>
    %80 = arith.maximumf %78, %79 : vector<16x16xf32>
    %81 = vector.extract_strided_slice %75 {offsets = [0, 48], sizes = [16, 16], strides = [1, 1]} : vector<16x448xf32> to vector<16x16xf32>
    %82 = arith.maximumf %80, %81 : vector<16x16xf32>
    %83 = vector.extract_strided_slice %75 {offsets = [0, 64], sizes = [16, 16], strides = [1, 1]} : vector<16x448xf32> to vector<16x16xf32>
    %84 = arith.maximumf %82, %83 : vector<16x16xf32>
    %85 = vector.extract_strided_slice %75 {offsets = [0, 80], sizes = [16, 16], strides = [1, 1]} : vector<16x448xf32> to vector<16x16xf32>
    %86 = vector.extract_strided_slice %75 {offsets = [0, 96], sizes = [16, 16], strides = [1, 1]} : vector<16x448xf32> to vector<16x16xf32>
    %87 = arith.maximumf %85, %86 : vector<16x16xf32>
    %88 = vector.extract_strided_slice %75 {offsets = [0, 112], sizes = [16, 16], strides = [1, 1]} : vector<16x448xf32> to vector<16x16xf32>
    %89 = arith.maximumf %87, %88 : vector<16x16xf32>
    %90 = vector.extract_strided_slice %75 {offsets = [0, 128], sizes = [16, 16], strides = [1, 1]} : vector<16x448xf32> to vector<16x16xf32>
    %91 = arith.maximumf %89, %90 : vector<16x16xf32>
    %92 = vector.extract_strided_slice %75 {offsets = [0, 144], sizes = [16, 16], strides = [1, 1]} : vector<16x448xf32> to vector<16x16xf32>
    %93 = arith.maximumf %91, %92 : vector<16x16xf32>
    %94 = vector.extract_strided_slice %75 {offsets = [0, 160], sizes = [16, 16], strides = [1, 1]} : vector<16x448xf32> to vector<16x16xf32>
    %95 = arith.maximumf %93, %94 : vector<16x16xf32>
    %96 = vector.extract_strided_slice %75 {offsets = [0, 176], sizes = [16, 16], strides = [1, 1]} : vector<16x448xf32> to vector<16x16xf32>
    %97 = vector.extract_strided_slice %75 {offsets = [0, 192], sizes = [16, 16], strides = [1, 1]} : vector<16x448xf32> to vector<16x16xf32>
    %98 = arith.maximumf %96, %97 : vector<16x16xf32>
    %99 = vector.extract_strided_slice %75 {offsets = [0, 208], sizes = [16, 16], strides = [1, 1]} : vector<16x448xf32> to vector<16x16xf32>
    %100 = arith.maximumf %98, %99 : vector<16x16xf32>
    %101 = vector.extract_strided_slice %75 {offsets = [0, 224], sizes = [16, 16], strides = [1, 1]} : vector<16x448xf32> to vector<16x16xf32>
    %102 = arith.maximumf %100, %101 : vector<16x16xf32>
    %103 = vector.extract_strided_slice %75 {offsets = [0, 240], sizes = [16, 16], strides = [1, 1]} : vector<16x448xf32> to vector<16x16xf32>
    %104 = arith.maximumf %102, %103 : vector<16x16xf32>
    %105 = vector.extract_strided_slice %75 {offsets = [0, 256], sizes = [16, 16], strides = [1, 1]} : vector<16x448xf32> to vector<16x16xf32>
    %106 = arith.maximumf %104, %105 : vector<16x16xf32>
    %107 = vector.extract_strided_slice %75 {offsets = [0, 272], sizes = [16, 16], strides = [1, 1]} : vector<16x448xf32> to vector<16x16xf32>
    %108 = vector.extract_strided_slice %75 {offsets = [0, 288], sizes = [16, 16], strides = [1, 1]} : vector<16x448xf32> to vector<16x16xf32>
    %109 = arith.maximumf %107, %108 : vector<16x16xf32>
    %110 = vector.extract_strided_slice %75 {offsets = [0, 304], sizes = [16, 16], strides = [1, 1]} : vector<16x448xf32> to vector<16x16xf32>
    %111 = arith.maximumf %109, %110 : vector<16x16xf32>
    %112 = vector.extract_strided_slice %75 {offsets = [0, 320], sizes = [16, 16], strides = [1, 1]} : vector<16x448xf32> to vector<16x16xf32>
    %113 = arith.maximumf %111, %112 : vector<16x16xf32>
    %114 = vector.extract_strided_slice %75 {offsets = [0, 336], sizes = [16, 16], strides = [1, 1]} : vector<16x448xf32> to vector<16x16xf32>
    %115 = arith.maximumf %113, %114 : vector<16x16xf32>
    %116 = vector.extract_strided_slice %75 {offsets = [0, 352], sizes = [16, 16], strides = [1, 1]} : vector<16x448xf32> to vector<16x16xf32>
    %117 = arith.maximumf %115, %116 : vector<16x16xf32>
    %118 = vector.extract_strided_slice %75 {offsets = [0, 368], sizes = [16, 16], strides = [1, 1]} : vector<16x448xf32> to vector<16x16xf32>
    %119 = vector.extract_strided_slice %75 {offsets = [0, 384], sizes = [16, 16], strides = [1, 1]} : vector<16x448xf32> to vector<16x16xf32>
    %120 = arith.maximumf %118, %119 : vector<16x16xf32>
    %121 = vector.extract_strided_slice %75 {offsets = [0, 400], sizes = [16, 16], strides = [1, 1]} : vector<16x448xf32> to vector<16x16xf32>
    %122 = arith.maximumf %120, %121 : vector<16x16xf32>
    %123 = vector.extract_strided_slice %75 {offsets = [0, 416], sizes = [16, 16], strides = [1, 1]} : vector<16x448xf32> to vector<16x16xf32>
    %124 = arith.maximumf %122, %123 : vector<16x16xf32>
    %125 = vector.extract_strided_slice %75 {offsets = [0, 432], sizes = [16, 16], strides = [1, 1]} : vector<16x448xf32> to vector<16x16xf32>
    %126 = arith.maximumf %124, %125 : vector<16x16xf32>
    %c176 = arith.constant 176 : index
    %c0_18 = arith.constant 0 : index
    %127 = vector.load %arg8[%c176, %c0_18] : memref<448x448xf32, #tpu.memory_space<vmem>>, vector<16x448xf32>
    %c192 = arith.constant 192 : index
    %c0_19 = arith.constant 0 : index
    %128 = vector.load %arg8[%c192, %c0_19] : memref<448x448xf32, #tpu.memory_space<vmem>>, vector<16x448xf32>
    %129 = arith.maximumf %127, %128 : vector<16x448xf32>
    %c208 = arith.constant 208 : index
    %c0_20 = arith.constant 0 : index
    %130 = vector.load %arg8[%c208, %c0_20] : memref<448x448xf32, #tpu.memory_space<vmem>>, vector<16x448xf32>
    %131 = arith.maximumf %129, %130 : vector<16x448xf32>
    %c224 = arith.constant 224 : index
    %c0_21 = arith.constant 0 : index
    %132 = vector.load %arg8[%c224, %c0_21] : memref<448x448xf32, #tpu.memory_space<vmem>>, vector<16x448xf32>
    %133 = arith.maximumf %131, %132 : vector<16x448xf32>
    %c240 = arith.constant 240 : index
    %c0_22 = arith.constant 0 : index
    %134 = vector.load %arg8[%c240, %c0_22] : memref<448x448xf32, #tpu.memory_space<vmem>>, vector<16x448xf32>
    %135 = arith.maximumf %133, %134 : vector<16x448xf32>
    %c256 = arith.constant 256 : index
    %c0_23 = arith.constant 0 : index
    %136 = vector.load %arg8[%c256, %c0_23] : memref<448x448xf32, #tpu.memory_space<vmem>>, vector<16x448xf32>
    %137 = arith.maximumf %135, %136 : vector<16x448xf32>
    %138 = vector.extract_strided_slice %137 {offsets = [0, 0], sizes = [16, 16], strides = [1, 1]} : vector<16x448xf32> to vector<16x16xf32>
    %139 = vector.extract_strided_slice %137 {offsets = [0, 16], sizes = [16, 16], strides = [1, 1]} : vector<16x448xf32> to vector<16x16xf32>
    %140 = arith.maximumf %138, %139 : vector<16x16xf32>
    %141 = vector.extract_strided_slice %137 {offsets = [0, 32], sizes = [16, 16], strides = [1, 1]} : vector<16x448xf32> to vector<16x16xf32>
    %142 = arith.maximumf %140, %141 : vector<16x16xf32>
    %143 = vector.extract_strided_slice %137 {offsets = [0, 48], sizes = [16, 16], strides = [1, 1]} : vector<16x448xf32> to vector<16x16xf32>
    %144 = arith.maximumf %142, %143 : vector<16x16xf32>
    %145 = vector.extract_strided_slice %137 {offsets = [0, 64], sizes = [16, 16], strides = [1, 1]} : vector<16x448xf32> to vector<16x16xf32>
    %146 = arith.maximumf %144, %145 : vector<16x16xf32>
    %147 = vector.extract_strided_slice %137 {offsets = [0, 80], sizes = [16, 16], strides = [1, 1]} : vector<16x448xf32> to vector<16x16xf32>
    %148 = vector.extract_strided_slice %137 {offsets = [0, 96], sizes = [16, 16], strides = [1, 1]} : vector<16x448xf32> to vector<16x16xf32>
    %149 = arith.maximumf %147, %148 : vector<16x16xf32>
    %150 = vector.extract_strided_slice %137 {offsets = [0, 112], sizes = [16, 16], strides = [1, 1]} : vector<16x448xf32> to vector<16x16xf32>
    %151 = arith.maximumf %149, %150 : vector<16x16xf32>
    %152 = vector.extract_strided_slice %137 {offsets = [0, 128], sizes = [16, 16], strides = [1, 1]} : vector<16x448xf32> to vector<16x16xf32>
    %153 = arith.maximumf %151, %152 : vector<16x16xf32>
    %154 = vector.extract_strided_slice %137 {offsets = [0, 144], sizes = [16, 16], strides = [1, 1]} : vector<16x448xf32> to vector<16x16xf32>
    %155 = arith.maximumf %153, %154 : vector<16x16xf32>
    %156 = vector.extract_strided_slice %137 {offsets = [0, 160], sizes = [16, 16], strides = [1, 1]} : vector<16x448xf32> to vector<16x16xf32>
    %157 = arith.maximumf %155, %156 : vector<16x16xf32>
    %158 = vector.extract_strided_slice %137 {offsets = [0, 176], sizes = [16, 16], strides = [1, 1]} : vector<16x448xf32> to vector<16x16xf32>
    %159 = vector.extract_strided_slice %137 {offsets = [0, 192], sizes = [16, 16], strides = [1, 1]} : vector<16x448xf32> to vector<16x16xf32>
    %160 = arith.maximumf %158, %159 : vector<16x16xf32>
    %161 = vector.extract_strided_slice %137 {offsets = [0, 208], sizes = [16, 16], strides = [1, 1]} : vector<16x448xf32> to vector<16x16xf32>
    %162 = arith.maximumf %160, %161 : vector<16x16xf32>
    %163 = vector.extract_strided_slice %137 {offsets = [0, 224], sizes = [16, 16], strides = [1, 1]} : vector<16x448xf32> to vector<16x16xf32>
    %164 = arith.maximumf %162, %163 : vector<16x16xf32>
    %165 = vector.extract_strided_slice %137 {offsets = [0, 240], sizes = [16, 16], strides = [1, 1]} : vector<16x448xf32> to vector<16x16xf32>
    %166 = arith.maximumf %164, %165 : vector<16x16xf32>
    %167 = vector.extract_strided_slice %137 {offsets = [0, 256], sizes = [16, 16], strides = [1, 1]} : vector<16x448xf32> to vector<16x16xf32>
    %168 = arith.maximumf %166, %167 : vector<16x16xf32>
    %169 = vector.extract_strided_slice %137 {offsets = [0, 272], sizes = [16, 16], strides = [1, 1]} : vector<16x448xf32> to vector<16x16xf32>
    %170 = vector.extract_strided_slice %137 {offsets = [0, 288], sizes = [16, 16], strides = [1, 1]} : vector<16x448xf32> to vector<16x16xf32>
    %171 = arith.maximumf %169, %170 : vector<16x16xf32>
    %172 = vector.extract_strided_slice %137 {offsets = [0, 304], sizes = [16, 16], strides = [1, 1]} : vector<16x448xf32> to vector<16x16xf32>
    %173 = arith.maximumf %171, %172 : vector<16x16xf32>
    %174 = vector.extract_strided_slice %137 {offsets = [0, 320], sizes = [16, 16], strides = [1, 1]} : vector<16x448xf32> to vector<16x16xf32>
    %175 = arith.maximumf %173, %174 : vector<16x16xf32>
    %176 = vector.extract_strided_slice %137 {offsets = [0, 336], sizes = [16, 16], strides = [1, 1]} : vector<16x448xf32> to vector<16x16xf32>
    %177 = arith.maximumf %175, %176 : vector<16x16xf32>
    %178 = vector.extract_strided_slice %137 {offsets = [0, 352], sizes = [16, 16], strides = [1, 1]} : vector<16x448xf32> to vector<16x16xf32>
    %179 = arith.maximumf %177, %178 : vector<16x16xf32>
    %180 = vector.extract_strided_slice %137 {offsets = [0, 368], sizes = [16, 16], strides = [1, 1]} : vector<16x448xf32> to vector<16x16xf32>
    %181 = vector.extract_strided_slice %137 {offsets = [0, 384], sizes = [16, 16], strides = [1, 1]} : vector<16x448xf32> to vector<16x16xf32>
    %182 = arith.maximumf %180, %181 : vector<16x16xf32>
    %183 = vector.extract_strided_slice %137 {offsets = [0, 400], sizes = [16, 16], strides = [1, 1]} : vector<16x448xf32> to vector<16x16xf32>
    %184 = arith.maximumf %182, %183 : vector<16x16xf32>
    %185 = vector.extract_strided_slice %137 {offsets = [0, 416], sizes = [16, 16], strides = [1, 1]} : vector<16x448xf32> to vector<16x16xf32>
    %186 = arith.maximumf %184, %185 : vector<16x16xf32>
    %187 = vector.extract_strided_slice %137 {offsets = [0, 432], sizes = [16, 16], strides = [1, 1]} : vector<16x448xf32> to vector<16x16xf32>
    %188 = arith.maximumf %186, %187 : vector<16x16xf32>
    %c272 = arith.constant 272 : index
    %c0_24 = arith.constant 0 : index
    %189 = vector.load %arg8[%c272, %c0_24] : memref<448x448xf32, #tpu.memory_space<vmem>>, vector<16x448xf32>
    %c288 = arith.constant 288 : index
    %c0_25 = arith.constant 0 : index
    %190 = vector.load %arg8[%c288, %c0_25] : memref<448x448xf32, #tpu.memory_space<vmem>>, vector<16x448xf32>
    %191 = arith.maximumf %189, %190 : vector<16x448xf32>
    %c304 = arith.constant 304 : index
    %c0_26 = arith.constant 0 : index
    %192 = vector.load %arg8[%c304, %c0_26] : memref<448x448xf32, #tpu.memory_space<vmem>>, vector<16x448xf32>
    %193 = arith.maximumf %191, %192 : vector<16x448xf32>
    %c320 = arith.constant 320 : index
    %c0_27 = arith.constant 0 : index
    %194 = vector.load %arg8[%c320, %c0_27] : memref<448x448xf32, #tpu.memory_space<vmem>>, vector<16x448xf32>
    %195 = arith.maximumf %193, %194 : vector<16x448xf32>
    %c336 = arith.constant 336 : index
    %c0_28 = arith.constant 0 : index
    %196 = vector.load %arg8[%c336, %c0_28] : memref<448x448xf32, #tpu.memory_space<vmem>>, vector<16x448xf32>
    %197 = arith.maximumf %195, %196 : vector<16x448xf32>
    %c352 = arith.constant 352 : index
    %c0_29 = arith.constant 0 : index
    %198 = vector.load %arg8[%c352, %c0_29] : memref<448x448xf32, #tpu.memory_space<vmem>>, vector<16x448xf32>
    %199 = arith.maximumf %197, %198 : vector<16x448xf32>
    %200 = vector.extract_strided_slice %199 {offsets = [0, 0], sizes = [16, 16], strides = [1, 1]} : vector<16x448xf32> to vector<16x16xf32>
    %201 = vector.extract_strided_slice %199 {offsets = [0, 16], sizes = [16, 16], strides = [1, 1]} : vector<16x448xf32> to vector<16x16xf32>
    %202 = arith.maximumf %200, %201 : vector<16x16xf32>
    %203 = vector.extract_strided_slice %199 {offsets = [0, 32], sizes = [16, 16], strides = [1, 1]} : vector<16x448xf32> to vector<16x16xf32>
    %204 = arith.maximumf %202, %203 : vector<16x16xf32>
    %205 = vector.extract_strided_slice %199 {offsets = [0, 48], sizes = [16, 16], strides = [1, 1]} : vector<16x448xf32> to vector<16x16xf32>
    %206 = arith.maximumf %204, %205 : vector<16x16xf32>
    %207 = vector.extract_strided_slice %199 {offsets = [0, 64], sizes = [16, 16], strides = [1, 1]} : vector<16x448xf32> to vector<16x16xf32>
    %208 = arith.maximumf %206, %207 : vector<16x16xf32>
    %209 = vector.extract_strided_slice %199 {offsets = [0, 80], sizes = [16, 16], strides = [1, 1]} : vector<16x448xf32> to vector<16x16xf32>
    %210 = vector.extract_strided_slice %199 {offsets = [0, 96], sizes = [16, 16], strides = [1, 1]} : vector<16x448xf32> to vector<16x16xf32>
    %211 = arith.maximumf %209, %210 : vector<16x16xf32>
    %212 = vector.extract_strided_slice %199 {offsets = [0, 112], sizes = [16, 16], strides = [1, 1]} : vector<16x448xf32> to vector<16x16xf32>
    %213 = arith.maximumf %211, %212 : vector<16x16xf32>
    %214 = vector.extract_strided_slice %199 {offsets = [0, 128], sizes = [16, 16], strides = [1, 1]} : vector<16x448xf32> to vector<16x16xf32>
    %215 = arith.maximumf %213, %214 : vector<16x16xf32>
    %216 = vector.extract_strided_slice %199 {offsets = [0, 144], sizes = [16, 16], strides = [1, 1]} : vector<16x448xf32> to vector<16x16xf32>
    %217 = arith.maximumf %215, %216 : vector<16x16xf32>
    %218 = vector.extract_strided_slice %199 {offsets = [0, 160], sizes = [16, 16], strides = [1, 1]} : vector<16x448xf32> to vector<16x16xf32>
    %219 = arith.maximumf %217, %218 : vector<16x16xf32>
    %220 = vector.extract_strided_slice %199 {offsets = [0, 176], sizes = [16, 16], strides = [1, 1]} : vector<16x448xf32> to vector<16x16xf32>
    %221 = vector.extract_strided_slice %199 {offsets = [0, 192], sizes = [16, 16], strides = [1, 1]} : vector<16x448xf32> to vector<16x16xf32>
    %222 = arith.maximumf %220, %221 : vector<16x16xf32>
    %223 = vector.extract_strided_slice %199 {offsets = [0, 208], sizes = [16, 16], strides = [1, 1]} : vector<16x448xf32> to vector<16x16xf32>
    %224 = arith.maximumf %222, %223 : vector<16x16xf32>
    %225 = vector.extract_strided_slice %199 {offsets = [0, 224], sizes = [16, 16], strides = [1, 1]} : vector<16x448xf32> to vector<16x16xf32>
    %226 = arith.maximumf %224, %225 : vector<16x16xf32>
    %227 = vector.extract_strided_slice %199 {offsets = [0, 240], sizes = [16, 16], strides = [1, 1]} : vector<16x448xf32> to vector<16x16xf32>
    %228 = arith.maximumf %226, %227 : vector<16x16xf32>
    %229 = vector.extract_strided_slice %199 {offsets = [0, 256], sizes = [16, 16], strides = [1, 1]} : vector<16x448xf32> to vector<16x16xf32>
    %230 = arith.maximumf %228, %229 : vector<16x16xf32>
    %231 = vector.extract_strided_slice %199 {offsets = [0, 272], sizes = [16, 16], strides = [1, 1]} : vector<16x448xf32> to vector<16x16xf32>
    %232 = vector.extract_strided_slice %199 {offsets = [0, 288], sizes = [16, 16], strides = [1, 1]} : vector<16x448xf32> to vector<16x16xf32>
    %233 = arith.maximumf %231, %232 : vector<16x16xf32>
    %234 = vector.extract_strided_slice %199 {offsets = [0, 304], sizes = [16, 16], strides = [1, 1]} : vector<16x448xf32> to vector<16x16xf32>
    %235 = arith.maximumf %233, %234 : vector<16x16xf32>
    %236 = vector.extract_strided_slice %199 {offsets = [0, 320], sizes = [16, 16], strides = [1, 1]} : vector<16x448xf32> to vector<16x16xf32>
    %237 = arith.maximumf %235, %236 : vector<16x16xf32>
    %238 = vector.extract_strided_slice %199 {offsets = [0, 336], sizes = [16, 16], strides = [1, 1]} : vector<16x448xf32> to vector<16x16xf32>
    %239 = arith.maximumf %237, %238 : vector<16x16xf32>
    %240 = vector.extract_strided_slice %199 {offsets = [0, 352], sizes = [16, 16], strides = [1, 1]} : vector<16x448xf32> to vector<16x16xf32>
    %241 = arith.maximumf %239, %240 : vector<16x16xf32>
    %242 = vector.extract_strided_slice %199 {offsets = [0, 368], sizes = [16, 16], strides = [1, 1]} : vector<16x448xf32> to vector<16x16xf32>
    %243 = vector.extract_strided_slice %199 {offsets = [0, 384], sizes = [16, 16], strides = [1, 1]} : vector<16x448xf32> to vector<16x16xf32>
    %244 = arith.maximumf %242, %243 : vector<16x16xf32>
    %245 = vector.extract_strided_slice %199 {offsets = [0, 400], sizes = [16, 16], strides = [1, 1]} : vector<16x448xf32> to vector<16x16xf32>
    %246 = arith.maximumf %244, %245 : vector<16x16xf32>
    %247 = vector.extract_strided_slice %199 {offsets = [0, 416], sizes = [16, 16], strides = [1, 1]} : vector<16x448xf32> to vector<16x16xf32>
    %248 = arith.maximumf %246, %247 : vector<16x16xf32>
    %249 = vector.extract_strided_slice %199 {offsets = [0, 432], sizes = [16, 16], strides = [1, 1]} : vector<16x448xf32> to vector<16x16xf32>
    %250 = arith.maximumf %248, %249 : vector<16x16xf32>
    %c368 = arith.constant 368 : index
    %c0_30 = arith.constant 0 : index
    %251 = vector.load %arg8[%c368, %c0_30] : memref<448x448xf32, #tpu.memory_space<vmem>>, vector<16x448xf32>
    %c384 = arith.constant 384 : index
    %c0_31 = arith.constant 0 : index
    %252 = vector.load %arg8[%c384, %c0_31] : memref<448x448xf32, #tpu.memory_space<vmem>>, vector<16x448xf32>
    %253 = arith.maximumf %251, %252 : vector<16x448xf32>
    %c400 = arith.constant 400 : index
    %c0_32 = arith.constant 0 : index
    %254 = vector.load %arg8[%c400, %c0_32] : memref<448x448xf32, #tpu.memory_space<vmem>>, vector<16x448xf32>
    %255 = arith.maximumf %253, %254 : vector<16x448xf32>
    %c416 = arith.constant 416 : index
    %c0_33 = arith.constant 0 : index
    %256 = vector.load %arg8[%c416, %c0_33] : memref<448x448xf32, #tpu.memory_space<vmem>>, vector<16x448xf32>
    %257 = arith.maximumf %255, %256 : vector<16x448xf32>
    %c432 = arith.constant 432 : index
    %c0_34 = arith.constant 0 : index
    %258 = vector.load %arg8[%c432, %c0_34] : memref<448x448xf32, #tpu.memory_space<vmem>>, vector<16x448xf32>
    %259 = arith.maximumf %257, %258 : vector<16x448xf32>
    %260 = vector.extract_strided_slice %259 {offsets = [0, 0], sizes = [16, 16], strides = [1, 1]} : vector<16x448xf32> to vector<16x16xf32>
    %261 = vector.extract_strided_slice %259 {offsets = [0, 16], sizes = [16, 16], strides = [1, 1]} : vector<16x448xf32> to vector<16x16xf32>
    %262 = arith.maximumf %260, %261 : vector<16x16xf32>
    %263 = vector.extract_strided_slice %259 {offsets = [0, 32], sizes = [16, 16], strides = [1, 1]} : vector<16x448xf32> to vector<16x16xf32>
    %264 = arith.maximumf %262, %263 : vector<16x16xf32>
    %265 = vector.extract_strided_slice %259 {offsets = [0, 48], sizes = [16, 16], strides = [1, 1]} : vector<16x448xf32> to vector<16x16xf32>
    %266 = arith.maximumf %264, %265 : vector<16x16xf32>
    %267 = vector.extract_strided_slice %259 {offsets = [0, 64], sizes = [16, 16], strides = [1, 1]} : vector<16x448xf32> to vector<16x16xf32>
    %268 = arith.maximumf %266, %267 : vector<16x16xf32>
    %269 = vector.extract_strided_slice %259 {offsets = [0, 80], sizes = [16, 16], strides = [1, 1]} : vector<16x448xf32> to vector<16x16xf32>
    %270 = vector.extract_strided_slice %259 {offsets = [0, 96], sizes = [16, 16], strides = [1, 1]} : vector<16x448xf32> to vector<16x16xf32>
    %271 = arith.maximumf %269, %270 : vector<16x16xf32>
    %272 = vector.extract_strided_slice %259 {offsets = [0, 112], sizes = [16, 16], strides = [1, 1]} : vector<16x448xf32> to vector<16x16xf32>
    %273 = arith.maximumf %271, %272 : vector<16x16xf32>
    %274 = vector.extract_strided_slice %259 {offsets = [0, 128], sizes = [16, 16], strides = [1, 1]} : vector<16x448xf32> to vector<16x16xf32>
    %275 = arith.maximumf %273, %274 : vector<16x16xf32>
    %276 = vector.extract_strided_slice %259 {offsets = [0, 144], sizes = [16, 16], strides = [1, 1]} : vector<16x448xf32> to vector<16x16xf32>
    %277 = arith.maximumf %275, %276 : vector<16x16xf32>
    %278 = vector.extract_strided_slice %259 {offsets = [0, 160], sizes = [16, 16], strides = [1, 1]} : vector<16x448xf32> to vector<16x16xf32>
    %279 = arith.maximumf %277, %278 : vector<16x16xf32>
    %280 = vector.extract_strided_slice %259 {offsets = [0, 176], sizes = [16, 16], strides = [1, 1]} : vector<16x448xf32> to vector<16x16xf32>
    %281 = vector.extract_strided_slice %259 {offsets = [0, 192], sizes = [16, 16], strides = [1, 1]} : vector<16x448xf32> to vector<16x16xf32>
    %282 = arith.maximumf %280, %281 : vector<16x16xf32>
    %283 = vector.extract_strided_slice %259 {offsets = [0, 208], sizes = [16, 16], strides = [1, 1]} : vector<16x448xf32> to vector<16x16xf32>
    %284 = arith.maximumf %282, %283 : vector<16x16xf32>
    %285 = vector.extract_strided_slice %259 {offsets = [0, 224], sizes = [16, 16], strides = [1, 1]} : vector<16x448xf32> to vector<16x16xf32>
    %286 = arith.maximumf %284, %285 : vector<16x16xf32>
    %287 = vector.extract_strided_slice %259 {offsets = [0, 240], sizes = [16, 16], strides = [1, 1]} : vector<16x448xf32> to vector<16x16xf32>
    %288 = arith.maximumf %286, %287 : vector<16x16xf32>
    %289 = vector.extract_strided_slice %259 {offsets = [0, 256], sizes = [16, 16], strides = [1, 1]} : vector<16x448xf32> to vector<16x16xf32>
    %290 = arith.maximumf %288, %289 : vector<16x16xf32>
    %291 = vector.extract_strided_slice %259 {offsets = [0, 272], sizes = [16, 16], strides = [1, 1]} : vector<16x448xf32> to vector<16x16xf32>
    %292 = vector.extract_strided_slice %259 {offsets = [0, 288], sizes = [16, 16], strides = [1, 1]} : vector<16x448xf32> to vector<16x16xf32>
    %293 = arith.maximumf %291, %292 : vector<16x16xf32>
    %294 = vector.extract_strided_slice %259 {offsets = [0, 304], sizes = [16, 16], strides = [1, 1]} : vector<16x448xf32> to vector<16x16xf32>
    %295 = arith.maximumf %293, %294 : vector<16x16xf32>
    %296 = vector.extract_strided_slice %259 {offsets = [0, 320], sizes = [16, 16], strides = [1, 1]} : vector<16x448xf32> to vector<16x16xf32>
    %297 = arith.maximumf %295, %296 : vector<16x16xf32>
    %298 = vector.extract_strided_slice %259 {offsets = [0, 336], sizes = [16, 16], strides = [1, 1]} : vector<16x448xf32> to vector<16x16xf32>
    %299 = arith.maximumf %297, %298 : vector<16x16xf32>
    %300 = vector.extract_strided_slice %259 {offsets = [0, 352], sizes = [16, 16], strides = [1, 1]} : vector<16x448xf32> to vector<16x16xf32>
    %301 = arith.maximumf %299, %300 : vector<16x16xf32>
    %302 = vector.extract_strided_slice %259 {offsets = [0, 368], sizes = [16, 16], strides = [1, 1]} : vector<16x448xf32> to vector<16x16xf32>
    %303 = vector.extract_strided_slice %259 {offsets = [0, 384], sizes = [16, 16], strides = [1, 1]} : vector<16x448xf32> to vector<16x16xf32>
    %304 = arith.maximumf %302, %303 : vector<16x16xf32>
    %305 = vector.extract_strided_slice %259 {offsets = [0, 400], sizes = [16, 16], strides = [1, 1]} : vector<16x448xf32> to vector<16x16xf32>
    %306 = arith.maximumf %304, %305 : vector<16x16xf32>
    %307 = vector.extract_strided_slice %259 {offsets = [0, 416], sizes = [16, 16], strides = [1, 1]} : vector<16x448xf32> to vector<16x16xf32>
    %308 = arith.maximumf %306, %307 : vector<16x16xf32>
    %309 = vector.extract_strided_slice %259 {offsets = [0, 432], sizes = [16, 16], strides = [1, 1]} : vector<16x448xf32> to vector<16x16xf32>
    %310 = arith.maximumf %308, %309 : vector<16x16xf32>
    %311 = tpu.concatenate %22, %33, %44, %55, %64, %84, %95, %106, %117, %126, %146, %157, %168, %179, %188, %208 in 1 : vector<16x16xf32>, vector<16x16xf32>, vector<16x16xf32>, vector<16x16xf32>, vector<16x16xf32>, vector<16x16xf32>, vector<16x16xf32>, vector<16x16xf32>, vector<16x16xf32>, vector<16x16xf32>, vector<16x16xf32>, vector<16x16xf32>, vector<16x16xf32>, vector<16x16xf32>, vector<16x16xf32>, vector<16x16xf32> -> vector<16x256xf32>
    %312 = tpu.concatenate %219, %230, %241, %250, %268, %279, %290, %301, %310 in 1 : vector<16x16xf32>, vector<16x16xf32>, vector<16x16xf32>, vector<16x16xf32>, vector<16x16xf32>, vector<16x16xf32>, vector<16x16xf32>, vector<16x16xf32>, vector<16x16xf32> -> vector<16x144xf32>
    %313 = tpu.concatenate %311, %312 in 1 : vector<16x256xf32>, vector<16x144xf32> -> vector<16x400xf32>
    %c0_35 = arith.constant 0 : index
    %c0_36 = arith.constant 0 : index
    %314 = vector.load %arg3[%c0_35, %c0_36] : memref<400x512xf32, #tpu.memory_space<vmem>>, vector<400x512xf32>
    %cst_37 = arith.constant dense<0.000000e+00> : vector<16x512xf32>
    %315 = tpu.matmul %313, %314, %cst_37 {dimension_numbers = #tpu.dot_dimension_numbers<[1], [0], [0], [1], [0, 0, 1, 1], [], []>} : vector<16x400xf32>, vector<400x512xf32>, vector<16x512xf32> -> vector<16x512xf32>
    %c0_38 = arith.constant 0 : index
    %c0_39 = arith.constant 0 : index
    %316 = vector.load %arg4[%c0_38, %c0_39] : memref<1x512xf32, #tpu.memory_space<vmem>>, vector<1x512xf32>
    %317 = vector.broadcast %316 : vector<1x512xf32> to vector<16x512xf32>
    %318 = arith.addf %315, %317 : vector<16x512xf32>
    %cst_40 = arith.constant 0.000000e+00 : f32
    %319 = vector.broadcast %cst_40 : f32 to vector<16x512xf32>
    %320 = arith.maximumf %318, %319 : vector<16x512xf32>
    %c0_41 = arith.constant 0 : index
    %c0_42 = arith.constant 0 : index
    %321 = vector.load %arg5[%c0_41, %c0_42] : memref<512x128xf32, #tpu.memory_space<vmem>>, vector<512x128xf32>
    %cst_43 = arith.constant dense<0.000000e+00> : vector<16x128xf32>
    %322 = tpu.matmul %320, %321, %cst_43 {dimension_numbers = #tpu.dot_dimension_numbers<[1], [0], [0], [1], [0, 0, 1, 1], [], []>} : vector<16x512xf32>, vector<512x128xf32>, vector<16x128xf32> -> vector<16x128xf32>
    %c0_44 = arith.constant 0 : index
    %c0_45 = arith.constant 0 : index
    %323 = vector.load %arg6[%c0_44, %c0_45] : memref<1x128xf32, #tpu.memory_space<vmem>>, vector<1x128xf32>
    %324 = vector.broadcast %323 : vector<1x128xf32> to vector<16x128xf32>
    %325 = arith.addf %322, %324 : vector<16x128xf32>
    %c0_46 = arith.constant 0 : index
    %c0_47 = arith.constant 0 : index
    %326 = vector.load %arg7[%c0_46, %c0_47] : memref<16x128xf32, #tpu.memory_space<vmem>>, vector<16x128xf32>
    tpu.vector_store %arg7[%c0_46, %c0_47], %325 {strides = array<i32>} : memref<16x128xf32, #tpu.memory_space<vmem>>, vector<16x128xf32>,
    return
  }
  func.func @transform_0(%arg0: i32) -> (i32, i32, i32) {
    %c0_i32 = arith.constant 0 : i32
    %c0_i32_0 = arith.constant 0 : i32
    %c0_i32_1 = arith.constant 0 : i32
    return %c0_i32, %arg0, %c0_i32_0 : i32, i32, i32
  }
  func.func @transform_1(%arg0: i32) -> (i32, i32) {
    %c0_i32 = arith.constant 0 : i32
    %c0_i32_0 = arith.constant 0 : i32
    %c0_i32_1 = arith.constant 0 : i32
    return %c0_i32, %c0_i32_0 : i32, i32
  }
  func.func @transform_2(%arg0: i32) -> (i32, i32) {
    %c0_i32 = arith.constant 0 : i32
    %c0_i32_0 = arith.constant 0 : i32
    %c0_i32_1 = arith.constant 0 : i32
    return %c0_i32, %c0_i32_0 : i32, i32
  }
  func.func @transform_3(%arg0: i32) -> (i32, i32) {
    %c0_i32 = arith.constant 0 : i32
    %c0_i32_0 = arith.constant 0 : i32
    %c0_i32_1 = arith.constant 0 : i32
    return %c0_i32, %c0_i32_0 : i32, i32
  }
  func.func @transform_4(%arg0: i32) -> (i32, i32) {
    %c0_i32 = arith.constant 0 : i32
    %c0_i32_0 = arith.constant 0 : i32
    %c0_i32_1 = arith.constant 0 : i32
    return %c0_i32, %c0_i32_0 : i32, i32
  }
  func.func @transform_5(%arg0: i32) -> (i32, i32) {
    %c0_i32 = arith.constant 0 : i32
    %c0_i32_0 = arith.constant 0 : i32
    %c0_i32_1 = arith.constant 0 : i32
    return %c0_i32, %c0_i32_0 : i32, i32
  }
  func.func @transform_6(%arg0: i32) -> (i32, i32) {
    %c0_i32 = arith.constant 0 : i32
    %c0_i32_0 = arith.constant 0 : i32
    return %arg0, %c0_i32 : i32, i32
  }
}

</mosaic_0001>

<bundles_post_ra>
// kernel: ststnet_forward.1
= control target key start
LH: loop header
LB: loop body
LE: loop exit
PB: predicated region body
PF: predicated region fallthrough
CT: control target
= control target key end

     0   :  { %v9218_v1 = vmov 0   ;;  %vm1045_vm0 = vcmask 1046528   ;;  %vm960_vm1 = vcmask 113664   ;;  %s5797_s13 = smov 112   ;;  %s5798_s16 = smov 96   ;;  %vm2313_vm2 = vcmask 523264   ;;  %s9208_s1 = inlined_call_operand.vmem [shape: bf16[270,448], index: 1, kind: input, shape index: {}]   ;;  %s9209_s0 = inlined_call_operand.vmem [shape: bf16[28,16,270], index: 0, kind: input, shape index: {}]   ;;  %s9210_s2 = inlined_call_operand.vmem [shape: f32[400,512], index: 2, kind: input, shape index: {}]   ;;  %s9211_s4 = inlined_call_operand.vmem [shape: f32[512,128], index: 4, kind: input, shape index: {}]   ;;  %s9212_s3 = inlined_call_operand.vmem [shape: f32[1,512], index: 3, kind: input, shape index: {}]   ;;  %s9213_s5 = inlined_call_operand.vmem [shape: f32[1,128], index: 5, kind: input, shape index: {}]   ;;  %s9214_s6 = inlined_call_operand.vmem [shape: f32[16,128], index: 6, kind: output, shape index: {}]  }
   0x1   :  { %v5551_v0 = vld [vmem:[%s9208_s1 + $0xe4] ss:$16 sps:$4 sm:$0xff]   ;;  %1403 = vmatprep.mubr.bf16.mxu1 %v9218_v1  ;;  %v5553_v2 = vld [vmem:[%s9208_s1 + $0xe0] ss:$16 sps:$4 sm:$0xff]   ;;  %v5606_v21 = vld [vmem:[%s9208_s1 + $0xe8] ss:$16 sps:$4 sm:$0xff]  }
   0x2   :  { %1058 = vmatprep.subr.bf16.mxu0 %v5551_v0  ;;  %v5554_v3 = vld [vmem:[%s9208_s1 + $0xc4] ss:$16 sps:$4 sm:$0xff]   ;;  %v5556_v4 = vld [vmem:[%s9208_s1 + $0xc0] ss:$16 sps:$4 sm:$0xff]   ;;  %v5608_v22 = vld [vmem:[%s9208_s1 + $0xec] ss:$16 sps:$4 sm:$0xff]  }
   0x3   :  { %1059 = vmatpush1.bf16.msra.mxu0 %v5553_v2  ;;  %v5557_v5 = vld [vmem:[%s9208_s1 + $0xa4] ss:$16 sps:$4 sm:$0xff]   ;;  %v5559_v6 = vld [vmem:[%s9208_s1 + $0xa0] ss:$16 sps:$4 sm:$0xff]   ;;  %v5617_v28 = vld [vmem:[%s9208_s1 + $0xc8] ss:$16 sps:$4 sm:$0xff]  }
   0x4   :  { %1060 = vmatprep.subr.bf16.mxu0 %v5554_v3  ;;  %v5560_v7 = vld [vmem:[%s9208_s1 + $0x84] ss:$16 sps:$4 sm:$0xff]   ;;  %v5562_v8 = vld [vmem:[%s9208_s1 + $0x80] ss:$16 sps:$4 sm:$0xff]   ;;  %v5619_v29 = vld [vmem:[%s9208_s1 + $0xcc] ss:$16 sps:$4 sm:$0xff]  }
   0x5   :  { %v5563_v9 = vld [vmem:[%s9208_s1 + $0x64] ss:$16 sps:$4 sm:$0xff]   ;;  %v5565_v10 = vld [vmem:[%s9208_s1 + $0x60] ss:$16 sps:$4 sm:$0xff]   ;;  %v5628_v33 = vld [vmem:[%s9208_s1 + $0xa8] ss:$16 sps:$4 sm:$0xff]  }
   0x6   :  { %v5566_v11 = vld [vmem:[%s9208_s1 + $0x44] ss:$16 sps:$4 sm:$0xff]   ;;  %v5568_v12 = vld [vmem:[%s9208_s1 + $0x40] ss:$16 sps:$4 sm:$0xff]   ;;  %v5630_v34 = vld [vmem:[%s9208_s1 + $0xac] ss:$16 sps:$4 sm:$0xff]  }
   0x7   :  { %1061 = vmatpush1.bf16.msra.mxu0 %v5556_v4  ;;  %v5593_v13 = vld [vmem:[%s9208_s1 + $0x204] ss:$16 sps:$4 sm:$0x7f]   ;;  %v5597_v15 = vld [vmem:[%s9208_s1 + $0x200] ss:$16 sps:$4 sm:$0x7f]  }
   0x8   :  { %1062 = vmatprep.subr.bf16.mxu0 %v5557_v5  ;;  %v5569_v14 = vld [vmem:[%s9208_s1 + $0x24] ss:$16 sps:$4 sm:$0xff]   ;;  %4884 = vmatprep.subr.msk.bf16.mxu1 %vm1045_vm0, %v5593_v13  ;;  %v1047_v16 = vsel %vm1045_vm0, %v5597_v15, 0  ;;  %v5571_v18 = vld [vmem:[%s9208_s1 + $0x20] ss:$16 sps:$4 sm:$0xff]   ;;  %s5799_s23 = smov 64  }
   0x9   :  { %v5599_v17 = vld [vmem:[%s9209_s0 + $0x8] ss:$12 sps:$4 sm:$0xff]   ;;  %1386 = vmatpush1.bf16.msra.mxu1 %v1047_v16  ;;  %v5899_v20 = vld [vmem:[%s9209_s0 + $0x4] ss:$12 sps:$4 sm:$0xff]   ;;  %v5612_v26 = vld [vmem:[%s9209_s0 + $0x20] ss:$12 sps:$4 sm:$0xff]  }
   0xa   :  { %v5572_v19 = vld [vmem:[%s9208_s1 + $0x4] ss:$16 sps:$4 sm:$0xff]   ;;  %1090 = vmatprep.mubr.bf16.mxu0 %v5899_v20  ;;  %v5574_v23 = vld [vmem:[%s9208_s1] ss:$16 sps:$4 sm:$0xff]   ;;  %1684 = vmatprep.subr.bf16.mxu1 %v5608_v22  ;;  %v5638_v38 = vld [vmem:[%s9208_s1 + $0x88] ss:$16 sps:$4 sm:$0xff]  }
   0xb   :  { %1063 = vmatpush1.bf16.msra.mxu0 %v5559_v6  ;;  %v5575_v24 = vld [vmem:[%s9208_s1 + $0x1e4] ss:$16 sps:$4 sm:$0xff]   ;;  %v5577_v25 = vld [vmem:[%s9208_s1 + $0x1e0] ss:$16 sps:$4 sm:$0xff]   ;;  %v5640_v39 = vld [vmem:[%s9208_s1 + $0x8c] ss:$16 sps:$4 sm:$0xff]  }
   0xc   :  { %1064 = vmatprep.subr.bf16.mxu0 %v5560_v7  ;;  %4885 = vmatmul.mubr.msk.bf16.vlgmr.msra.gmra.mxu1 %vm960_vm1, %v5599_v17  ;;  %v5578_v27 = vld [vmem:[%s9208_s1 + $0x1c4] ss:$16 sps:$4 sm:$0xff]   ;;  %v5580_v30 = vld [vmem:[%s9208_s1 + $0x1c0] ss:$16 sps:$4 sm:$0xff]   ;;  %v5649_v44 = vld [vmem:[%s9208_s1 + $0x68] ss:$16 sps:$4 sm:$0xff]  }
   0xd   :  { %1413 = vmatprep.mubr.bf16.mxu1 %v9218_v1  ;;  %1685 = vmatpush1.bf16.msra.mxu1 %v5606_v21  ;;  %v5581_v31 = vld [vmem:[%s9208_s1 + $0x1a4] ss:$16 sps:$4 sm:$0xff]   ;;  %v5583_v35 = vld [vmem:[%s9208_s1 + $0x1a0] ss:$16 sps:$4 sm:$0xff]   ;;  %v5651_v45 = vld [vmem:[%s9208_s1 + $0x6c] ss:$16 sps:$4 sm:$0xff]  }
   0xe   :  { %1686 = vmatprep.subr.bf16.mxu1 %v5619_v29  ;;  %v5616_v32 = vld [vmem:[%s9209_s0 + $0x38] ss:$12 sps:$4 sm:$0xff]   ;;  %v5586_v37 = vld [vmem:[%s9208_s1 + $0x180] ss:$16 sps:$4 sm:$0xff]   ;;  %v5627_v48 = vld [vmem:[%s9209_s0 + $0x68] ss:$12 sps:$4 sm:$0xff]  }
   0xf   :  { %1065 = vmatpush1.bf16.msra.mxu0 %v5562_v8  ;;  %v5584_v36 = vld [vmem:[%s9208_s1 + $0x184] ss:$16 sps:$4 sm:$0xff]   ;;  %v5623_v41 = vld [vmem:[%s9209_s0 + $0x50] ss:$12 sps:$4 sm:$0xff]   ;;  %v5657_v49 = vld [vmem:[%s9208_s1 + $0x48] ss:$16 sps:$4 sm:$0xff]  }
  0x10   :  { %1066 = vmatprep.subr.bf16.mxu0 %v5563_v9  ;;  %v5587_v40 = vld [vmem:[%s9208_s1 + $0x164] ss:$16 sps:$4 sm:$0xff]   ;;  %v5589_v42 = vld [vmem:[%s9208_s1 + $0x160] ss:$16 sps:$4 sm:$0xff]   ;;  %v5659_v50 = vld [vmem:[%s9208_s1 + $0x4c] ss:$16 sps:$4 sm:$0xff]  }
  0x11   :  { %1687 = vmatpush1.bf16.msra.mxu1 %v5617_v28  ;;  %v5590_v43 = vld [vmem:[%s9208_s1 + $0x144] ss:$16 sps:$4 sm:$0xff]   ;;  %v5592_v46 = vld [vmem:[%s9208_s1 + $0x140] ss:$16 sps:$4 sm:$0xff]   ;;  %v5668_v56 = vld [vmem:[%s9208_s1 + $0x28] ss:$16 sps:$4 sm:$0xff]  }
  0x12   :  { %1688 = vmatprep.subr.bf16.mxu1 %v5630_v34  ;;  %v5595_v47 = vld [vmem:[%s9208_s1 + $0x124] ss:$16 sps:$4 sm:$0xff]   ;;  %v5598_v51 = vld [vmem:[%s9208_s1 + $0x120] ss:$16 sps:$4 sm:$0xff]   ;;  %v5670_v57 = vld [vmem:[%s9208_s1 + $0x2c] ss:$16 sps:$4 sm:$0xff]  }
  0x13   :  { %1067 = vmatpush1.bf16.msra.mxu0 %v5565_v10  ;;  %v5600_v52 = vld [vmem:[%s9208_s1 + $0x104] ss:$16 sps:$4 sm:$0xff]   ;;  %v5602_v53 = vld [vmem:[%s9208_s1 + $0x100] ss:$16 sps:$4 sm:$0xff]   ;;  %v6034_v60 = vld [vmem:[%s9209_s0 + $0x1c] ss:$12 sps:$4 sm:$0xff]  }
  0x14   :  { %1068 = vmatprep.subr.bf16.mxu0 %v5566_v11  ;;  %4886 = vmatmul.mubr.msk.bf16.gmra.mxu1 %vm960_vm1, %v5612_v26  ;;  %v5609_v54 = vld [vmem:[%s9208_s1 + $0x20c] ss:$16 sps:$4 sm:$0x7f]   ;;  %v5611_v55 = vld [vmem:[%s9208_s1 + $0x208] ss:$16 sps:$4 sm:$0x7f]  }
  0x15   :  { %1423 = vmatprep.mubr.bf16.mxu1 %v9218_v1  ;;  %1689 = vmatpush1.bf16.msra.mxu1 %v5628_v33  ;;  %v6026_v58 = vld [vmem:[%s9209_s0] ss:$12 sps:$4 sm:$0xff]   ;;  %v1053_v61 = vsel %vm1045_vm0, %v5611_v55, 0  ;;  %v5678_v62 = vld [vmem:[%s9208_s1 + $0x8] ss:$16 sps:$4 sm:$0xff]   ;;  %s5800_s24 = smov 80  }
  0x16   :  { %1690 = vmatprep.subr.bf16.mxu1 %v5640_v39  ;;  %v5634_v59 = vld [vmem:[%s9209_s0 + $0x80] ss:$12 sps:$4 sm:$0xff]   ;;  %v6051_v0 = vld [vmem:[%s9209_s0 + $0x18] ss:$12 sps:$4 sm:$0xff]   ;;  %v6083_v8 = vld [vmem:[%s9209_s0 + $0x30] ss:$12 sps:$4 sm:$0xff]  }
  0x17   :  { %1069 = vmatpush1.bf16.msra.mxu0 %v5568_v12  ;;  %v5680_v63 = vld [vmem:[%s9208_s1 + $0xc] ss:$16 sps:$4 sm:$0xff]   ;;  %v6056_v2 = vld [vmem:[%s9209_s0 + $0x34] ss:$12 sps:$4 sm:$0xff]   ;;  %v6061_v3 = vld [vmem:[%s9209_s0 + $0x98] ss:$12 sps:$4 sm:$0xff]  }
  0x18   :  { %1070 = vmatprep.subr.bf16.mxu0 %v5569_v14  ;;  %v5691_v4 = vld [vmem:[%s9208_s1 + $0x1ec] ss:$16 sps:$4 sm:$0xff]   ;;  %v5689_v5 = vld [vmem:[%s9208_s1 + $0x1e8] ss:$16 sps:$4 sm:$0xff]   ;;  %v6114_v14 = vld [vmem:[%s9209_s0 + $0x64] ss:$12 sps:$4 sm:$0xff]  }
  0x19   :  { %1691 = vmatpush1.bf16.msra.mxu1 %v5638_v38  ;;  %v5699_v6 = vld [vmem:[%s9208_s1 + $0x1cc] ss:$16 sps:$4 sm:$0xff]   ;;  %v5697_v7 = vld [vmem:[%s9208_s1 + $0x1c8] ss:$16 sps:$4 sm:$0xff]   ;;  %v6215_v34 = vld [vmem:[%s9209_s0 + $0xc4] ss:$12 sps:$4 sm:$0xff]  }
  0x1a   :  { %1692 = vmatprep.subr.bf16.mxu1 %v5651_v45  ;;  %v6088_v9 = vld [vmem:[%s9209_s0 + $0xb0] ss:$12 sps:$4 sm:$0xff]   ;;  %v6093_v10 = vld [vmem:[%s9209_s0 + $0x4c] ss:$12 sps:$4 sm:$0xff]   ;;  %v6109_v13 = vld [vmem:[%s9209_s0 + $0x48] ss:$12 sps:$4 sm:$0xff]  }
  0x1b   :  { %1071 = vmatpush1.bf16.msra.mxu0 %v5571_v18  ;;  %v5708_v11 = vld [vmem:[%s9208_s1 + $0x1a8] ss:$16 sps:$4 sm:$0xff]   ;;  %v5710_v12 = vld [vmem:[%s9208_s1 + $0x1ac] ss:$16 sps:$4 sm:$0xff]   ;;  %vm3853_vm3 = vcmask 130048   ;;  %s5802_s15 = smov 32  }
  0x1c   :  { %1072 = vmatprep.subr.bf16.mxu0 %v5572_v19  ;;  %4887 = vmatmul.mubr.msk.bf16.gmra.mxu1 %vm960_vm1, %v5616_v32  ;;  %v6119_v15 = vld [vmem:[%s9209_s0 + $0xc8] ss:$12 sps:$4 sm:$0xff]   ;;  %v5720_v17 = vld [vmem:[%s9208_s1 + $0x18c] ss:$16 sps:$4 sm:$0xff]   ;;  %v6155_v22 = vld [vmem:[%s9209_s0 + $0x78] ss:$12 sps:$4 sm:$0xff]  }
  0x1d   :  { %1433 = vmatprep.mubr.bf16.mxu1 %v9218_v1  ;;  %1693 = vmatpush1.bf16.msra.mxu1 %v5649_v44  ;;  %v5718_v16 = vld [vmem:[%s9208_s1 + $0x188] ss:$16 sps:$4 sm:$0xff]   ;;  %v6135_v18 = vld [vmem:[%s9209_s0 + $0x60] ss:$12 sps:$4 sm:$0xff]   ;;  %v6186_v28 = vld [vmem:[%s9209_s0 + $0x110] ss:$12 sps:$4 sm:$0xff]  }
  0x1e   :  { %1694 = vmatprep.subr.bf16.mxu1 %v5659_v50  ;;  %v6140_v19 = vld [vmem:[%s9209_s0 + $0xe0] ss:$12 sps:$4 sm:$0xff]   ;;  %v6145_v21 = vld [vmem:[%s9209_s0 + $0x7c] ss:$12 sps:$4 sm:$0xff]   ;;  %9284 = vst [vmem:[#allocation5_spill] sm:$0xff] %v6186_v28  ;;  %s5803_s17 = smov 16  }
  0x1f   :  { %1073 = vmatpush1.bf16.msra.mxu0 %v5574_v23  ;;  %9282 = vst [vmem:[#allocation3_spill] sm:$0xff] %v6140_v19  ;;  %v6160_v23 = vld [vmem:[%s9209_s0 + $0xf8] ss:$12 sps:$4 sm:$0xff]   ;;  %v5731_v26 = vld [vmem:[%s9208_s1 + $0x16c] ss:$16 sps:$4 sm:$0xff]   ;;  %vm3856_vm4 = vcmask 261120  }
  0x20   :  { %1074 = vmatprep.subr.bf16.mxu0 %v5575_v24  ;;  %9283 = vst [vmem:[#allocation4_spill] sm:$0xff] %v6160_v23  ;;  %v6165_v24 = vld [vmem:[%s9209_s0 + $0x94] ss:$12 sps:$4 sm:$0xff]   ;;  %v6191_v29 = vld [vmem:[%s9209_s0 + $0xac] ss:$12 sps:$4 sm:$0xff]   ;;  %vm3859_vm5 = vcmask 392192  }
  0x21   :  { %1695 = vmatpush1.bf16.msra.mxu1 %v5657_v49  ;;  %v6207_v32 = vld [vmem:[%s9209_s0 + $0xa8] ss:$12 sps:$4 sm:$0xff]   ;;  %v6241_v38 = vld [vmem:[%s9209_s0 + $0xd8] ss:$12 sps:$4 sm:$0xff]   ;;  %v5692_v44 = vld [vmem:[%s9209_s0 + $0x170] ss:$12 sps:$4 sm:$0xff]  }
  0x22   :  { %1696 = vmatprep.subr.bf16.mxu1 %v5670_v57  ;;  %v5674_v33 = vld [vmem:[%s9209_s0 + $0x128] ss:$12 sps:$4 sm:$0xff]   ;;  %v5685_v39 = vld [vmem:[%s9209_s0 + $0x158] ss:$12 sps:$4 sm:$0xff]   ;;  %v6338_v57 = vld [vmem:[%s9209_s0 + $0x150] ss:$12 sps:$4 sm:$0xff]  }
  0x23   :  { %1075 = vmatpush2.bf16.msra.mxu0 %v5577_v25  ;;  %v5729_v25 = vld [vmem:[%s9208_s1 + $0x168] ss:$16 sps:$4 sm:$0xff]   ;;  %v6292_v49 = vld [vmem:[%s9209_s0 + $0x124] ss:$12 sps:$4 sm:$0xff]   ;;  %9286 = vst [vmem:[#allocation7_spill] sm:$0xff] %v6338_v57  ;;  %vm3864_vm6 = vcmask 654336  }
  0x24   :  { %1076 = vmatprep.subr.bf16.mxu0 %v5578_v27  ;;  %4888 = vmatmul.mubr.msk.bf16.gmra.mxu1 %vm960_vm1, %v5623_v41  ;;  %v6181_v27 = vld [vmem:[%s9209_s0 + $0x90] ss:$12 sps:$4 sm:$0xff]   ;;  %v5748_v41 = vld [vmem:[%s9208_s1 + $0x128] ss:$16 sps:$4 sm:$0xff]   ;;  %vm3867_vm7 = vcmask 785408   ;;  %vm3870_vm8 = vcmask 916480  }
  0x25   :  { %1443 = vmatprep.mubr.bf16.mxu1 %v9218_v1  ;;  %1697 = vmatpush1.bf16.msra.mxu1 %v5668_v56  ;;  %v6272_v45 = vld [vmem:[%s9209_s0 + $0x10c] ss:$12 sps:$4 sm:$0xff]   ;;  %v6329_v56 = vld [vmem:[%s9209_s0 + $0x154] ss:$12 sps:$4 sm:$0xff]  }
  0x26   :  { %1698 = vmatprep.subr.bf16.mxu1 %v5680_v63  ;;  %v5758_v50 = vld [vmem:[%s9208_s1 + $0x108] ss:$16 sps:$4 sm:$0xff]   ;;  %9285 = vst [vmem:[#allocation6_spill] sm:$0xff] %v6329_v56 }
  0x27   :  { %1077 = vmatpush2.bf16.msra.mxu0 %v5580_v30  ;;  %v5737_v30 = vld [vmem:[%s9208_s1 + $0x148] ss:$16 sps:$4 sm:$0xff]  }
  0x28   :  { %1078 = vmatprep.subr.bf16.mxu0 %v5581_v31  ;;  %v5739_v31 = vld [vmem:[%s9208_s1 + $0x14c] ss:$16 sps:$4 sm:$0xff]   ;;  %v5707_v55 = vld [vmem:[%s9209_s0 + $0x1b8] ss:$12 sps:$4 sm:$0xff]   ;;  %v5721_v63 = vld [vmem:[%s9209_s0 + $0x1e8] ss:$12 sps:$4 sm:$0xff]  }
  0x29   :  { %1699 = vmatpush1.bf16.msra.mxu1 %v5678_v62  ;;  %v6355_v62 = vld [vmem:[%s9209_s0 + $0x168] ss:$12 sps:$4 sm:$0xff]  }
  0x2a   :  { %1700 = vmatprep.subr.bf16.mxu1 %v5691_v4  ;;  %9288 = vst [vmem:[#allocation9_spill] sm:$0xff] %v6355_v62  ;;  %v6363_v4 = vld [vmem:[%s9209_s0 + $0x184] ss:$12 sps:$4 sm:$0xff]  }
  0x2b   :  { %1079 = vmatpush2.bf16.msra.mxu0 %v5583_v35  ;;  %v6224_v35 = vld [vmem:[%s9209_s0 + $0xc0] ss:$12 sps:$4 sm:$0xff]   ;;  %9289 = vst [vmem:[#allocation10_spill] sm:$0xff] %v6363_v4 }
  0x2c   :  { %1080 = vmatprep.subr.bf16.mxu0 %v5584_v36  ;;  %4889 = vmatmul.mubr.msk.bf16.gmra.mxu1 %vm960_vm1, %v5627_v48  ;;  %v5681_v36 = vld [vmem:[%s9209_s0 + $0x140] ss:$12 sps:$4 sm:$0xff]  }
  0x2d   :  { %1453 = vmatprep.mubr.bf16.mxu1 %v9218_v1  ;;  %1701 = vmatpush2.bf16.msra.mxu1 %v5689_v5  ;;  %v5760_v48 = vld [vmem:[%s9208_s1 + $0x10c] ss:$16 sps:$4 sm:$0xff]  }
  0x2e   :  { %1702 = vmatprep.subr.bf16.mxu1 %v5699_v6  ;;  %v6372_v5 = vld [vmem:[%s9209_s0 + $0x180] ss:$12 sps:$4 sm:$0xff]  }
  0x2f   :  { %1081 = vmatpush2.bf16.msra.mxu0 %v5586_v37  ;;  %v6232_v37 = vld [vmem:[%s9209_s0 + $0xdc] ss:$12 sps:$4 sm:$0xff]   ;;  %9290 = vst [vmem:[#allocation11_spill] sm:$0xff] %v6372_v5  ;;  %v5725_v6 = vld [vmem:[%s9209_s0 + $0x200] ss:$12 sps:$4 sm:$0xff]  }
  0x30   :  { %1082 = vmatprep.subr.bf16.mxu0 %v5587_v40  ;;  %v6249_v40 = vld [vmem:[%s9209_s0 + $0xf4] ss:$12 sps:$4 sm:$0xff]  }
  0x31   :  { %1703 = vmatpush2.bf16.msra.mxu1 %v5697_v7  ;;  %v6380_v7 = vld [vmem:[%s9209_s0 + $0x19c] ss:$12 sps:$4 sm:$0xff]  }
  0x32   :  { %1704 = vmatprep.subr.bf16.mxu1 %v5710_v12  ;;  %9291 = vst [vmem:[#allocation12_spill] sm:$0xff] %v6380_v7  ;;  %v5732_v12 = vld [vmem:[%s9209_s0 + $0x218] ss:$12 sps:$4 sm:$0xff]  }
  0x33   :  { %1083 = vmatpush2.bf16.msra.mxu0 %v5589_v42  ;;  %v5750_v42 = vld [vmem:[%s9208_s1 + $0x12c] ss:$16 sps:$4 sm:$0xff]  }
  0x34   :  { %1084 = vmatprep.subr.bf16.mxu0 %v5590_v43  ;;  %4890 = vmatmul.mubr.msk.bf16.gmra.mxu1 %vm960_vm1, %v5634_v59  ;;  %v6264_v43 = vld [vmem:[%s9209_s0 + $0xf0] ss:$12 sps:$4 sm:$0xff]  }
  0x35   :  { %1463 = vmatprep.mubr.bf16.mxu1 %v9218_v1  ;;  %1705 = vmatpush2.bf16.msra.mxu1 %v5708_v11  ;;  %v5714_v59 = vld [vmem:[%s9209_s0 + $0x1d0] ss:$12 sps:$4 sm:$0xff]   ;;  %v6389_v11 = vld [vmem:[%s9209_s0 + $0x198] ss:$12 sps:$4 sm:$0xff]  }
  0x36   :  { %1706 = vmatprep.subr.bf16.mxu1 %v5720_v17  ;;  %9292 = vst [vmem:[#allocation13_spill] sm:$0xff] %v6389_v11  ;;  %v6406_v17 = vld [vmem:[%s9209_s0 + $0x1b0] ss:$12 sps:$4 sm:$0xff]  }
  0x37   :  { %1085 = vmatpush2.bf16.msra.mxu0 %v5592_v46  ;;  %v6281_v46 = vld [vmem:[%s9209_s0 + $0x108] ss:$12 sps:$4 sm:$0xff]   ;;  %9294 = vst [vmem:[#allocation15_spill] sm:$0xff] %v6406_v17 }
  0x38   :  { %1086 = vmatprep.subr.bf16.mxu0 %v5595_v47  ;;  %v5696_v47 = vld [vmem:[%s9209_s0 + $0x188] ss:$12 sps:$4 sm:$0xff]  }
  0x39   :  { %1707 = vmatpush2.bf16.msra.mxu1 %v5718_v16  ;;  %v6397_v16 = vld [vmem:[%s9209_s0 + $0x1b4] ss:$12 sps:$4 sm:$0xff]  }
  0x3a   :  { %1708 = vmatprep.subr.bf16.mxu1 %v5731_v26  ;;  %9293 = vst [vmem:[#allocation14_spill] sm:$0xff] %v6397_v16  ;;  %v6414_v26 = vld [vmem:[%s9209_s0 + $0x1cc] ss:$12 sps:$4 sm:$0xff]  }
  0x3b   :  { %1087 = vmatpush2.bf16.msra.mxu0 %v5598_v51  ;;  %v6304_v51 = vld [vmem:[%s9209_s0 + $0x120] ss:$12 sps:$4 sm:$0xff]   ;;  %9295 = vst [vmem:[#allocation16_spill] sm:$0xff] %v6414_v26 }
  0x3c   :  { %1088 = vmatprep.subr.bf16.mxu0 %v5600_v52  ;;  %4891 = vmatmul.mubr.msk.bf16.gmra.mxu1 %vm960_vm1, %v6061_v3  ;;  %v5703_v52 = vld [vmem:[%s9209_s0 + $0x1a0] ss:$12 sps:$4 sm:$0xff]  }
  0x3d   :  { %1473 = vmatprep.mubr.bf16.mxu1 %v9218_v1  ;;  %1709 = vmatpush2.bf16.msra.mxu1 %v5729_v25  ;;  %v5736_v25 = vld [vmem:[%s9209_s0 + $0x230] ss:$12 sps:$4 sm:$0xff]  }
  0x3e   :  { %1710 = vmatprep.subr.bf16.mxu1 %v5739_v31  ;;  %v5743_v31 = vld [vmem:[%s9209_s0 + $0x248] ss:$12 sps:$4 sm:$0xff]  }
  0x3f   :  { %1089 = vmatpush2.bf16.msra.mxu0 %v5602_v53  ;;  %v6312_v53 = vld [vmem:[%s9209_s0 + $0x13c] ss:$12 sps:$4 sm:$0xff]  }
  0x40   :  { %4913 = vmatprep.subr.msk.bf16.mxu0 %vm1045_vm0, %v5609_v54  ;;  %v6321_v54 = vld [vmem:[%s9209_s0 + $0x138] ss:$12 sps:$4 sm:$0xff]  }
  0x41   :  { %1711 = vmatpush2.bf16.msra.mxu1 %v5737_v30  ;;  %v6423_v30 = vld [vmem:[%s9209_s0 + $0x1c8] ss:$12 sps:$4 sm:$0xff]  }
  0x42   :  { %1091 = vmatmul.mubr.bf16.vlgmr.msra.gmra.mxu0 %v6026_v58  ;;  %1712 = vmatprep.subr.bf16.mxu1 %v5750_v42  ;;  %9296 = vst [vmem:[#allocation17_spill] sm:$0xff] %v6423_v30 }
  0x43   :  { %2012 = vmatpush1.bf16.msra.mxu0 %v1053_v61  ;;  %1100 = vmatprep.mubr.bf16.mxu0 %v6034_v60  ;;  %v6346_v61 = vld [vmem:[%s9209_s0 + $0x16c] ss:$12 sps:$4 sm:$0xff]  }
  0x44   :  { %4892 = vmatmul.mubr.msk.bf16.gmra.mxu1 %vm960_vm1, %v6088_v9  ;;  %9287 = vst [vmem:[#allocation8_spill] sm:$0xff] %v6346_v61 }
  0x45   :  { %1483 = vmatprep.mubr.bf16.mxu1 %v9218_v1  ;;  %1713 = vmatpush2.bf16.msra.mxu1 %v5748_v41  ;;  %v6440_v41 = vld [vmem:[%s9209_s0 + $0x1e0] ss:$12 sps:$4 sm:$0xff]  }
  0x46   :  { %1714 = vmatprep.subr.bf16.mxu1 %v5760_v48  ;;  %9298 = vst [vmem:[#allocation19_spill] sm:$0xff] %v6440_v41 }
  0x49   :  { %1715 = vmatpush2.bf16.msra.mxu1 %v5758_v50 }
  0x4a   :  { %1101 = vmatmul.mubr.bf16.gmra.mxu0 %v6051_v0 }
  0x4b   :  { %1110 = vmatprep.mubr.bf16.mxu0 %v6056_v2 }
  0x4c   :  { %4893 = vmatmul.mubr.msk.bf16.gmra.mxu1 %vm960_vm1, %v6119_v15 }
  0x4d   :  { %1493 = vmatprep.mubr.bf16.mxu1 %v9218_v1 }
  0x52   :  { %1111 = vmatmul.mubr.bf16.gmra.mxu0 %v6083_v8 }
  0x53   :  { %1120 = vmatprep.mubr.bf16.mxu0 %v6093_v10 }
  0x54   :  { %4894 = vmatmul.mubr.msk.bf16.gmra.mxu1 %vm960_vm1, %v6140_v19 }
  0x55   :  { %1503 = vmatprep.mubr.bf16.mxu1 %v9218_v1 }
  0x5a   :  { %1121 = vmatmul.mubr.bf16.gmra.mxu0 %v6109_v13 }
  0x5b   :  { %1130 = vmatprep.mubr.bf16.mxu0 %v6114_v14 }
  0x5c   :  { %4895 = vmatmul.mubr.msk.bf16.gmra.mxu1 %vm960_vm1, %v6160_v23 }
  0x5d   :  { %1513 = vmatprep.mubr.bf16.mxu1 %v9218_v1 }
  0x62   :  { %1131 = vmatmul.mubr.bf16.gmra.mxu0 %v6135_v18 }
  0x63   :  { %1140 = vmatprep.mubr.bf16.mxu0 %v6145_v21 }
  0x64   :  { %4896 = vmatmul.mubr.msk.bf16.gmra.mxu1 %vm960_vm1, %v6186_v28 }
  0x65   :  { %1523 = vmatprep.mubr.bf16.mxu1 %v9218_v1 }
  0x6a   :  { %1141 = vmatmul.mubr.bf16.gmra.mxu0 %v6155_v22 }
  0x6b   :  { %1150 = vmatprep.mubr.bf16.mxu0 %v6165_v24 }
  0x6c   :  { %4897 = vmatmul.mubr.msk.bf16.gmra.mxu1 %vm960_vm1, %v5674_v33  ;;  %v6431_v33 = vld [vmem:[%s9209_s0 + $0x1e4] ss:$12 sps:$4 sm:$0xff]  }
  0x6d   :  { %1533 = vmatprep.mubr.bf16.mxu1 %v9218_v1  ;;  %9297 = vst [vmem:[#allocation18_spill] sm:$0xff] %v6431_v33 }
  0x72   :  { %1151 = vmatmul.mubr.bf16.gmra.mxu0 %v6181_v27 }
  0x73   :  { %1160 = vmatprep.mubr.bf16.mxu0 %v6191_v29 }
  0x74   :  { %4898 = vmatmul.mubr.msk.bf16.gmra.mxu1 %vm960_vm1, %v5681_v36 }
  0x75   :  { %1543 = vmatprep.mubr.bf16.mxu1 %v9218_v1 }
  0x7a   :  { %1161 = vmatmul.mubr.bf16.gmra.mxu0 %v6207_v32 }
  0x7b   :  { %1170 = vmatprep.mubr.bf16.mxu0 %v6215_v34 }
  0x7c   :  { %4899 = vmatmul.mubr.msk.bf16.gmra.mxu1 %vm960_vm1, %v5685_v39 }
  0x7d   :  { %1553 = vmatprep.mubr.bf16.mxu1 %v9218_v1 }
  0x82   :  { %1171 = vmatmul.mubr.bf16.gmra.mxu0 %v6224_v35 }
  0x83   :  { %1180 = vmatprep.mubr.bf16.mxu0 %v6232_v37 }
  0x84   :  { %4900 = vmatmul.mubr.msk.bf16.gmra.mxu1 %vm960_vm1, %v5692_v44  ;;  %v5747_v44 = vld [vmem:[%s9209_s0 + $0x260] ss:$12 sps:$4 sm:$0xff]  }
  0x85   :  { %1563 = vmatprep.mubr.bf16.mxu1 %v9218_v1 }
  0x8a   :  { %1181 = vmatmul.mubr.bf16.gmra.mxu0 %v6241_v38 }
  0x8b   :  { %1190 = vmatprep.mubr.bf16.mxu0 %v6249_v40 }
  0x8c   :  { %4901 = vmatmul.mubr.msk.bf16.gmra.mxu1 %vm960_vm1, %v5696_v47  ;;  %v6448_v47 = vld [vmem:[%s9209_s0 + $0x1fc] ss:$12 sps:$4 sm:$0xff]  }
  0x8d   :  { %1573 = vmatprep.mubr.bf16.mxu1 %v9218_v1  ;;  %9299 = vst [vmem:[#allocation20_spill] sm:$0xff] %v6448_v47 }
  0x92   :  { %1191 = vmatmul.mubr.bf16.gmra.mxu0 %v6264_v43 }
  0x93   :  { %1200 = vmatprep.mubr.bf16.mxu0 %v6272_v45 }
  0x94   :  { %4902 = vmatmul.mubr.msk.bf16.gmra.mxu1 %vm960_vm1, %v5703_v52 }
  0x95   :  { %1583 = vmatprep.mubr.bf16.mxu1 %v9218_v1 }
  0x9a   :  { %1201 = vmatmul.mubr.bf16.gmra.mxu0 %v6281_v46 }
  0x9b   :  { %1210 = vmatprep.mubr.bf16.mxu0 %v6292_v49 }
  0x9c   :  { %4903 = vmatmul.mubr.msk.bf16.gmra.mxu1 %vm960_vm1, %v5707_v55  ;;  %v6461_v55 = vld [vmem:[%s9209_s0 + $0x1f8] ss:$12 sps:$4 sm:$0xff]  }
  0x9d   :  { %1593 = vmatprep.mubr.bf16.mxu1 %v9218_v1  ;;  %9300 = vst [vmem:[#allocation21_spill] sm:$0xff] %v6461_v55 }
  0xa2   :  { %1211 = vmatmul.mubr.bf16.gmra.mxu0 %v6304_v51 }
  0xa3   :  { %1220 = vmatprep.mubr.bf16.mxu0 %v6312_v53 }
  0xa4   :  { %4904 = vmatmul.mubr.msk.bf16.gmra.mxu1 %vm960_vm1, %v5714_v59 }
  0xa5   :  { %1603 = vmatprep.mubr.bf16.mxu1 %v9218_v1 }
  0xaa   :  { %1221 = vmatmul.mubr.bf16.gmra.mxu0 %v6321_v54 }
  0xab   :  { %1230 = vmatprep.mubr.bf16.mxu0 %v6329_v56  ;;  %v5765_v56 = vld [vmem:[%s9209_s0 + $0x8] ss:$12 sps:$4 sm:$0xff]  }
  0xac   :  { %4905 = vmatmul.mubr.msk.bf16.gmra.mxu1 %vm960_vm1, %v5721_v63  ;;  %v5754_v63 = vld [vmem:[%s9209_s0 + $0x278] ss:$12 sps:$4 sm:$0xff]  }
  0xad   :  { %1613 = vmatprep.mubr.bf16.mxu1 %v9218_v1 }
  0xb2   :  { %1231 = vmatmul.mubr.bf16.gmra.mxu0 %v6338_v57 }
  0xb3   :  { %1240 = vmatprep.mubr.bf16.mxu0 %v6346_v61 }
  0xb4   :  { %4906 = vmatmul.mubr.msk.bf16.gmra.mxu1 %vm960_vm1, %v5725_v6  ;;  %v6471_v6 = vld [vmem:[%s9209_s0 + $0x214] ss:$12 sps:$4 sm:$0xff]  }
  0xb5   :  { %1623 = vmatprep.mubr.bf16.mxu1 %v9218_v1  ;;  %9301 = vst [vmem:[#allocation22_spill] sm:$0xff] %v6471_v6 }
  0xba   :  { %1241 = vmatmul.mubr.bf16.gmra.mxu0 %v6355_v62 }
  0xbb   :  { %1250 = vmatprep.mubr.bf16.mxu0 %v6363_v4  ;;  %v5753_v4 = vld [vmem:[%s9209_s0 + $0x258] ss:$12 sps:$4 sm:$0xff]  }
  0xbc   :  { %4907 = vmatmul.mubr.msk.bf16.gmra.mxu1 %vm960_vm1, %v5732_v12 }
  0xbd   :  { %1633 = vmatprep.mubr.bf16.mxu1 %v9218_v1 }
  0xc2   :  { %1251 = vmatmul.mubr.bf16.gmra.mxu0 %v6372_v5 }
  0xc3   :  { %1260 = vmatprep.mubr.bf16.mxu0 %v6380_v7 }
  0xc4   :  { %4908 = vmatmul.mubr.msk.bf16.gmra.mxu1 %vm960_vm1, %v5736_v25 }
  0xc5   :  { %1643 = vmatprep.mubr.bf16.mxu1 %v9218_v1 }
  0xca   :  { %1261 = vmatmul.mubr.bf16.gmra.mxu0 %v6389_v11 }
  0xcb   :  { %1270 = vmatprep.mubr.bf16.mxu0 %v6397_v16  ;;  %v5751_v16 = vld [vmem:[%s9209_s0 + $0x25c] ss:$12 sps:$4 sm:$0xff]  }
  0xcc   :  { %v1405_v36 = vpop.f32.mrf.mxu1  ;;  %4909 = vmatmul.mubr.msk.bf16.gmra.mxu1 %vm960_vm1, %v5743_v31 }
  0xcd   :  { %1653 = vmatprep.mubr.bf16.mxu1 %v9218_v1 }
  0xce   :  { %v1407_v39 = vpop.f32.mrf.mxu1 }
  0xd0   :  { %v1409_v42 = vpop.f32.mrf.mxu1 }
  0xd2   :  { %1271 = vmatmul.mubr.bf16.gmra.mxu0 %v6406_v17  ;;  %v1411_v48 = vpop.f32.mrf.mxu1 }
  0xd3   :  { %1280 = vmatprep.mubr.bf16.mxu0 %v6414_v26 }
  0xd4   :  { %v6451_v50 = vpop.f32.mrf.mxu1  ;;  %4910 = vmatmul.mubr.msk.bf16.gmra.mxu1 %vm960_vm1, %v5747_v44  ;;  %v6486_v44 = vld [vmem:[%s9209_s0 + $0x210] ss:$12 sps:$4 sm:$0xff]  }
  0xd5   :  { %1663 = vmatprep.mubr.bf16.mxu1 %v9218_v1  ;;  %9302 = vst [vmem:[#allocation23_spill] sm:$0xff] %v6486_v44 }
  0xd6   :  { %v6456_v52 = vpop.f32.mrf.mxu1 }
  0xd8   :  { %v6463_v59 = vpop.f32.mrf.mxu1 }
  0xda   :  { %1281 = vmatmul.mubr.bf16.gmra.mxu0 %v6423_v30  ;;  %v6473_v12 = vpop.f32.mrf.mxu1 }
  0xdb   :  { %1290 = vmatprep.mubr.bf16.mxu0 %v6431_v33  ;;  %v5742_v33 = vld [vmem:[%s9209_s0 + $0x228] ss:$12 sps:$4 sm:$0xff]  }
  0xdc   :  { %v6476_v25 = vpop.f32.mrf.mxu1  ;;  %4911 = vmatmul.mubr.msk.bf16.gmra.mxu1 %vm960_vm1, %v5754_v63  ;;  %v6496_v63 = vld [vmem:[%s9209_s0 + $0x22c] ss:$12 sps:$4 sm:$0xff]  }
  0xdd   :  { %1673 = vmatprep.mubr.bf16.mxu1 %v9218_v1  ;;  %9303 = vst [vmem:[#allocation24_spill] sm:$0xff] %v6496_v63 }
  0xde   :  { %v6481_v31 = vpop.f32.mrf.mxu1 }
  0xe2   :  { %1291 = vmatmul.mubr.bf16.gmra.mxu0 %v6440_v41 }
  0xe3   :  { %1300 = vmatprep.mubr.bf16.mxu0 %v6448_v47  ;;  %v6488_v47 = vpop.f32.mrf.mxu1 }
  0xea   :  { %1301 = vmatmul.mubr.bf16.gmra.mxu0 %v6461_v55  ;;  %v5761_v55 = vld [vmem:[%s9209_s0 + $0x290] ss:$12 sps:$4 sm:$0xff]  }
  0xeb   :  { %1310 = vmatprep.mubr.bf16.mxu0 %v6471_v6  ;;  %v6498_v6 = vpop.f32.mrf.mxu1  ;;  %4912 = vmatmul.mubr.msk.bf16.gmra.mxu1 %vm960_vm1, %v5761_v55 }
  0xec   :  { %1716 = vmatprep.mubr.bf16.mxu1 %v5899_v20 }
  0xed   :  { %v6501_v1 = vpop.f32.mrf.mxu1 }
  0xef   :  { %v6506_v41 = vpop.f32.mrf.mxu1 }
  0xf1   :  { %v6511_v30 = vpop.f32.mrf.mxu1 }
  0xf2   :  { %1311 = vmatmul.mubr.bf16.gmra.mxu0 %v6486_v44  ;;  %v5744_v44 = vld [vmem:[%s9209_s0 + $0x244] ss:$12 sps:$4 sm:$0xff]  }
  0xf3   :  { %1320 = vmatprep.mubr.bf16.mxu0 %v6496_v63  ;;  %v6516_v26 = vpop.f32.mrf.mxu1  ;;  %1717 = vmatmul.mubr.bf16.vlgmr.msra.gmra.mxu1 %v6026_v58  ;;  %v5746_v63 = vld [vmem:[%s9209_s0 + $0x240] ss:$12 sps:$4 sm:$0xff]  }
  0xf4   :  { %1726 = vmatprep.mubr.bf16.mxu1 %v6034_v60 }
  0xf5   :  { %v6518_v55 = vpop.f32.mrf.mxu1 }
  0xf7   :  { %v6522_v20 = vpop.f32.mrf.mxu1 }
  0xf9   :  { %v6527_v17 = vpop.f32.mrf.mxu1 }
  0xfa   :  { %1321 = vmatmul.mubr.bf16.gmra.mxu0 %v5742_v33 }
  0xfb   :  { %1330 = vmatprep.mubr.bf16.mxu0 %v5744_v44  ;;  %v6532_v33 = vpop.f32.mrf.mxu1  ;;  %1727 = vmatmul.mubr.bf16.gmra.mxu1 %v6051_v0  ;;  %v5755_v0 = vld [vmem:[%s9209_s0 + $0x274] ss:$12 sps:$4 sm:$0xff]  }
  0xfc   :  { %1736 = vmatprep.mubr.bf16.mxu1 %v6056_v2 }
  0xfd   :  { %v6534_v58 = vpop.f32.mrf.mxu1 }
  0xff   :  { %v6538_v7 = vpop.f32.mrf.mxu1 }
 0x101   :  { %v6543_v62 = vpop.f32.mrf.mxu1 }
 0x102   :  { %v1092_v11 = vpop.f32.mrf.mxu0  ;;  %1331 = vmatmul.mubr.bf16.gmra.mxu0 %v5746_v63 }
 0x103   :  { %v1406_v60 = vadd.f32 %v1405_v36, %v1092_v11  ;;  %1340 = vmatprep.mubr.bf16.mxu0 %v5751_v16  ;;  %v6550_v11 = vpop.f32.mrf.mxu1  ;;  %1737 = vmatmul.mubr.bf16.gmra.mxu1 %v6083_v8 }
 0x104   :  { %v1094_v44 = vpop.f32.mrf.mxu0  ;;  %1746 = vmatprep.mubr.bf16.mxu1 %v6093_v10  ;;  %v5762_v10 = vld [vmem:[%s9209_s0 + $0x28c] ss:$12 sps:$4 sm:$0xff]  }
 0x105   :  { %2310 = vst [vmem:[#allocation2] sm:$0xff] %v1406_v60  ;;  %v1408_v5 = vadd.f32 %v1407_v39, %v1094_v44  ;;  %v6554_v39 = vpop.f32.mrf.mxu1 }
 0x106   :  { %v1096_v28 = vpop.f32.mrf.mxu0 }
 0x107   :  { %2311 = vst [vmem:[#allocation2 + $0x8] sm:$0xff] %v1408_v5  ;;  %v6545_v63 = vadd.f32 %v1409_v42, %v1096_v28  ;;  %v6559_v5 = vpop.f32.mrf.mxu1 }
 0x108   :  { %v1098_v2 = vpop.f32.mrf.mxu0 }
 0x109   :  { %v6552_v16 = vadd.f32 %v1411_v48, %v1098_v2  ;;  %v6565_v48 = vpop.f32.mrf.mxu1 }
 0x10a   :  { %v1102_v36 = vpop.f32.mrf.mxu0  ;;  %1341 = vmatmul.mubr.bf16.gmra.mxu0 %v5753_v4  ;;  %v5757_v4 = vld [vmem:[%s9209_s0 + $0x270] ss:$12 sps:$4 sm:$0xff]  }
 0x10b   :  { %v1416_v60 = vadd.f32 %v6451_v50, %v1102_v36  ;;  %1350 = vmatprep.mubr.bf16.mxu0 %v5755_v0  ;;  %v6573_v0 = vpop.f32.mrf.mxu1  ;;  %1747 = vmatmul.mubr.bf16.gmra.mxu1 %v6109_v13 }
 0x10c   :  { %v1104_v28 = vpop.f32.mrf.mxu0  ;;  %1756 = vmatprep.mubr.bf16.mxu1 %v6114_v14 }
 0x10d   :  { %2319 = vst [vmem:[#allocation2 + $0x40] sm:$0xff] %v1416_v60  ;;  %v1418_v42 = vadd.f32 %v6456_v52, %v1104_v28  ;;  %v6578_v36 = vpop.f32.mrf.mxu1 }
 0x10e   :  { %v1106_v44 = vpop.f32.mrf.mxu0 }
 0x10f   :  { %2320 = vst [vmem:[#allocation2 + $0x48] sm:$0xff] %v1418_v42  ;;  %v6568_v8 = vadd.f32 %v6463_v59, %v1106_v44  ;;  %v6583_v28 = vpop.f32.mrf.mxu1 }
 0x110   :  { %v1108_v50 = vpop.f32.mrf.mxu0 }
 0x111   :  { %v6576_v52 = vadd.f32 %v6473_v12, %v1108_v50  ;;  %v5764_v12 = vld [vmem:[%s9209_s0 + $0x288] ss:$12 sps:$4 sm:$0xff]  }
 0x112   :  { %v1112_v2 = vpop.f32.mrf.mxu0  ;;  %1351 = vmatmul.mubr.bf16.gmra.mxu0 %v5757_v4  ;;  %v6589_v4 = vpop.f32.mrf.mxu1 }
 0x113   :  { %v1426_v60 = vadd.f32 %v6476_v25, %v1112_v2  ;;  %1360 = vmatprep.mubr.bf16.mxu0 %v5762_v10  ;;  %1757 = vmatmul.mubr.bf16.gmra.mxu1 %v6135_v18 }
 0x114   :  { %v1114_v59 = vpop.f32.mrf.mxu0  ;;  %v6592_v10 = vpop.f32.mrf.mxu1  ;;  %1766 = vmatprep.mubr.bf16.mxu1 %v6145_v21 }
 0x115   :  { %2327 = vst [vmem:[#allocation2 + $0x80] sm:$0xff] %v1426_v60  ;;  %v1428_v42 = vadd.f32 %v6481_v31, %v1114_v59  ;;  %v2543_v31 = vld [vmem:[#allocation2 + $0x40] sm:$0xff]  ;;  %v9304_v59 = vmov 0  }
 0x116   :  { %v1116_v44 = vpop.f32.mrf.mxu0  ;;  %v6595_v2 = vpop.f32.mrf.mxu1 }
 0x117   :  { %2328 = vst [vmem:[#allocation2 + $0x88] sm:$0xff] %v1428_v42  ;;  %v1430_v13 = vadd.f32 %v6488_v47, %v1116_v44  ;;  %v2535_v44 = vld [vmem:[#allocation2] sm:$0xff] }
 0x118   :  { %v1118_v25 = vpop.f32.mrf.mxu0  ;;  %v6601_v47 = vpop.f32.mrf.mxu1 }
 0x119   :  { %v1432_v14 = vadd.f32 %v6498_v6, %v1118_v25  ;;  %v2551_v25 = vmax.f32 %v2535_v44, %v2543_v31  ;;  %v2555_v44 = vmax.f32 %v6545_v63, %v6568_v8 }
 0x11a   :  { %v1122_v50 = vpop.f32.mrf.mxu0  ;;  %1361 = vmatmul.mubr.bf16.gmra.mxu0 %v5764_v12  ;;  %v6604_v61 = vpop.f32.mrf.mxu1 }
 0x11b   :  { %v1436_v60 = vadd.f32 %v6501_v1, %v1122_v50  ;;  %2029 = vmatprep.mubr.bf16.mxu0 %v9304_v59  ;;  %1767 = vmatmul.mubr.bf16.gmra.mxu1 %v6155_v22 }
 0x11c   :  { %v1124_v42 = vpop.f32.mrf.mxu0  ;;  %v2559_v23 = vld [vmem:[#allocation2 + $0x80] sm:$0xff]  ;;  %v6607_v50 = vpop.f32.mrf.mxu1  ;;  %1776 = vmatprep.mubr.bf16.mxu1 %v6165_v24 }
 0x11d   :  { %v1438_v6 = vadd.f32 %v6506_v41, %v1124_v42  ;;  %v2567_v57 = vmax.f32 %v2551_v25, %v2559_v23 }
 0x11e   :  { %v1126_v12 = vpop.f32.mrf.mxu0  ;;  %v6614_v41 = vpop.f32.mrf.mxu1 }
 0x11f   :  { %2336 = vst [vmem:[#allocation2 + $0xc8] sm:$0xff] %v1438_v6  ;;  %v1440_v18 = vadd.f32 %v6511_v30, %v1126_v12  ;;  %v2583_v23 = vmax.f32 %v2567_v57, %v1436_v60  ;;  %v2571_v57 = vmax.f32 %v2555_v44, %v1430_v13 }
 0x120   :  { %v1128_v1 = vpop.f32.mrf.mxu0 }
 0x121   :  { %v1442_v21 = vadd.f32 %v6516_v26, %v1128_v1  ;;  %v6620_v26 = vpop.f32.mrf.mxu1  ;;  %v2587_v12 = vmax.f32 %v2571_v57, %v1440_v18 }
 0x122   :  { %v1132_v19 = vpop.f32.mrf.mxu0  ;;  %4914 = vmatmul.mubr.msk.bf16.vlgmr.msra.gmra.mxu0 %vm960_vm1, %v5765_v56  ;;  %v2556_v56 = vmax.f32 %v6552_v16, %v6576_v52  ;;  %v5766_v16 = vld [vmem:[%s9209_s0 + $0x20] ss:$12 sps:$4 sm:$0xff]  }
 0x123   :  { %v1446_v31 = vadd.f32 %v6518_v55, %v1132_v19  ;;  %2039 = vmatprep.mubr.bf16.mxu0 %v9304_v59  ;;  %v6629_v19 = vpop.f32.mrf.mxu1  ;;  %1777 = vmatmul.mubr.bf16.gmra.mxu1 %v6181_v27 }
 0x124   :  { %v1134_v30 = vpop.f32.mrf.mxu0  ;;  %v2572_v55 = vmax.f32 %v2556_v56, %v1432_v14  ;;  %1786 = vmatprep.mubr.bf16.mxu1 %v6191_v29 }
 0x125   :  { %v1448_v42 = vadd.f32 %v6522_v20, %v1134_v30  ;;  %v6627_v6 = vmax.f32 %v2583_v23, %v1446_v31  ;;  %v6632_v25 = vpop.f32.mrf.mxu1 }
 0x126   :  { %v1136_v22 = vpop.f32.mrf.mxu0  ;;  %v2588_v63 = vmax.f32 %v2572_v55, %v1442_v21 }
 0x127   :  { %2344 = vst [vmem:[#allocation2 + $0x108] sm:$0xff] %v1448_v42  ;;  %v1450_v24 = vadd.f32 %v6527_v17, %v1136_v22  ;;  %v6639_v52 = vpop.f32.mrf.mxu1 }
 0x128   :  { %v1138_v60 = vpop.f32.mrf.mxu0 }
 0x129   :  { %v1452_v20 = vadd.f32 %v6532_v33, %v1138_v60  ;;  %v6646_v13 = vmax.f32 %v2587_v12, %v1450_v24  ;;  %v6651_v18 = vpop.f32.mrf.mxu1  ;;  %v5768_v12 = vld [vmem:[%s9209_s0 + $0x50] ss:$12 sps:$4 sm:$0xff]  }
 0x12a   :  { %v1142_v8 = vpop.f32.mrf.mxu0  ;;  %4915 = vmatmul.mubr.msk.bf16.gmra.mxu0 %vm960_vm1, %v5766_v16 }
 0x12b   :  { %v6643_v17 = vadd.f32 %v6534_v58, %v1142_v8  ;;  %2049 = vmatprep.mubr.bf16.mxu0 %v9304_v59  ;;  %9305 = vst [vmem:[#allocation25_spill] sm:$0xff] %v6646_v13  ;;  %v6648_v33 = vmax.f32 %v2588_v63, %v1452_v20  ;;  %v6658_v58 = vpop.f32.mrf.mxu1  ;;  %1787 = vmatmul.mubr.bf16.gmra.mxu1 %v6207_v32 }
 0x12c   :  { %v1144_v14 = vpop.f32.mrf.mxu0  ;;  %1796 = vmatprep.mubr.bf16.mxu1 %v6215_v34 }
 0x12d   :  { %9306 = vst [vmem:[#allocation26_spill] sm:$0xff] %v6648_v33  ;;  %v6654_v1 = vadd.f32 %v6538_v7, %v1144_v14  ;;  %v5031_v27 = vpack.i.bf16 %v6648_v33, %v6646_v13  ;;  %v6662_v30 = vpop.f32.mrf.mxu1  ;;  %v5767_v7 = vld [vmem:[%s9209_s0 + $0x38] ss:$12 sps:$4 sm:$0xff]  }
 0x12e   :  { %v1146_v21 = vpop.f32.mrf.mxu0 }
 0x12f   :  { %v1460_v31 = vadd.f32 %v6543_v62, %v1146_v21  ;;  %5032 = vrot.lane.b32.xlu1 %v5031_v27, %s5797_s13  ;;  %v6669_v44 = vpop.f32.mrf.mxu1 }
 0x130   :  { %v1148_v23 = vpop.f32.mrf.mxu0 }
 0x131   :  { %2355 = vst [vmem:[#allocation2 + $0x160] sm:$0xff] %v1460_v31  ;;  %v1462_v29 = vadd.f32 %v6550_v11, %v1148_v23  ;;  %v6677_v56 = vpop.f32.mrf.mxu1 }
 0x132   :  { %v1152_v42 = vpop.f32.mrf.mxu0  ;;  %4916 = vmatmul.mubr.msk.bf16.gmra.mxu0 %vm960_vm1, %v5767_v7 }
 0x133   :  { %2356 = vst [vmem:[#allocation2 + $0x168] sm:$0xff] %v1462_v29  ;;  %v6673_v62 = vadd.f32 %v6554_v39, %v1152_v42  ;;  %2059 = vmatprep.mubr.bf16.mxu0 %v9304_v59  ;;  %5037 = vrot.lane.b32.xlu1 %v5031_v27, %s5798_s16  ;;  %v6683_v57 = vpop.f32.mrf.mxu1 }
 0x134   :  { %v1154_v11 = vpop.f32.mrf.mxu0  ;;  %1797 = vmatmul.mubr.bf16.gmra.mxu1 %v6224_v35 }
 0x135   :  { %v6681_v22 = vadd.f32 %v6559_v5, %v1154_v11  ;;  %v6686_v55 = vpop.f32.mrf.mxu1  ;;  %1806 = vmatprep.mubr.bf16.mxu1 %v6232_v37  ;;  %v5769_v37 = vld [vmem:[%s9209_s0 + $0x68] ss:$12 sps:$4 sm:$0xff]  }
 0x136   :  { %v1156_v24 = vpop.f32.mrf.mxu0 }
 0x137   :  { %v1470_v32 = vadd.f32 %v6565_v48, %v1156_v24  ;;  %v6693_v34 = vpop.f32.mrf.mxu1 }
 0x138   :  { %v1158_v39 = vpop.f32.mrf.mxu0 }
 0x139   :  { %2363 = vst [vmem:[#allocation2 + $0x1a0] sm:$0xff] %v1470_v32  ;;  %v1472_v60 = vadd.f32 %v6573_v0, %v1158_v39  ;;  %v6699_v0 = vpop.f32.mrf.mxu1 }
 0x13a   :  { %v1162_v20 = vpop.f32.mrf.mxu0  ;;  %4917 = vmatmul.mubr.msk.bf16.gmra.mxu0 %vm960_vm1, %v5768_v12 }
 0x13b   :  { %2364 = vst [vmem:[#allocation2 + $0x1a8] sm:$0xff] %v1472_v60  ;;  %v1476_v5 = vadd.f32 %v6578_v36, %v1162_v20  ;;  %2069 = vmatprep.mubr.bf16.mxu0 %v9304_v59  ;;  %v6702_v16 = vpop.f32.mrf.mxu1 }
 0x13c   :  { %v1164_v48 = vpop.f32.mrf.mxu0  ;;  %1807 = vmatmul.mubr.bf16.gmra.mxu1 %v6241_v38 }
 0x13d   :  { %v1478_v63 = vadd.f32 %v6583_v28, %v1164_v48  ;;  %v6705_v21 = vpop.f32.mrf.mxu1  ;;  %1816 = vmatprep.mubr.bf16.mxu1 %v6249_v40  ;;  %v5770_v40 = vld [vmem:[%s9209_s0 + $0x80] ss:$12 sps:$4 sm:$0xff]  }
 0x13e   :  { %v1166_v8 = vpop.f32.mrf.mxu0 }
 0x13f   :  { %v1480_v14 = vadd.f32 %v6589_v4, %v1166_v8  ;;  %v6712_v31 = vpop.f32.mrf.mxu1 }
 0x140   :  { %v1168_v27 = vpop.f32.mrf.mxu0 }
 0x141   :  { %2371 = vst [vmem:[#allocation2 + $0x1e0] sm:$0xff] %v1480_v14  ;;  %v1482_v35 = vadd.f32 %v6592_v10, %v1168_v27  ;;  %v6718_v10 = vpop.f32.mrf.mxu1 }
 0x142   :  { %v1172_v36 = vpop.f32.mrf.mxu0  ;;  %4918 = vmatmul.mubr.msk.bf16.gmra.mxu0 %vm960_vm1, %v5769_v37 }
 0x143   :  { %2372 = vst [vmem:[#allocation2 + $0x1e8] sm:$0xff] %v1482_v35  ;;  %v1486_v28 = vadd.f32 %v6595_v2, %v1172_v36  ;;  %2079 = vmatprep.mubr.bf16.mxu0 %v9304_v59  ;;  %v6721_v42 = vpop.f32.mrf.mxu1 }
 0x144   :  { %v1174_v4 = vpop.f32.mrf.mxu0  ;;  %1817 = vmatmul.mubr.bf16.gmra.mxu1 %v6264_v43  ;;  %v2781_v43 = vmax.f32 %v6643_v17, %v6673_v62 }
 0x145   :  { %v1488_v23 = vadd.f32 %v6601_v47, %v1174_v4  ;;  %v6724_v24 = vpop.f32.mrf.mxu1  ;;  %1826 = vmatprep.mubr.bf16.mxu1 %v6272_v45 }
 0x146   :  { %v1176_v29 = vpop.f32.mrf.mxu0  ;;  %v2797_v14 = vmax.f32 %v2781_v43, %v1476_v5 }
 0x147   :  { %v1490_v7 = vadd.f32 %v6604_v61, %v1176_v29  ;;  %v6731_v32 = vpop.f32.mrf.mxu1 }
 0x148   :  { %v1178_v11 = vpop.f32.mrf.mxu0  ;;  %v2813_v17 = vmax.f32 %v2797_v14, %v1486_v28 }
 0x149   :  { %2379 = vst [vmem:[#allocation2 + $0x220] sm:$0xff] %v1490_v7  ;;  %v1492_v38 = vadd.f32 %v6607_v50, %v1178_v11  ;;  %v6737_v50 = vpop.f32.mrf.mxu1 }
 0x14a   :  { %v1182_v2 = vpop.f32.mrf.mxu0  ;;  %4919 = vmatmul.mubr.msk.bf16.gmra.mxu0 %vm960_vm1, %v5770_v40 }
 0x14b   :  { %2380 = vst [vmem:[#allocation2 + $0x228] sm:$0xff] %v1492_v38  ;;  %v1496_v61 = vadd.f32 %v6614_v41, %v1182_v2  ;;  %2089 = vmatprep.mubr.bf16.mxu0 %v9304_v59  ;;  %v6740_v20 = vpop.f32.mrf.mxu1  ;;  %v2782_v41 = vmax.f32 %v6654_v1, %v6681_v22 }
 0x14c   :  { %v1184_v47 = vpop.f32.mrf.mxu0  ;;  %1827 = vmatmul.mubr.bf16.gmra.mxu1 %v6281_v46 }
 0x14d   :  { %v1498_v39 = vadd.f32 %v6620_v26, %v1184_v47  ;;  %v6747_v8 = vpop.f32.mrf.mxu1  ;;  %v2798_v27 = vmax.f32 %v2782_v41, %v1478_v63  ;;  %1836 = vmatprep.mubr.bf16.mxu1 %v6292_v49  ;;  %v2829_v5 = vmax.f32 %v2813_v17, %v1496_v61 }
 0x14e   :  { %v1186_v60 = vpop.f32.mrf.mxu0 }
 0x14f   :  { %v1500_v12 = vadd.f32 %v6629_v19, %v1186_v60  ;;  %v6752_v35 = vpop.f32.mrf.mxu1  ;;  %v2814_v1 = vmax.f32 %v2798_v27, %v1488_v23 }
 0x150   :  { %v1188_v48 = vpop.f32.mrf.mxu0 }
 0x151   :  { %2387 = vst [vmem:[#allocation2 + $0x260] sm:$0xff] %v1500_v12  ;;  %v1502_v45 = vadd.f32 %v6632_v25, %v1188_v48  ;;  %v6758_v62 = vpop.f32.mrf.mxu1 }
 0x152   :  { %v1192_v26 = vpop.f32.mrf.mxu0  ;;  %4920 = vmatmul.mubr.msk.bf16.gmra.mxu0 %vm960_vm1, %v6061_v3  ;;  %v2830_v3 = vmax.f32 %v2814_v1, %v1498_v39 }
 0x153   :  { %2388 = vst [vmem:[#allocation2 + $0x268] sm:$0xff] %v1502_v45  ;;  %v1506_v19 = vadd.f32 %v6639_v52, %v1192_v26  ;;  %2099 = vmatprep.mubr.bf16.mxu0 %v9304_v59  ;;  %v6761_v36 = vpop.f32.mrf.mxu1  ;;  %v9309_v45 = vld [vmem:[#allocation3_spill] sm:$0xff] }
 0x154   :  { %v1194_v25 = vpop.f32.mrf.mxu0  ;;  %1837 = vmatmul.mubr.bf16.gmra.mxu1 %v6304_v51 }
 0x155   :  { %v1508_v22 = vadd.f32 %v6651_v18, %v1194_v25  ;;  %v6764_v37 = vmax.f32 %v2829_v5, %v1506_v19  ;;  %v6768_v4 = vpop.f32.mrf.mxu1  ;;  %1846 = vmatprep.mubr.bf16.mxu1 %v6312_v53 }
 0x156   :  { %v1196_v63 = vpop.f32.mrf.mxu0 }
 0x157   :  { %v1510_v46 = vadd.f32 %v6658_v58, %v1196_v63  ;;  %9307 = vst [vmem:[#allocation27_spill] sm:$0xff] %v6764_v37  ;;  %v6766_v52 = vmax.f32 %v2830_v3, %v1508_v22  ;;  %v6775_v29 = vpop.f32.mrf.mxu1 }
 0x158   :  { %v1198_v28 = vpop.f32.mrf.mxu0 }
 0x159   :  { %2395 = vst [vmem:[#allocation2 + $0x2a0] sm:$0xff] %v1510_v46  ;;  %v1512_v49 = vadd.f32 %v6662_v30, %v1198_v28  ;;  %v5046_v18 = vpack.i.bf16 %v6764_v37, %v6766_v52  ;;  %v6782_v7 = vpop.f32.mrf.mxu1  ;;  %v9312_v28 = vld [vmem:[#allocation4_spill] sm:$0xff] }
 0x15a   :  { %v1202_v23 = vpop.f32.mrf.mxu0  ;;  %4921 = vmatmul.mubr.msk.bf16.gmra.mxu0 %vm960_vm1, %v6088_v9 }
 0x15b   :  { %2396 = vst [vmem:[#allocation2 + $0x2a8] sm:$0xff] %v1512_v49  ;;  %v1516_v58 = vadd.f32 %v6669_v44, %v1202_v23  ;;  %2109 = vmatprep.mubr.bf16.mxu0 %v9304_v59  ;;  %5047 = vrot.lane.b32.xlu1 %v5046_v18, %s5799_s23  ;;  %v6786_v11 = vpop.f32.mrf.mxu1 }
 0x15c   :  { %v1204_v30 = vpop.f32.mrf.mxu0  ;;  %5042 = vrot.lane.b32.xlu0 %v5046_v18, %s5800_s24  ;;  %1847 = vmatmul.mubr.bf16.gmra.mxu1 %v6321_v54 }
 0x15d   :  { %2399 = vst [vmem:[#allocation2 + $0x2c0] sm:$0xff] %v1516_v58  ;;  %v1518_v9 = vadd.f32 %v6677_v56, %v1204_v30  ;;  %v6789_v2 = vpop.f32.mrf.mxu1 }
 0x15e   :  { %v1206_v51 = vpop.f32.mrf.mxu0 }
 0x15f   :  { %2400 = vst [vmem:[#allocation2 + $0x2c8] sm:$0xff] %v1518_v9  ;;  %v1520_v44 = vadd.f32 %v6683_v57, %v1206_v51  ;;  %v6794_v53 = vpop.f32.mrf.mxu1  ;;  %v9308_v57 = vld [vmem:[#allocation6_spill] sm:$0xff] }
 0x160   :  { %v1208_v38 = vpop.f32.mrf.mxu0  ;;  %1856 = vmatprep.mubr.bf16.mxu1 %v9308_v57 }
 0x161   :  { %2403 = vst [vmem:[#allocation2 + $0x2e0] sm:$0xff] %v1520_v44  ;;  %v1522_v40 = vadd.f32 %v6686_v55, %v1208_v38  ;;  %v6800_v39 = vpop.f32.mrf.mxu1 }
 0x162   :  { %v1212_v61 = vpop.f32.mrf.mxu0  ;;  %4922 = vmatmul.mubr.msk.bf16.gmra.mxu0 %vm960_vm1, %v6119_v15 }
 0x163   :  { %2404 = vst [vmem:[#allocation2 + $0x2e8] sm:$0xff] %v1522_v40  ;;  %v1526_v56 = vadd.f32 %v6693_v34, %v1212_v61  ;;  %2119 = vmatprep.mubr.bf16.mxu0 %v9304_v59  ;;  %v6803_v12 = vpop.f32.mrf.mxu1 }
 0x164   :  { %v1214_v47 = vpop.f32.mrf.mxu0  ;;  %v3011_v41 = vld [vmem:[#allocation2 + $0x2c0] sm:$0xff] }
 0x165   :  { %v1528_v55 = vadd.f32 %v6699_v0, %v1214_v47  ;;  %v6806_v54 = vpop.f32.mrf.mxu1  ;;  %v9310_v0 = vld [vmem:[#allocation7_spill] sm:$0xff]  ;;  %v3027_v26 = vmax.f32 %v3011_v41, %v1526_v56 }
 0x166   :  { %v1216_v60 = vpop.f32.mrf.mxu0  ;;  %1857 = vmatmul.mubr.bf16.gmra.mxu1 %v9310_v0 }
 0x167   :  { %2408 = vst [vmem:[#allocation2 + $0x308] sm:$0xff] %v1528_v55  ;;  %v1530_v15 = vadd.f32 %v6702_v16, %v1216_v60  ;;  %v6811_v14 = vpop.f32.mrf.mxu1  ;;  %v9311_v16 = vld [vmem:[#allocation8_spill] sm:$0xff]  ;;  %v9315_v60 = vld [vmem:[#allocation5_spill] sm:$0xff] }
 0x168   :  { %v1218_v43 = vpop.f32.mrf.mxu0  ;;  %1866 = vmatprep.mubr.bf16.mxu1 %v9311_v16 }
 0x169   :  { %2411 = vst [vmem:[#allocation2 + $0x320] sm:$0xff] %v1530_v15  ;;  %v1532_v34 = vadd.f32 %v6705_v21, %v1218_v43  ;;  %v6817_v17 = vpop.f32.mrf.mxu1  ;;  %v9316_v15 = vld [vmem:[#allocation11_spill] sm:$0xff] }
 0x16a   :  { %v1222_v48 = vpop.f32.mrf.mxu0  ;;  %4923 = vmatmul.mubr.msk.bf16.gmra.mxu0 %vm960_vm1, %v9309_v45  ;;  %v3016_v9 = vld [vmem:[#allocation2 + $0x2e8] sm:$0xff] }
 0x16b   :  { %2412 = vst [vmem:[#allocation2 + $0x328] sm:$0xff] %v1532_v34  ;;  %v1536_v27 = vadd.f32 %v6712_v31, %v1222_v48  ;;  %2129 = vmatprep.mubr.bf16.mxu0 %v9304_v59  ;;  %v6820_v22 = vpop.f32.mrf.mxu1 }
 0x16c   :  { %v1224_v19 = vpop.f32.mrf.mxu0 }
 0x16d   :  { %v1538_v21 = vadd.f32 %v6718_v10, %v1224_v19  ;;  %v3043_v1 = vmax.f32 %v3027_v26, %v1536_v27  ;;  %v6823_v63 = vpop.f32.mrf.mxu1  ;;  %v9313_v10 = vld [vmem:[#allocation9_spill] sm:$0xff] }
 0x16e   :  { %v1226_v25 = vpop.f32.mrf.mxu0  ;;  %1867 = vmatmul.mubr.bf16.gmra.mxu1 %v9313_v10  ;;  %v3020_v43 = vld [vmem:[#allocation2 + $0x308] sm:$0xff] }
 0x16f   :  { %2416 = vst [vmem:[#allocation2 + $0x348] sm:$0xff] %v1538_v21  ;;  %v1540_v5 = vadd.f32 %v6721_v42, %v1226_v25  ;;  %v6828_v49 = vpop.f32.mrf.mxu1  ;;  %v9314_v42 = vld [vmem:[#allocation10_spill] sm:$0xff] }
 0x170   :  { %v1228_v3 = vpop.f32.mrf.mxu0  ;;  %1876 = vmatprep.mubr.bf16.mxu1 %v9314_v42 }
 0x171   :  { %2419 = vst [vmem:[#allocation2 + $0x360] sm:$0xff] %v1540_v5  ;;  %v1542_v31 = vadd.f32 %v6724_v24, %v1228_v3  ;;  %v6834_v30 = vpop.f32.mrf.mxu1 }
 0x172   :  { %v1232_v46 = vpop.f32.mrf.mxu0  ;;  %4924 = vmatmul.mubr.msk.bf16.gmra.mxu0 %vm960_vm1, %v9312_v28  ;;  %v3024_v18 = vld [vmem:[#allocation2 + $0x328] sm:$0xff] }
 0x173   :  { %v1546_v23 = vadd.f32 %v6731_v32, %v1232_v46  ;;  %2139 = vmatprep.mubr.bf16.mxu0 %v9304_v59  ;;  %v3032_v44 = vmax.f32 %v3016_v9, %v3024_v18  ;;  %v6837_v40 = vpop.f32.mrf.mxu1  ;;  %v9318_v18 = vld [vmem:[#allocation13_spill] sm:$0xff] }
 0x174   :  { %v1234_v58 = vpop.f32.mrf.mxu0 }
 0x175   :  { %v1548_v24 = vadd.f32 %v6737_v50, %v1234_v58  ;;  %v3059_v51 = vmax.f32 %v3043_v1, %v1546_v23  ;;  %v6840_v32 = vpop.f32.mrf.mxu1  ;;  %v3048_v47 = vmax.f32 %v3032_v44, %v1542_v31  ;;  %v9319_v23 = vld [vmem:[#allocation14_spill] sm:$0xff] }
 0x176   :  { %v1236_v38 = vpop.f32.mrf.mxu0  ;;  %1877 = vmatmul.mubr.bf16.gmra.mxu1 %v9316_v15  ;;  %v3036_v0 = vld [vmem:[#allocation2 + $0x348] sm:$0xff]  ;;  %v9320_v15 = vld [vmem:[#allocation15_spill] sm:$0xff] }
 0x177   :  { %2424 = vst [vmem:[#allocation2 + $0x388] sm:$0xff] %v1548_v24  ;;  %v1550_v61 = vadd.f32 %v6740_v20, %v1236_v38  ;;  %v6845_v50 = vpop.f32.mrf.mxu1  ;;  %v9317_v20 = vld [vmem:[#allocation12_spill] sm:$0xff] }
 0x178   :  { %v1238_v56 = vpop.f32.mrf.mxu0  ;;  %1886 = vmatprep.mubr.bf16.mxu1 %v9317_v20 }
 0x179   :  { %2427 = vst [vmem:[#allocation2 + $0x3a0] sm:$0xff] %v1550_v61  ;;  %v1552_v57 = vadd.f32 %v6747_v8, %v1238_v56  ;;  %v6851_v45 = vpop.f32.mrf.mxu1  ;;  %v3012_v8 = vld [vmem:[#allocation2 + $0x2c8] sm:$0xff] }
 0x17a   :  { %v1242_v55 = vpop.f32.mrf.mxu0  ;;  %4925 = vmatmul.mubr.msk.bf16.gmra.mxu0 %vm960_vm1, %v9315_v60  ;;  %v3028_v26 = vmax.f32 %v3012_v8, %v3020_v43  ;;  %v9321_v43 = vld [vmem:[#allocation16_spill] sm:$0xff] }
 0x17b   :  { %v1556_v41 = vadd.f32 %v6752_v35, %v1242_v55  ;;  %2149 = vmatprep.mubr.bf16.mxu0 %v9304_v59  ;;  %v3064_v34 = vmax.f32 %v3048_v47, %v1552_v57  ;;  %v6854_v21 = vpop.f32.mrf.mxu1 }
 0x17c   :  { %v1244_v48 = vpop.f32.mrf.mxu0  ;;  %v3044_v25 = vmax.f32 %v3028_v26, %v3036_v0 }
 0x17d   :  { %v1558_v27 = vadd.f32 %v6758_v62, %v1244_v48  ;;  %v3075_v16 = vmax.f32 %v3059_v51, %v1556_v41  ;;  %v6857_v3 = vpop.f32.mrf.mxu1  ;;  %v5771_v62 = vld [vmem:[%s9209_s0 + $0x128] ss:$12 sps:$4 sm:$0xff]  }
 0x17e   :  { %v1246_v19 = vpop.f32.mrf.mxu0  ;;  %v3052_v1 = vld [vmem:[#allocation2 + $0x388] sm:$0xff]  ;;  %1887 = vmatmul.mubr.bf16.gmra.mxu1 %v9318_v18 }
 0x17f   :  { %v1560_v35 = vadd.f32 %v6761_v36, %v1246_v19  ;;  %v3060_v46 = vmax.f32 %v3044_v25, %v3052_v1  ;;  %v6864_v10 = vpop.f32.mrf.mxu1  ;;  %1896 = vmatprep.mubr.bf16.mxu1 %v9319_v23  ;;  %v5773_v19 = vld [vmem:[%s9209_s0 + $0x158] ss:$12 sps:$4 sm:$0xff]   ;;  %v9323_v1 = vld [vmem:[#allocation17_spill] sm:$0xff] }
 0x180   :  { %v1248_v5 = vpop.f32.mrf.mxu0  ;;  %v5774_v23 = vld [vmem:[%s9209_s0 + $0x170] ss:$12 sps:$4 sm:$0xff]  }
 0x181   :  { %2435 = vst [vmem:[#allocation2 + $0x3e0] sm:$0xff] %v1560_v35  ;;  %v1562_v31 = vadd.f32 %v6768_v4, %v1248_v5  ;;  %v6870_v58 = vpop.f32.mrf.mxu1  ;;  %v3076_v51 = vmax.f32 %v3060_v46, %v1558_v27  ;;  %v9324_v35 = vld [vmem:[#allocation18_spill] sm:$0xff] }
 0x182   :  { %v1252_v28 = vpop.f32.mrf.mxu0  ;;  %4926 = vmatmul.mubr.msk.bf16.gmra.mxu0 %vm960_vm1, %v5771_v62 }
 0x183   :  { %v1566_v36 = vadd.f32 %v6775_v29, %v1252_v28  ;;  %2159 = vmatprep.mubr.bf16.mxu0 %v9304_v59  ;;  %v3080_v42 = vmax.f32 %v3064_v34, %v1562_v31  ;;  %v6875_v38 = vpop.f32.mrf.mxu1 }
 0x184   :  { %v1254_v4 = vpop.f32.mrf.mxu0 }
 0x185   :  { %v1568_v9 = vadd.f32 %v6782_v7, %v1254_v4  ;;  %v6873_v24 = vmax.f32 %v3075_v16, %v1566_v36  ;;  %v6882_v57 = vpop.f32.mrf.mxu1  ;;  %v5772_v7 = vld [vmem:[%s9209_s0 + $0x140] ss:$12 sps:$4 sm:$0xff]  }
 0x186   :  { %v1256_v44 = vpop.f32.mrf.mxu0  ;;  %1897 = vmatmul.mubr.bf16.gmra.mxu1 %v9320_v15  ;;  %v9326_v4 = vld [vmem:[#allocation20_spill] sm:$0xff] }
 0x187   :  { %v6878_v61 = vadd.f32 %v6786_v11, %v1256_v44  ;;  %v6880_v29 = vmax.f32 %v3076_v51, %v1568_v9  ;;  %v6889_v60 = vpop.f32.mrf.mxu1  ;;  %1906 = vmatprep.mubr.bf16.mxu1 %v9321_v43  ;;  %v9327_v43 = vld [vmem:[#allocation21_spill] sm:$0xff] }
 0x188   :  { %v1258_v56 = vpop.f32.mrf.mxu0 }
 0x189   :  { %v1572_v47 = vadd.f32 %v6789_v2, %v1258_v56  ;;  %v6897_v20 = vpop.f32.mrf.mxu1 }
 0x18a   :  { %v1262_v55 = vpop.f32.mrf.mxu0  ;;  %4927 = vmatmul.mubr.msk.bf16.gmra.mxu0 %vm960_vm1, %v5772_v7 }
 0x18b   :  { %v1576_v11 = vadd.f32 %v6794_v53, %v1262_v55  ;;  %2169 = vmatprep.mubr.bf16.mxu0 %v9304_v59  ;;  %v6895_v41 = vmax.f32 %v3080_v42, %v1572_v47  ;;  %v6900_v8 = vpop.f32.mrf.mxu1  ;;  %v9325_v42 = vld [vmem:[#allocation19_spill] sm:$0xff] }
 0x18c   :  { %v1264_v2 = vpop.f32.mrf.mxu0 }
 0x18d   :  { %9322 = vst [vmem:[#allocation6_spill] sm:$0xff] %v6895_v41  ;;  %2447 = vst [vmem:[#allocation2 + $0x440] sm:$0xff] %v1576_v11  ;;  %v1578_v34 = vadd.f32 %v6800_v39, %v1264_v2  ;;  %v6903_v53 = vpop.f32.mrf.mxu1  ;;  %v5775_v11 = vld [vmem:[%s9209_s0 + $0x188] ss:$12 sps:$4 sm:$0xff]  }
 0x18e   :  { %v1266_v48 = vpop.f32.mrf.mxu0  ;;  %1907 = vmatmul.mubr.bf16.gmra.mxu1 %v9323_v1 }
 0x18f   :  { %2448 = vst [vmem:[#allocation2 + $0x448] sm:$0xff] %v1578_v34  ;;  %v1580_v0 = vadd.f32 %v6803_v12, %v1266_v48  ;;  %v6912_v39 = vpop.f32.mrf.mxu1  ;;  %1916 = vmatprep.mubr.bf16.mxu1 %v9324_v35  ;;  %v5776_v35 = vld [vmem:[%s9209_s0 + $0x1a0] ss:$12 sps:$4 sm:$0xff]  }
 0x190   :  { %v1268_v27 = vpop.f32.mrf.mxu0 }
 0x191   :  { %2451 = vst [vmem:[#allocation2 + $0x460] sm:$0xff] %v1580_v0  ;;  %v6906_v16 = vadd.f32 %v6806_v54, %v1268_v27  ;;  %v6918_v54 = vpop.f32.mrf.mxu1 }
 0x192   :  { %v1272_v26 = vpop.f32.mrf.mxu0  ;;  %4928 = vmatmul.mubr.msk.bf16.gmra.mxu0 %vm960_vm1, %v5773_v19 }
 0x193   :  { %v1586_v12 = vadd.f32 %v6811_v14, %v1272_v26  ;;  %2179 = vmatprep.mubr.bf16.mxu0 %v9304_v59  ;;  %v6921_v46 = vpop.f32.mrf.mxu1 }
 0x194   :  { %v1274_v25 = vpop.f32.mrf.mxu0 }
 0x195   :  { %2455 = vst [vmem:[#allocation2 + $0x480] sm:$0xff] %v1586_v12  ;;  %v1588_v5 = vadd.f32 %v6817_v17, %v1274_v25  ;;  %v6924_v18 = vpop.f32.mrf.mxu1  ;;  %v9329_v25 = vld [vmem:[#allocation23_spill] sm:$0xff] }
 0x196   :  { %v1276_v31 = vpop.f32.mrf.mxu0  ;;  %1917 = vmatmul.mubr.bf16.gmra.mxu1 %v9325_v42 }
 0x197   :  { %2456 = vst [vmem:[#allocation2 + $0x488] sm:$0xff] %v1588_v5  ;;  %v1590_v28 = vadd.f32 %v6820_v22, %v1276_v31  ;;  %v6933_v17 = vpop.f32.mrf.mxu1  ;;  %1926 = vmatprep.mubr.bf16.mxu1 %v9326_v4 }
 0x198   :  { %v1278_v62 = vpop.f32.mrf.mxu0 }
 0x199   :  { %2459 = vst [vmem:[#allocation2 + $0x4a0] sm:$0xff] %v1590_v28  ;;  %v6927_v14 = vadd.f32 %v6823_v63, %v1278_v62  ;;  %v6939_v63 = vpop.f32.mrf.mxu1 }
 0x19a   :  { %v1282_v36 = vpop.f32.mrf.mxu0  ;;  %4929 = vmatmul.mubr.msk.bf16.gmra.mxu0 %vm960_vm1, %v5774_v23 }
 0x19b   :  { %v1596_v22 = vadd.f32 %v6828_v49, %v1282_v36  ;;  %2189 = vmatprep.mubr.bf16.mxu0 %v9304_v59  ;;  %v6942_v56 = vpop.f32.mrf.mxu1 }
 0x19c   :  { %v1284_v9 = vpop.f32.mrf.mxu0 }
 0x19d   :  { %2463 = vst [vmem:[#allocation2 + $0x4c0] sm:$0xff] %v1596_v22  ;;  %v1598_v51 = vadd.f32 %v6834_v30, %v1284_v9  ;;  %v6945_v7 = vpop.f32.mrf.mxu1  ;;  %v5777_v9 = vld [vmem:[%s9209_s0 + $0x1b8] ss:$12 sps:$4 sm:$0xff]  }
 0x19e   :  { %v1286_v44 = vpop.f32.mrf.mxu0  ;;  %1927 = vmatmul.mubr.bf16.gmra.mxu1 %v9327_v43 }
 0x19f   :  { %2464 = vst [vmem:[#allocation2 + $0x4c8] sm:$0xff] %v1598_v51  ;;  %v1600_v47 = vadd.f32 %v6837_v40, %v1286_v44  ;;  %v6952_v30 = vpop.f32.mrf.mxu1  ;;  %v9328_v40 = vld [vmem:[#allocation22_spill] sm:$0xff]  ;;  %v5778_v51 = vld [vmem:[%s9209_s0 + $0x228] ss:$12 sps:$4 sm:$0xff]   ;;  %v5779_v44 = vld [vmem:[%s9209_s0 + $0x244] ss:$12 sps:$4 sm:$0xff]  }
 0x1a0   :  { %v1288_v55 = vpop.f32.mrf.mxu0  ;;  %1936 = vmatprep.mubr.bf16.mxu1 %v9328_v40 }
 0x1a1   :  { %2467 = vst [vmem:[#allocation2 + $0x4e0] sm:$0xff] %v1600_v47  ;;  %v1602_v49 = vadd.f32 %v6840_v32, %v1288_v55  ;;  %v6958_v48 = vpop.f32.mrf.mxu1 }
 0x1a2   :  { %v1292_v15 = vpop.f32.mrf.mxu0  ;;  %4930 = vmatmul.mubr.msk.bf16.gmra.mxu0 %vm960_vm1, %v5775_v11 }
 0x1a3   :  { %v1606_v2 = vadd.f32 %v6845_v50, %v1292_v15  ;;  %2199 = vmatprep.mubr.bf16.mxu0 %v9304_v59  ;;  %v6961_v27 = vpop.f32.mrf.mxu1 }
 0x1a4   :  { %v1294_v34 = vpop.f32.mrf.mxu0 }
 0x1a5   :  { %2471 = vst [vmem:[#allocation2 + $0x500] sm:$0xff] %v1606_v2  ;;  %v1608_v32 = vadd.f32 %v6851_v45, %v1294_v34  ;;  %v6964_v1 = vpop.f32.mrf.mxu1 }
 0x1a6   :  { %v1296_v0 = vpop.f32.mrf.mxu0  ;;  %1937 = vmatmul.mubr.bf16.gmra.mxu1 %v9329_v25 }
 0x1a7   :  { %2472 = vst [vmem:[#allocation2 + $0x508] sm:$0xff] %v1608_v32  ;;  %v1610_v26 = vadd.f32 %v6854_v21, %v1296_v0  ;;  %v6971_v45 = vpop.f32.mrf.mxu1  ;;  %v9330_v21 = vld [vmem:[#allocation24_spill] sm:$0xff] }
 0x1a8   :  { %v1298_v19 = vpop.f32.mrf.mxu0  ;;  %1946 = vmatprep.mubr.bf16.mxu1 %v9330_v21 }
 0x1a9   :  { %2475 = vst [vmem:[#allocation2 + $0x520] sm:$0xff] %v1610_v26  ;;  %v1612_v50 = vadd.f32 %v6857_v3, %v1298_v19  ;;  %v6977_v28 = vpop.f32.mrf.mxu1  ;;  %v5782_v19 = vld [vmem:[%s9209_s0 + $0x25c] ss:$12 sps:$4 sm:$0xff]  }
 0x1aa   :  { %v1302_v12 = vpop.f32.mrf.mxu0  ;;  %4931 = vmatmul.mubr.msk.bf16.gmra.mxu0 %vm960_vm1, %v5776_v35 }
 0x1ab   :  { %v1616_v5 = vadd.f32 %v6864_v10, %v1302_v12  ;;  %2209 = vmatprep.mubr.bf16.mxu0 %v9304_v59  ;;  %v6980_v36 = vpop.f32.mrf.mxu1 }
 0x1ac   :  { %v1304_v31 = vpop.f32.mrf.mxu0 }
 0x1ad   :  { %2479 = vst [vmem:[#allocation2 + $0x540] sm:$0xff] %v1616_v5  ;;  %v1618_v3 = vadd.f32 %v6870_v58, %v1304_v31  ;;  %v6983_v22 = vpop.f32.mrf.mxu1 }
 0x1ae   :  { %v1306_v62 = vpop.f32.mrf.mxu0  ;;  %1947 = vmatmul.mubr.bf16.gmra.mxu1 %v5778_v51 }
 0x1af   :  { %2480 = vst [vmem:[#allocation2 + $0x548] sm:$0xff] %v1618_v3  ;;  %v1620_v23 = vadd.f32 %v6875_v38, %v1306_v62  ;;  %v6990_v58 = vpop.f32.mrf.mxu1  ;;  %1956 = vmatprep.mubr.bf16.mxu1 %v5779_v44 }
 0x1b0   :  { %v1308_v42 = vpop.f32.mrf.mxu0 }
 0x1b1   :  { %2483 = vst [vmem:[#allocation2 + $0x560] sm:$0xff] %v1620_v23  ;;  %v1622_v10 = vadd.f32 %v6882_v57, %v1308_v42  ;;  %v3278_v57 = vmax.f32 %v6906_v16, %v6927_v14  ;;  %v7002_v55 = vpop.f32.mrf.mxu1 }
 0x1b2   :  { %v1312_v4 = vpop.f32.mrf.mxu0  ;;  %4932 = vmatmul.mubr.msk.bf16.gmra.mxu0 %vm960_vm1, %v5777_v9 }
 0x1b3   :  { %v1626_v38 = vadd.f32 %v6889_v60, %v1312_v4  ;;  %2219 = vmatprep.mubr.bf16.mxu0 %v9304_v59  ;;  %v3294_v11 = vmax.f32 %v3278_v57, %v1602_v49  ;;  %v7005_v2 = vpop.f32.mrf.mxu1 }
 0x1b4   :  { %v1314_v47 = vpop.f32.mrf.mxu0 }
 0x1b5   :  { %2487 = vst [vmem:[#allocation2 + $0x580] sm:$0xff] %v1626_v38  ;;  %v1628_v15 = vadd.f32 %v6897_v20, %v1314_v47  ;;  %v3310_v40 = vmax.f32 %v3294_v11, %v1612_v50  ;;  %v7008_v14 = vpop.f32.mrf.mxu1  ;;  %v5780_v20 = vld [vmem:[%s9209_s0 + $0x1d0] ss:$12 sps:$4 sm:$0xff]  }
 0x1b6   :  { %v1316_v43 = vpop.f32.mrf.mxu0 }
 0x1b7   :  { %2488 = vst [vmem:[#allocation2 + $0x588] sm:$0xff] %v1628_v15  ;;  %v1630_v60 = vadd.f32 %v6900_v8, %v1316_v43  ;;  %v3326_v32 = vmax.f32 %v3310_v40, %v1622_v10  ;;  %v7015_v49 = vpop.f32.mrf.mxu1  ;;  %v5781_v8 = vld [vmem:[%s9209_s0 + $0x240] ss:$12 sps:$4 sm:$0xff]  }
 0x1b8   :  { %v1318_v16 = vpop.f32.mrf.mxu0  ;;  %1957 = vmatmul.mubr.bf16.gmra.mxu1 %v5781_v8  ;;  %v5786_v43 = vld [vmem:[%s9209_s0 + $0x200] ss:$12 sps:$4 sm:$0xff]  }
 0x1b9   :  { %2491 = vst [vmem:[#allocation2 + $0x5a0] sm:$0xff] %v1630_v60  ;;  %v1632_v34 = vadd.f32 %v6903_v53, %v1318_v16  ;;  %1966 = vmatprep.mubr.bf16.mxu1 %v5782_v19  ;;  %v7027_v12 = vpop.f32.mrf.mxu1  ;;  %v5787_v60 = vld [vmem:[%s9209_s0 + $0x270] ss:$12 sps:$4 sm:$0xff]  }
 0x1ba   :  { %v1322_v0 = vpop.f32.mrf.mxu0  ;;  %4933 = vmatmul.mubr.msk.bf16.gmra.mxu0 %vm960_vm1, %v5780_v20 }
 0x1bb   :  { %v1636_v26 = vadd.f32 %v6912_v39, %v1322_v0  ;;  %2229 = vmatprep.mubr.bf16.mxu0 %v9304_v59  ;;  %v7022_v53 = vmax.f32 %v3326_v32, %v1632_v34  ;;  %v7032_v39 = vpop.f32.mrf.mxu1 }
 0x1bc   :  { %v1324_v50 = vpop.f32.mrf.mxu0 }
 0x1bd   :  { %2495 = vst [vmem:[#allocation2 + $0x5c0] sm:$0xff] %v1636_v26  ;;  %v1638_v35 = vadd.f32 %v6918_v54, %v1324_v50  ;;  %v5051_v25 = vpack.i.bf16 %v7022_v53, %v6627_v6  ;;  %v7036_v3 = vpop.f32.mrf.mxu1  ;;  %v5783_v54 = vld [vmem:[%s9209_s0 + $0x1e8] ss:$12 sps:$4 sm:$0xff]   ;;  %v5789_v50 = vld [vmem:[%s9209_s0 + $0x218] ss:$12 sps:$4 sm:$0xff]  }
 0x1be   :  { %v1326_v5 = vpop.f32.mrf.mxu0 }
 0x1bf   :  { %2496 = vst [vmem:[#allocation2 + $0x5c8] sm:$0xff] %v1638_v35  ;;  %v1640_v21 = vadd.f32 %v6921_v46, %v1326_v5  ;;  %5052 = vrot.lane.b32.xlu0 %v5051_v25, %s5800_s24  ;;  %v7043_v42 = vpop.f32.mrf.mxu1  ;;  %v5784_v46 = vld [vmem:[%s9209_s0 + $0x258] ss:$12 sps:$4 sm:$0xff]  }
 0x1c0   :  { %v1328_v31 = vpop.f32.mrf.mxu0  ;;  %1967 = vmatmul.mubr.bf16.gmra.mxu1 %v5784_v46 }
 0x1c1   :  { %2499 = vst [vmem:[#allocation2 + $0x5e0] sm:$0xff] %v1640_v21  ;;  %v1642_v62 = vadd.f32 %v6924_v18, %v1328_v31  ;;  %v5785_v18 = vld [vmem:[%s9209_s0 + $0x274] ss:$12 sps:$4 sm:$0xff]   ;;  %v7053_v9 = vpop.f32.mrf.mxu1 }
 0x1c2   :  { %v1332_v23 = vpop.f32.mrf.mxu0  ;;  %4934 = vmatmul.mubr.msk.bf16.gmra.mxu0 %vm960_vm1, %v5783_v54  ;;  %1976 = vmatprep.mubr.bf16.mxu1 %v5785_v18 }
 0x1c3   :  { %2500 = vst [vmem:[#allocation2 + $0x5e8] sm:$0xff] %v1642_v62  ;;  %v1646_v10 = vadd.f32 %v6933_v17, %v1332_v23  ;;  %2239 = vmatprep.mubr.bf16.mxu0 %v9304_v59  ;;  %v7056_v57 = vpop.f32.mrf.mxu1 }
 0x1c4   :  { %v1334_v4 = vpop.f32.mrf.mxu0 }
 0x1c5   :  { %2503 = vst [vmem:[#allocation2 + $0x600] sm:$0xff] %v1646_v10  ;;  %v1648_v51 = vadd.f32 %v6939_v63, %v1334_v4  ;;  %v7059_v47 = vpop.f32.mrf.mxu1  ;;  %v5791_v10 = vld [vmem:[%s9209_s0 + $0x230] ss:$12 sps:$4 sm:$0xff]  }
 0x1c6   :  { %v1336_v38 = vpop.f32.mrf.mxu0 }
 0x1c7   :  { %2504 = vst [vmem:[#allocation2 + $0x608] sm:$0xff] %v1648_v51  ;;  %v1650_v44 = vadd.f32 %v6942_v56, %v1336_v38  ;;  %v7066_v63 = vpop.f32.mrf.mxu1 }
 0x1c8   :  { %v1338_v17 = vpop.f32.mrf.mxu0  ;;  %1977 = vmatmul.mubr.bf16.gmra.mxu1 %v5787_v60 }
 0x1c9   :  { %2507 = vst [vmem:[#allocation2 + $0x620] sm:$0xff] %v1650_v44  ;;  %v1652_v15 = vadd.f32 %v6945_v7, %v1338_v17  ;;  %v5788_v7 = vld [vmem:[%s9209_s0 + $0x28c] ss:$12 sps:$4 sm:$0xff]   ;;  %v7076_v16 = vpop.f32.mrf.mxu1 }
 0x1ca   :  { %v1342_v11 = vpop.f32.mrf.mxu0  ;;  %4935 = vmatmul.mubr.msk.bf16.gmra.mxu0 %vm960_vm1, %v5786_v43  ;;  %1986 = vmatprep.mubr.bf16.mxu1 %v5788_v7  ;;  %v5792_v43 = vld [vmem:[%s9209_s0 + $0x248] ss:$12 sps:$4 sm:$0xff]  }
 0x1cb   :  { %2508 = vst [vmem:[#allocation2 + $0x628] sm:$0xff] %v1652_v15  ;;  %v1656_v56 = vadd.f32 %v6952_v30, %v1342_v11  ;;  %2249 = vmatprep.mubr.bf16.mxu0 %v9304_v59  ;;  %v7080_v20 = vpop.f32.mrf.mxu1 }
 0x1cc   :  { %v1344_v40 = vpop.f32.mrf.mxu0 }
 0x1cd   :  { %2511 = vst [vmem:[#allocation2 + $0x640] sm:$0xff] %v1656_v56  ;;  %v1658_v34 = vadd.f32 %v6958_v48, %v1344_v40  ;;  %v7083_v26 = vpop.f32.mrf.mxu1  ;;  %v5790_v48 = vld [vmem:[%s9209_s0 + $0x288] ss:$12 sps:$4 sm:$0xff]  }
 0x1ce   :  { %v1346_v32 = vpop.f32.mrf.mxu0 }
 0x1cf   :  { %2512 = vst [vmem:[#allocation2 + $0x648] sm:$0xff] %v1658_v34  ;;  %v1660_v0 = vadd.f32 %v6961_v27, %v1346_v32 }
 0x1d0   :  { %v1348_v30 = vpop.f32.mrf.mxu0  ;;  %1987 = vmatmul.mubr.bf16.gmra.mxu1 %v5790_v48 }
 0x1d1   :  { %2515 = vst [vmem:[#allocation2 + $0x660] sm:$0xff] %v1660_v0  ;;  %v1662_v8 = vadd.f32 %v6964_v1, %v1348_v30  ;;  %v7094_v1 = vpop.f32.mrf.mxu1 }
 0x1d2   :  { %v1352_v19 = vpop.f32.mrf.mxu0  ;;  %4936 = vmatmul.mubr.msk.bf16.gmra.mxu0 %vm960_vm1, %v5789_v50 }
 0x1d3   :  { %2516 = vst [vmem:[#allocation2 + $0x668] sm:$0xff] %v1662_v8  ;;  %v1666_v27 = vadd.f32 %v6971_v45, %v1352_v19  ;;  %2259 = vmatprep.mubr.bf16.mxu0 %v9304_v59  ;;  %v7097_v5 = vpop.f32.mrf.mxu1 }
 0x1d4   :  { %v1354_v35 = vpop.f32.mrf.mxu0 }
 0x1d5   :  { %2519 = vst [vmem:[#allocation2 + $0x680] sm:$0xff] %v1666_v27  ;;  %v1668_v25 = vadd.f32 %v6977_v28, %v1354_v35  ;;  %v7100_v62 = vpop.f32.mrf.mxu1 }
 0x1d6   :  { %v1356_v21 = vpop.f32.mrf.mxu0 }
 0x1d7   :  { %2520 = vst [vmem:[#allocation2 + $0x688] sm:$0xff] %v1668_v25  ;;  %v1670_v31 = vadd.f32 %v6980_v36, %v1356_v21  ;;  %v7103_v54 = vpop.f32.mrf.mxu1 }
 0x1d8   :  { %v1358_v23 = vpop.f32.mrf.mxu0 }
 0x1d9   :  { %2523 = vst [vmem:[#allocation2 + $0x6a0] sm:$0xff] %v1670_v31  ;;  %v1672_v45 = vadd.f32 %v6983_v22, %v1358_v23  ;;  %v7111_v36 = vpop.f32.mrf.mxu1 }
 0x1da   :  { %v1362_v46 = vpop.f32.mrf.mxu0  ;;  %4937 = vmatmul.mubr.msk.bf16.gmra.mxu0 %vm960_vm1, %v5791_v10 }
 0x1db   :  { %2524 = vst [vmem:[#allocation2 + $0x6a8] sm:$0xff] %v1672_v45  ;;  %v1676_v28 = vadd.f32 %v6990_v58, %v1362_v46  ;;  %2269 = vmatprep.mubr.bf16.mxu0 %v9304_v59  ;;  %v7114_v4 = vpop.f32.mrf.mxu1 }
 0x1dc   :  { %v1364_v18 = vpop.f32.mrf.mxu0 }
 0x1dd   :  { %2527 = vst [vmem:[#allocation2 + $0x6c0] sm:$0xff] %v1676_v28  ;;  %v1678_v22 = vadd.f32 %v7002_v55, %v1364_v18  ;;  %v7117_v44 = vpop.f32.mrf.mxu1 }
 0x1de   :  { %v1366_v51 = vpop.f32.mrf.mxu0 }
 0x1df   :  { %2528 = vst [vmem:[#allocation2 + $0x6c8] sm:$0xff] %v1678_v22  ;;  %v1680_v38 = vadd.f32 %v7005_v2, %v1366_v51  ;;  %v7120_v15 = vpop.f32.mrf.mxu1 }
 0x1e0   :  { %v1368_v17 = vpop.f32.mrf.mxu0 }
 0x1e1   :  { %2531 = vst [vmem:[#allocation2 + $0x6e0] sm:$0xff] %v1680_v38  ;;  %v1682_v58 = vadd.f32 %v7008_v14, %v1368_v17  ;;  %v7130_v2 = vpop.f32.mrf.mxu1  ;;  %v5795_v38 = vld [vmem:[%s9209_s0 + $0x290] ss:$12 sps:$4 sm:$0xff]  }
 0x1e2   :  { %v2031_v11 = vpop.f32.mrf.mxu0  ;;  %4938 = vmatmul.mubr.msk.bf16.gmra.mxu0 %vm960_vm1, %v5792_v43 }
 0x1e3   :  { %2532 = vst [vmem:[#allocation2 + $0x6e8] sm:$0xff] %v1682_v58  ;;  %v7127_v55 = vadd.f32 %v2031_v11, %v7015_v49  ;;  %2279 = vmatprep.mubr.bf16.mxu0 %v9304_v59  ;;  %v7133_v56 = vpop.f32.mrf.mxu1 }
 0x1e4   :  { %v2033_v60 = vpop.f32.mrf.mxu0 }
 0x1e5   :  { %v2034_v14 = vadd.f32 %v2033_v60, %v7027_v12  ;;  %v7139_v34 = vpop.f32.mrf.mxu1  ;;  %v5793_v12 = vld [vmem:[%s9209_s0 + $0x260] ss:$12 sps:$4 sm:$0xff]  }
 0x1e6   :  { %v2035_v7 = vpop.f32.mrf.mxu0 }
 0x1e7   :  { %2314 = vst.msk [vmem:[#allocation2 + $0x18] sm:$0xff] %vm2313_vm2, %v2034_v14  ;;  %v7137_v40 = vadd.f32 %v2035_v7, %v7032_v39  ;;  %v7142_v0 = vpop.f32.mrf.mxu1 }
 0x1e8   :  { %v2037_v49 = vpop.f32.mrf.mxu0 }
 0x1e9   :  { %v2038_v32 = vadd.f32 %v2037_v49, %v7036_v3  ;;  %v7151_v39 = vpop.f32.mrf.mxu1 }
 0x1ea   :  { %v2041_v30 = vpop.f32.mrf.mxu0  ;;  %4939 = vmatmul.mubr.msk.bf16.gmra.mxu0 %vm960_vm1, %v5793_v12 }
 0x1eb   :  { %2318 = vst.msk [vmem:[#allocation2 + $0x38] sm:$0xff] %vm2313_vm2, %v2038_v32  ;;  %v2042_v8 = vadd.f32 %v2041_v30, %v7043_v42  ;;  %2289 = vmatprep.mubr.bf16.mxu0 %v9304_v59  ;;  %v7154_v50 = vpop.f32.mrf.mxu1 }
 0x1ec   :  { %v2043_v19 = vpop.f32.mrf.mxu0 }
 0x1ed   :  { %v2044_v3 = vadd.f32 %v2043_v19, %v7053_v9  ;;  %v7160_v35 = vpop.f32.mrf.mxu1  ;;  %v5794_v9 = vld [vmem:[%s9209_s0 + $0x278] ss:$12 sps:$4 sm:$0xff]   ;;  %v2553_v43 = vmax.f32 %v7127_v55, %v2042_v8  ;;  %s5801_s0 = smov 48  }
 0x1ee   :  { %v2045_v48 = vpop.f32.mrf.mxu0 }
 0x1ef   :  { %2322 = vst.msk [vmem:[#allocation2 + $0x58] sm:$0xff] %vm2313_vm2, %v2044_v3  ;;  %v7158_v27 = vadd.f32 %v2045_v48, %v7056_v57  ;;  %v7163_v21 = vpop.f32.mrf.mxu1 }
 0x1f0   :  { %v2047_v25 = vpop.f32.mrf.mxu0 }
 0x1f1   :  { %v2048_v42 = vadd.f32 %v2047_v25, %v7059_v47  ;;  %v7172_v57 = vpop.f32.mrf.mxu1 }
 0x1f2   :  { %v2051_v31 = vpop.f32.mrf.mxu0  ;;  %4940 = vmatmul.mubr.msk.bf16.gmra.mxu0 %vm960_vm1, %v5794_v9 }
 0x1f3   :  { %2326 = vst.msk [vmem:[#allocation2 + $0x78] sm:$0xff] %vm2313_vm2, %v2048_v42  ;;  %v2052_v23 = vadd.f32 %v2051_v31, %v7066_v63  ;;  %2299 = vmatprep.mubr.bf16.mxu0 %v9304_v59  ;;  %v7175_v46 = vpop.f32.mrf.mxu1 }
 0x1f4   :  { %v2053_v45 = vpop.f32.mrf.mxu0 }
 0x1f5   :  { %v2054_v47 = vadd.f32 %v2053_v45, %v7076_v16  ;;  %v7179_v18 = vpop.f32.mrf.mxu1 }
 0x1f6   :  { %v2055_v10 = vpop.f32.mrf.mxu0 }
 0x1f7   :  { %2330 = vst.msk [vmem:[#allocation2 + $0x98] sm:$0xff] %vm2313_vm2, %v2054_v47  ;;  %v2056_v28 = vadd.f32 %v2055_v10, %v7080_v20  ;;  %v7182_v63 = vpop.f32.mrf.mxu1 }
 0x1f8   :  { %v2057_v22 = vpop.f32.mrf.mxu0 }
 0x1f9   :  { %v2058_v51 = vadd.f32 %v2057_v22, %v7083_v26  ;;  %v7190_v17 = vpop.f32.mrf.mxu1 }
 0x1fa   :  { %v2061_v59 = vpop.f32.mrf.mxu0  ;;  %4941 = vmatmul.mubr.msk.bf16.gmra.mxu0 %vm960_vm1, %v5795_v38 }
 0x1fb   :  { %2334 = vst.msk [vmem:[#allocation2 + $0xb8] sm:$0xff] %vm2313_vm2, %v2058_v51  ;;  %v2062_v16 = vadd.f32 %v2061_v59, %v7094_v1  ;;  %v7193_v11 = vpop.f32.mrf.mxu1  ;;  %v2569_v1 = vmax.f32 %v2553_v43, %v2052_v23  ;;  %v2557_v51 = vmax.f32 %v7137_v40, %v7158_v27  ;;  %v3015_v27 = vld [vmem:[#allocation2 + $0x2e0] sm:$0xff] }
 0x1fc   :  { %v2063_v20 = vpop.f32.mrf.mxu0 }
 0x1fd   :  { %v2064_v58 = vadd.f32 %v2063_v20, %v7097_v5  ;;  %v7198_v14 = vpop.f32.mrf.mxu1  ;;  %v2585_v12 = vmax.f32 %v2569_v1, %v2062_v16  ;;  %v3023_v20 = vld [vmem:[#allocation2 + $0x320] sm:$0xff]  ;;  %v2573_v43 = vmax.f32 %v2557_v51, %v2056_v28 }
 0x1fe   :  { %v2065_v26 = vpop.f32.mrf.mxu0  ;;  %v2562_v23 = vld [vmem:[#allocation2 + $0x98] sm:$0xff]  ;;  %v3039_v1 = vld [vmem:[#allocation2 + $0x360] sm:$0xff] }
 0x1ff   :  { %2338 = vst.msk [vmem:[#allocation2 + $0xd8] sm:$0xff] %vm2313_vm2, %v2064_v58  ;;  %v2066_v60 = vadd.f32 %v2065_v26, %v7100_v62  ;;  %v7201_v32 = vpop.f32.mrf.mxu1 }
 0x200   :  { %v2067_v7 = vpop.f32.mrf.mxu0 }
 0x201   :  { %v2068_v49 = vadd.f32 %v2067_v7, %v7103_v54  ;;  %v7205_v19 = vpop.f32.mrf.mxu1  ;;  %v2546_v54 = vld [vmem:[#allocation2 + $0x58] sm:$0xff] }
 0x202   :  { %v2071_v30 = vpop.f32.mrf.mxu0  ;;  %v2566_v51 = vld [vmem:[#allocation2 + $0xb8] sm:$0xff] }
 0x203   :  { %2342 = vst.msk [vmem:[#allocation2 + $0xf8] sm:$0xff] %vm2313_vm2, %v2068_v49  ;;  %v2072_v5 = vadd.f32 %v2071_v30, %v7111_v36  ;;  %v7210_v3 = vpop.f32.mrf.mxu1 }
 0x204   :  { %v2073_v55 = vpop.f32.mrf.mxu0 }
 0x205   :  { %v2074_v8 = vadd.f32 %v2073_v55, %v7114_v4  ;;  %v7208_v62 = vmax.f32 %v2585_v12, %v2072_v5  ;;  %v7218_v31 = vpop.f32.mrf.mxu1  ;;  %v2538_v4 = vld [vmem:[#allocation2 + $0x18] sm:$0xff]  ;;  %v2589_v5 = vmax.f32 %v2573_v43, %v2066_v60  ;;  %v3031_v12 = vmax.f32 %v3015_v27, %v3023_v20  ;;  %v3071_v60 = vld [vmem:[#allocation2 + $0x3e0] sm:$0xff]  ;;  %v2778_v43 = vld [vmem:[#allocation2 + $0x1a8] sm:$0xff] }
 0x206   :  { %v2075_v48 = vpop.f32.mrf.mxu0  ;;  %v2554_v47 = vmax.f32 %v2538_v4, %v2546_v54  ;;  %v2578_v22 = vld [vmem:[#allocation2 + $0xd8] sm:$0xff] }
 0x207   :  { %2346 = vst.msk [vmem:[#allocation2 + $0x118] sm:$0xff] %vm2313_vm2, %v2074_v8  ;;  %v2076_v25 = vadd.f32 %v2075_v48, %v7117_v44  ;;  %v5066_v42 = vpack.i.bf16 %v6873_v24, %v7208_v62  ;;  %v5056_v36 = vpack.i.bf16 %v7208_v62, %v6873_v24  ;;  %v7223_v10 = vpop.f32.mrf.mxu1  ;;  %v3055_v8 = vld [vmem:[#allocation2 + $0x3a0] sm:$0xff] }
 0x208   :  { %v2077_v9 = vpop.f32.mrf.mxu0  ;;  %v2570_v38 = vmax.f32 %v2554_v47, %v2562_v23  ;;  %v2550_v23 = vld [vmem:[#allocation2 + $0x78] sm:$0xff]  ;;  %v2769_v47 = vld [vmem:[#allocation2 + $0x160] sm:$0xff] }
 0x209   :  { %v2078_v45 = vadd.f32 %v2077_v9, %v7120_v15  ;;  %5067 = vrot.lane.b32.xlu0 %v5066_v42, %s5800_s24  ;;  %5057 = vrot.lane.b32.xlu1 %v5056_v36, %s5797_s13  ;;  %v7231_v16 = vpop.f32.mrf.mxu1  ;;  %v7248_v54 = vmax.f32 %v2589_v5, %v2076_v25 }
 0x20a   :  { %v2081_v44 = vpop.f32.mrf.mxu0  ;;  %v2586_v26 = vmax.f32 %v2570_v38, %v2578_v22  ;;  %v2542_v22 = vld [vmem:[#allocation2 + $0x38] sm:$0xff] }
 0x20b   :  { %2350 = vst.msk [vmem:[#allocation2 + $0x138] sm:$0xff] %vm2313_vm2, %v2078_v45  ;;  %v7229_v59 = vadd.f32 %v2081_v44, %v7130_v2  ;;  %v7235_v7 = vpop.f32.mrf.mxu1  ;;  %9331 = vst [vmem:[#allocation3_spill] sm:$0xff] %v7248_v54  ;;  %v2582_v27 = vld [vmem:[#allocation2 + $0xf8] sm:$0xff] }
 0x20c   :  { %v2083_v15 = vpop.f32.mrf.mxu0 }
 0x20d   :  { %v2084_v58 = vadd.f32 %v2083_v15, %v7133_v56  ;;  %5062 = vrot.lane.b32.xlu1 %v5056_v36, %s5798_s16  ;;  %v7243_v56 = vpop.f32.mrf.mxu1  ;;  %v3047_v36 = vmax.f32 %v3031_v12, %v3039_v1  ;;  %v2793_v15 = vld [vmem:[#allocation2 + $0x1e0] sm:$0xff] }
 0x20e   :  { %v2085_v49 = vpop.f32.mrf.mxu0  ;;  %v2594_v40 = vld [vmem:[#allocation2 + $0x118] sm:$0xff]  ;;  %v2809_v1 = vld [vmem:[#allocation2 + $0x220] sm:$0xff] }
 0x20f   :  { %2354 = vst.msk [vmem:[#allocation2 + $0x158] sm:$0xff] %vm2313_vm2, %v2084_v58  ;;  %v7239_v2 = vadd.f32 %v2085_v49, %v7139_v34  ;;  %v7241_v30 = vmax.f32 %v2586_v26, %v2594_v40  ;;  %v2777_v34 = vld [vmem:[#allocation2 + $0x1a0] sm:$0xff]  ;;  %v7251_v9 = vpop.f32.mrf.mxu1  ;;  %v3063_v25 = vmax.f32 %v3047_v36, %v3055_v8  ;;  %v2558_v26 = vmax.f32 %v2542_v22, %v2550_v23  ;;  %v2794_v8 = vld [vmem:[#allocation2 + $0x1e8] sm:$0xff] }
 0x210   :  { %v2087_v55 = vpop.f32.mrf.mxu0  ;;  %v2785_v38 = vmax.f32 %v2769_v47, %v2777_v34  ;;  %v2841_v22 = vld [vmem:[#allocation2 + $0x2a0] sm:$0xff] }
 0x211   :  { %v2088_v28 = vadd.f32 %v2087_v55, %v7142_v0  ;;  %v5086_v48 = vpack.i.bf16 %v6764_v37, %v7241_v30  ;;  %5072 = vrot.lane.b32.xlu1 %v5066_v42, %s5799_s23  ;;  %v5076_v0 = vpack.i.bf16 %v6880_v29, %v7208_v62  ;;  %v7260_v42 = vpop.f32.mrf.mxu1  ;;  %v3079_v58 = vmax.f32 %v3063_v25, %v3071_v60  ;;  %v2770_v55 = vld [vmem:[#allocation2 + $0x168] sm:$0xff] }
 0x212   :  { %v2091_v4 = vpop.f32.mrf.mxu0  ;;  %v2801_v12 = vmax.f32 %v2785_v38, %v2793_v15  ;;  %v2598_v34 = vld [vmem:[#allocation2 + $0x138] sm:$0xff]  ;;  %v2786_v60 = vmax.f32 %v2770_v55, %v2778_v43  ;;  %v2810_v38 = vld [vmem:[#allocation2 + $0x228] sm:$0xff] }
 0x213   :  { %2358 = vst.msk [vmem:[#allocation2 + $0x178] sm:$0xff] %vm2313_vm2, %v2088_v28  ;;  %v7255_v45 = vadd.f32 %v2091_v4, %v7151_v39  ;;  %5087 = vrot.lane.b32.xlu0 %v5086_v48, %s5798_s16  ;;  %v5091_v39 = vpack.i.bf16 %v6895_v41, %v7248_v54  ;;  %v7266_v49 = vpop.f32.mrf.mxu1  ;;  %v2825_v4 = vld [vmem:[#allocation2 + $0x260] sm:$0xff] }
 0x214   :  { %v2093_v44 = vpop.f32.mrf.mxu0  ;;  %v2817_v25 = vmax.f32 %v2801_v12, %v2809_v1 }
 0x215   :  { %v2094_v20 = vadd.f32 %v2093_v44, %v7154_v50  ;;  %5077 = vrot.lane.b32.xlu1 %v5076_v0, %s5801_s0  ;;  %v2574_v50 = vmax.f32 %v2558_v26, %v2566_v51  ;;  %v7273_v28 = vpop.f32.mrf.mxu1  ;;  %v7277_v0 = vmax.f32 %v3079_v58, %v6878_v61  ;;  %v2802_v51 = vmax.f32 %v2786_v60, %v2794_v8  ;;  %v2826_v26 = vld [vmem:[#allocation2 + $0x268] sm:$0xff] }
 0x216   :  { %v2095_v40 = vpop.f32.mrf.mxu0 }
 0x217   :  { %2362 = vst.msk [vmem:[#allocation2 + $0x198] sm:$0xff] %vm2313_vm2, %v2094_v20  ;;  %v7270_v5 = vadd.f32 %v2095_v40, %v7160_v35  ;;  %5092 = vrot.lane.b32.xlu0 %v5091_v39, %s5797_s13  ;;  %v2590_v35 = vmax.f32 %v2574_v50, %v2582_v27  ;;  %v7280_v47 = vpop.f32.mrf.mxu1  ;;  %v5101_v61 = vpack.i.bf16 %v7277_v0, %v7248_v54  ;;  %v2842_v50 = vld [vmem:[#allocation2 + $0x2a8] sm:$0xff] }
 0x218   :  { %v2097_v36 = vpop.f32.mrf.mxu0  ;;  %v2833_v20 = vmax.f32 %v2817_v25, %v2825_v4  ;;  %v2818_v27 = vmax.f32 %v2802_v51, %v2810_v38  ;;  %v3258_v54 = vld [vmem:[#allocation2 + $0x448] sm:$0xff] }
 0x219   :  { %v2098_v23 = vadd.f32 %v2097_v36, %v7163_v21  ;;  %5082 = vrot.lane.b32.xlu1 %v5086_v48, %s5797_s13  ;;  %v2606_v21 = vmax.f32 %v2590_v35, %v2598_v34  ;;  %v7287_v48 = vpop.f32.mrf.mxu1 }
 0x21a   :  { %v2101_v44 = vpop.f32.mrf.mxu0  ;;  %v7291_v40 = vmax.f32 %v2833_v20, %v2841_v22  ;;  %v2834_v8 = vmax.f32 %v2818_v27, %v2826_v26  ;;  %v2783_v26 = vmax.f32 %v7229_v59, %v7255_v45  ;;  %v2560_v45 = vld [vmem:[#allocation2 + $0x88] sm:$0xff] }
 0x21b   :  { %2366 = vst.msk [vmem:[#allocation2 + $0x1b8] sm:$0xff] %vm2313_vm2, %v2098_v23  ;;  %v2102_v15 = vadd.f32 %v2101_v44, %v7172_v57  ;;  %5097 = vrot.lane.b32.xlu0 %v5091_v39, %s5798_s16  ;;  %v7293_v1 = vpop.f32.mrf.mxu1 }
 0x21c   :  { %v2103_v58 = vpop.f32.mrf.mxu0  ;;  %v5116_v55 = vpack.i.bf16 %v7291_v40, %v2606_v21  ;;  %v7305_v4 = vmax.f32 %v2834_v8, %v2842_v50  ;;  %v2544_v8 = vld [vmem:[#allocation2 + $0x48] sm:$0xff] }
 0x21d   :  { %v2104_v43 = vadd.f32 %v2103_v58, %v7175_v46  ;;  %5107 = vrot.lane.b32.xlu1 %v5101_v61, %s5799_s23  ;;  %v7301_v46 = vpop.f32.mrf.mxu1 }
 0x21e   :  { %v2105_v57 = vpop.f32.mrf.mxu0  ;;  %9332 = vst [vmem:[#allocation7_spill] sm:$0xff] %v7305_v4  ;;  %v5126_v35 = vpack.i.bf16 %v7305_v4, %v2606_v21 }
 0x21f   :  { %2370 = vst.msk [vmem:[#allocation2 + $0x1d8] sm:$0xff] %vm2313_vm2, %v2104_v43  ;;  %v7297_v12 = vadd.f32 %v2105_v57, %v7179_v18  ;;  %5102 = vrot.lane.b32.xlu0 %v5101_v61, %s5800_s24  ;;  %v7307_v60 = vpop.f32.mrf.mxu1  ;;  %v2799_v57 = vmax.f32 %v2783_v26, %v2102_v15  ;;  %v2592_v26 = vld [vmem:[#allocation2 + $0x108] sm:$0xff] }
 0x220   :  { %v2107_v36 = vpop.f32.mrf.mxu0 }
 0x221   :  { %v2108_v34 = vadd.f32 %v2107_v36, %v7182_v63  ;;  %5117 = vrot.lane.b32.xlu1 %v5116_v55, %s5797_s13  ;;  %v7313_v25 = vpop.f32.mrf.mxu1 }
 0x222   :  { %v2111_v23 = vpop.f32.mrf.mxu0 }
 0x223   :  { %2374 = vst.msk [vmem:[#allocation2 + $0x1f8] sm:$0xff] %vm2313_vm2, %v2108_v34  ;;  %v2112_v18 = vadd.f32 %v2111_v23, %v7190_v17  ;;  %5112 = vrot.lane.b32.xlu0 %v5091_v39, %s5801_s0  ;;  %v7317_v22 = vpop.f32.mrf.mxu1 }
 0x224   :  { %v2113_v44 = vpop.f32.mrf.mxu0 }
 0x225   :  { %v2114_v63 = vadd.f32 %v2113_v44, %v7193_v11  ;;  %5127 = vrot.lane.b32.xlu1 %v5126_v35, %s5800_s24  ;;  %v7324_v17 = vpop.f32.mrf.mxu1  ;;  %v2815_v34 = vmax.f32 %v2799_v57, %v2112_v18 }
 0x226   :  { %v2115_v51 = vpop.f32.mrf.mxu0 }
 0x227   :  { %2378 = vst.msk [vmem:[#allocation2 + $0x218] sm:$0xff] %vm2313_vm2, %v2114_v63  ;;  %v7321_v38 = vadd.f32 %v2115_v51, %v7198_v14  ;;  %5122 = vrot.lane.b32.xlu0 %v5116_v55, %s5798_s16  ;;  %v7327_v21 = vpop.f32.mrf.mxu1  ;;  %v2576_v51 = vld [vmem:[#allocation2 + $0xc8] sm:$0xff] }
 0x228   :  { %v2117_v39 = vpop.f32.mrf.mxu0 }
 0x229   :  { %v2118_v61 = vadd.f32 %v2117_v39, %v7201_v32  ;;  %v7332_v58 = vpop.f32.mrf.mxu1  ;;  %v2776_v39 = vld [vmem:[#allocation2 + $0x198] sm:$0xff] }
 0x22a   :  { %v2121_v11 = vpop.f32.mrf.mxu0 }
 0x22b   :  { %2382 = vst.msk [vmem:[#allocation2 + $0x238] sm:$0xff] %vm2313_vm2, %v2118_v61  ;;  %v2122_v20 = vadd.f32 %v2121_v11, %v7205_v19  ;;  %5132 = vrot.lane.b32.xlu0 %v5126_v35, %s5799_s23  ;;  %v7337_v27 = vpop.f32.mrf.mxu1 }
 0x22c   :  { %v2123_v14 = vpop.f32.mrf.mxu0 }
 0x22d   :  { %v2124_v43 = vadd.f32 %v2123_v14, %v7210_v3  ;;  %v7343_v19 = vpop.f32.mrf.mxu1  ;;  %v2536_v3 = vld [vmem:[#allocation2 + $0x8] sm:$0xff]  ;;  %v2831_v35 = vmax.f32 %v2815_v34, %v2122_v20 }
 0x22e   :  { %v2125_v32 = vpop.f32.mrf.mxu0  ;;  %v2552_v44 = vmax.f32 %v2536_v3, %v2544_v8 }
 0x22f   :  { %2386 = vst.msk [vmem:[#allocation2 + $0x258] sm:$0xff] %vm2313_vm2, %v2124_v43  ;;  %v7341_v50 = vadd.f32 %v2125_v32, %v7218_v31  ;;  %v7346_v23 = vpop.f32.mrf.mxu1  ;;  %v2768_v43 = vld [vmem:[#allocation2 + $0x158] sm:$0xff] }
 0x230   :  { %v2127_v55 = vpop.f32.mrf.mxu0  ;;  %v2568_v18 = vmax.f32 %v2552_v44, %v2560_v45  ;;  %v2792_v32 = vld [vmem:[#allocation2 + $0x1d8] sm:$0xff] }
 0x231   :  { %v2128_v36 = vadd.f32 %v2127_v55, %v7223_v10  ;;  %v7350_v31 = vpop.f32.mrf.mxu1  ;;  %v2784_v55 = vmax.f32 %v2768_v43, %v2776_v39  ;;  %v2787_v43 = vmax.f32 %v7239_v2, %v7270_v5  ;;  %v3297_v5 = vld [vmem:[#allocation2 + $0x500] sm:$0xff] }
 0x232   :  { %v2131_v59 = vpop.f32.mrf.mxu0  ;;  %v2584_v57 = vmax.f32 %v2568_v18, %v2576_v51 }
 0x233   :  { %2390 = vst.msk [vmem:[#allocation2 + $0x278] sm:$0xff] %vm2313_vm2, %v2128_v36  ;;  %v2132_v15 = vadd.f32 %v2131_v59, %v7231_v16  ;;  %v7355_v11 = vpop.f32.mrf.mxu1  ;;  %v2808_v36 = vld [vmem:[#allocation2 + $0x218] sm:$0xff]  ;;  %v2800_v3 = vmax.f32 %v2784_v55, %v2792_v32  ;;  %v3257_v55 = vld [vmem:[#allocation2 + $0x440] sm:$0xff] }
 0x234   :  { %v2133_v63 = vpop.f32.mrf.mxu0  ;;  %v7366_v59 = vmax.f32 %v2584_v57, %v2592_v26 }
 0x235   :  { %v2134_v61 = vadd.f32 %v2133_v63, %v7235_v7  ;;  %v7353_v10 = vmax.f32 %v2831_v35, %v2132_v15  ;;  %v7361_v8 = vpop.f32.mrf.mxu1 }
 0x236   :  { %v2135_v14 = vpop.f32.mrf.mxu0  ;;  %v2824_v15 = vld [vmem:[#allocation2 + $0x258] sm:$0xff] }
 0x237   :  { %2394 = vst.msk [vmem:[#allocation2 + $0x298] sm:$0xff] %vm2313_vm2, %v2134_v61  ;;  %v2136_v16 = vadd.f32 %v2135_v14, %v7243_v56  ;;  %v5136_v20 = vpack.i.bf16 %v6627_v6, %v7353_v10  ;;  %v7368_v45 = vpop.f32.mrf.mxu1  ;;  %v5146_v44 = vpack.i.bf16 %v7366_v59, %v7353_v10 }
 0x238   :  { %v2137_v7 = vpop.f32.mrf.mxu0 }
 0x239   :  { %v2138_v34 = vadd.f32 %v2137_v7, %v7251_v9  ;;  %5137 = vrot.lane.b32.xlu0 %v5136_v20, %s5797_s13  ;;  %5142 = vrot.lane.b32.xlu1 %v5136_v20, %s5798_s16  ;;  %v2816_v9 = vmax.f32 %v2800_v3, %v2808_v36  ;;  %v7376_v63 = vpop.f32.mrf.mxu1  ;;  %v3281_v7 = vld [vmem:[#allocation2 + $0x4c0] sm:$0xff]  ;;  %v2803_v36 = vmax.f32 %v2787_v43, %v7297_v12 }
 0x23a   :  { %v2141_v56 = vpop.f32.mrf.mxu0 }
 0x23b   :  { %2398 = vst.msk [vmem:[#allocation2 + $0x2b8] sm:$0xff] %vm2313_vm2, %v2138_v34  ;;  %v7372_v35 = vadd.f32 %v2141_v56, %v7260_v42  ;;  %v2832_v61 = vmax.f32 %v2816_v9, %v2824_v15  ;;  %v7381_v18 = vpop.f32.mrf.mxu1  ;;  %v3265_v42 = vld [vmem:[#allocation2 + $0x480] sm:$0xff]  ;;  %v2819_v9 = vmax.f32 %v2803_v36, %v7321_v38 }
 0x23c   :  { %v2143_v51 = vpop.f32.mrf.mxu0  ;;  %v3273_v3 = vmax.f32 %v3257_v55, %v3265_v42  ;;  %v3329_v42 = vld [vmem:[#allocation2 + $0x580] sm:$0xff] }
 0x23d   :  { %v2144_v39 = vadd.f32 %v2143_v51, %v7266_v49  ;;  %5147 = vrot.lane.b32.xlu0 %v5146_v44, %s5800_s24  ;;  %5157 = vrot.lane.b32.xlu1 %v5146_v44, %s5801_s0  ;;  %v7389_v49 = vpop.f32.mrf.mxu1 }
 0x23e   :  { %v2145_v14 = vpop.f32.mrf.mxu0  ;;  %v2840_v26 = vld [vmem:[#allocation2 + $0x298] sm:$0xff]  ;;  %v3289_v12 = vmax.f32 %v3273_v3, %v3281_v7 }
 0x23f   :  { %2402 = vst.msk [vmem:[#allocation2 + $0x2d8] sm:$0xff] %vm2313_vm2, %v2144_v39  ;;  %v7387_v32 = vadd.f32 %v2145_v14, %v7273_v28  ;;  %v2848_v20 = vmax.f32 %v2832_v61, %v2840_v26  ;;  %v7394_v56 = vpop.f32.mrf.mxu1  ;;  %v2835_v61 = vmax.f32 %v2819_v9, %v7341_v50  ;;  %v2780_v50 = vld [vmem:[#allocation2 + $0x1b8] sm:$0xff] }
 0x240   :  { %v2147_v57 = vpop.f32.mrf.mxu0  ;;  %v3305_v14 = vmax.f32 %v3289_v12, %v3297_v5 }
 0x241   :  { %v2148_v34 = vadd.f32 %v2147_v57, %v7280_v47  ;;  %5152 = vrot.lane.b32.xlu0 %v5146_v44, %s5799_s23  ;;  %v7401_v15 = vpack.i.bf16 %v2848_v20, %v7366_v59  ;;  %v7404_v51 = vpop.f32.mrf.mxu1  ;;  %v3313_v44 = vld [vmem:[#allocation2 + $0x540] sm:$0xff]  ;;  %v7417_v43 = vpack.i.bf16 %v6880_v29, %v2848_v20  ;;  %v7419_v57 = vmax.f32 %v2835_v61, %v2136_v16  ;;  %v2796_v20 = vld [vmem:[#allocation2 + $0x1f8] sm:$0xff] }
 0x242   :  { %v2151_v2 = vpop.f32.mrf.mxu0 }
 0x243   :  { %2406 = vst.msk [vmem:[#allocation2 + $0x2f8] sm:$0xff] %vm2313_vm2, %v2148_v34  ;;  %v7398_v28 = vadd.f32 %v2151_v2, %v7287_v48  ;;  %v7410_v48 = vpop.f32.mrf.mxu1  ;;  %v2772_v2 = vld [vmem:[#allocation2 + $0x178] sm:$0xff] }
 0x244   :  { %v2153_v47 = vpop.f32.mrf.mxu0  ;;  %v2788_v9 = vmax.f32 %v2772_v2, %v2780_v50  ;;  %v2844_v50 = vld [vmem:[#allocation2 + $0x2b8] sm:$0xff] }
 0x245   :  { %v2154_v39 = vadd.f32 %v2153_v47, %v7293_v1  ;;  %5167 = vrot.lane.b32.xlu0 %v7401_v15, %s5797_s13  ;;  %v3321_v1 = vmax.f32 %v3305_v14, %v3313_v44  ;;  %v7421_v55 = vpop.f32.mrf.mxu1  ;;  %v2812_v47 = vld [vmem:[#allocation2 + $0x238] sm:$0xff] }
 0x246   :  { %v2155_v26 = vpop.f32.mrf.mxu0 }
 0x247   :  { %2410 = vst.msk [vmem:[#allocation2 + $0x318] sm:$0xff] %vm2313_vm2, %v2154_v39  ;;  %v7414_v38 = vadd.f32 %v2155_v26, %v7301_v46  ;;  %v7426_v34 = vmax.f32 %v3321_v1, %v3329_v42  ;;  %v7428_v3 = vpop.f32.mrf.mxu1  ;;  %v2804_v39 = vmax.f32 %v2788_v9, %v2796_v20  ;;  %v2828_v26 = vld [vmem:[#allocation2 + $0x278] sm:$0xff] }
 0x248   :  { %v2157_v7 = vpop.f32.mrf.mxu0 }
 0x249   :  { %v2158_v36 = vadd.f32 %v2157_v7, %v7307_v60  ;;  %5182 = vrot.lane.b32.xlu0 %v7417_v43, %s5799_s23  ;;  %9333 = vst [vmem:[#allocation8_spill] sm:$0xff] %v7426_v34  ;;  %v5191_v5 = vpack.i.bf16 %v7419_v57, %v7426_v34  ;;  %v7434_v12 = vpop.f32.mrf.mxu1  ;;  %v2820_v42 = vmax.f32 %v2804_v39, %v2812_v47 }
 0x24a   :  { %v2161_v46 = vpop.f32.mrf.mxu0 }
 0x24b   :  { %2414 = vst.msk [vmem:[#allocation2 + $0x338] sm:$0xff] %vm2313_vm2, %v2158_v36  ;;  %v2162_v16 = vadd.f32 %v2161_v46, %v7313_v25  ;;  %v7438_v61 = vpop.f32.mrf.mxu1 }
 0x24c   :  { %v2163_v60 = vpop.f32.mrf.mxu0 }
 0x24d   :  { %v2164_v44 = vadd.f32 %v2163_v60, %v7317_v22  ;;  %5192 = vrot.lane.b32.xlu0 %v5191_v5, %s5797_s13  ;;  %v7444_v1 = vpop.f32.mrf.mxu1  ;;  %v2836_v22 = vmax.f32 %v2820_v42, %v2828_v26 }
 0x24e   :  { %v2165_v14 = vpop.f32.mrf.mxu0 }
 0x24f   :  { %2418 = vst.msk [vmem:[#allocation2 + $0x358] sm:$0xff] %vm2313_vm2, %v2164_v44  ;;  %v7442_v25 = vadd.f32 %v2165_v14, %v7324_v17  ;;  %v7448_v46 = vpop.f32.mrf.mxu1  ;;  %v7454_v17 = vpack.i.bf16 %v6648_v33, %v7419_v57  ;;  %v2852_v9 = vmax.f32 %v2836_v22, %v2844_v50  ;;  %v3014_v22 = vld [vmem:[#allocation2 + $0x2d8] sm:$0xff]  ;;  %v3282_v33 = vld [vmem:[#allocation2 + $0x4c8] sm:$0xff] }
 0x250   :  { %v2167_v7 = vpop.f32.mrf.mxu0 }
 0x251   :  { %v2168_v36 = vadd.f32 %v2167_v7, %v7327_v21  ;;  %5197 = vrot.lane.b32.xlu0 %v5191_v5, %s5798_s16  ;;  %v7456_v60 = vpop.f32.mrf.mxu1  ;;  %v3029_v21 = vmax.f32 %v7372_v35, %v7398_v28  ;;  %v5216_v14 = vpack.i.bf16 %v7277_v0, %v2852_v9 }
 0x252   :  { %v2171_v2 = vpop.f32.mrf.mxu0 }
 0x253   :  { %2422 = vst.msk [vmem:[#allocation2 + $0x378] sm:$0xff] %vm2313_vm2, %v2168_v36  ;;  %v2172_v20 = vadd.f32 %v2171_v2, %v7332_v58  ;;  %v7463_v44 = vpop.f32.mrf.mxu1  ;;  %v3045_v7 = vmax.f32 %v3029_v21, %v2162_v16  ;;  %v3022_v2 = vld [vmem:[#allocation2 + $0x318] sm:$0xff] }
 0x254   :  { %v2173_v47 = vpop.f32.mrf.mxu0 }
 0x255   :  { %v2174_v5 = vadd.f32 %v2173_v47, %v7337_v27  ;;  %5207 = vrot.lane.b32.xlu0 %v7454_v17, %s5799_s23  ;;  %v7470_v26 = vpop.f32.mrf.mxu1  ;;  %v3061_v16 = vmax.f32 %v3045_v7, %v2172_v20 }
 0x256   :  { %v2175_v39 = vpop.f32.mrf.mxu0 }
 0x257   :  { %2426 = vst.msk [vmem:[#allocation2 + $0x398] sm:$0xff] %vm2313_vm2, %v2174_v5  ;;  %v7467_v58 = vadd.f32 %v2175_v39, %v7343_v19  ;;  %v7474_v27 = vpop.f32.mrf.mxu1  ;;  %v3030_v39 = vmax.f32 %v3014_v22, %v3022_v2 }
 0x258   :  { %v2177_v42 = vpop.f32.mrf.mxu0 }
 0x259   :  { %v2178_v35 = vadd.f32 %v2177_v42, %v7346_v23  ;;  %5217 = vrot.lane.b32.xlu0 %v5216_v14, %s5797_s13  ;;  %v7478_v36 = vpop.f32.mrf.mxu1 }
 0x25a   :  { %v2181_v28 = vpop.f32.mrf.mxu0  ;;  %v3042_v13 = vld [vmem:[#allocation2 + $0x378] sm:$0xff] }
 0x25b   :  { %2430 = vst.msk [vmem:[#allocation2 + $0x3b8] sm:$0xff] %vm2313_vm2, %v2178_v35  ;;  %v2182_v50 = vadd.f32 %v2181_v28, %v7350_v31  ;;  %v7482_v23 = vpop.f32.mrf.mxu1  ;;  %v7489_v31 = vpack.i.bf16 %v6895_v41, %v2852_v9  ;;  %v3038_v28 = vld [vmem:[#allocation2 + $0x358] sm:$0xff] }
 0x25c   :  { %v2183_v19 = vpop.f32.mrf.mxu0  ;;  %v3046_v9 = vmax.f32 %v3030_v39, %v3038_v28 }
 0x25d   :  { %v2184_v47 = vadd.f32 %v2183_v19, %v7355_v11  ;;  %5222 = vrot.lane.b32.xlu0 %v5216_v14, %s5798_s16  ;;  %v7491_v42 = vpop.f32.mrf.mxu1  ;;  %v3077_v20 = vmax.f32 %v3061_v16, %v2182_v50 }
 0x25e   :  { %v2185_v21 = vpop.f32.mrf.mxu0  ;;  %v3054_v2 = vld [vmem:[#allocation2 + $0x398] sm:$0xff] }
 0x25f   :  { %2434 = vst.msk [vmem:[#allocation2 + $0x3d8] sm:$0xff] %vm2313_vm2, %v2184_v47  ;;  %v7486_v5 = vadd.f32 %v2185_v21, %v7361_v8  ;;  %v7496_v14 = vpop.f32.mrf.mxu1  ;;  %v3062_v16 = vmax.f32 %v3046_v9, %v3054_v2 }
 0x260   :  { %v2187_v35 = vpop.f32.mrf.mxu0 }
 0x261   :  { %v2188_v11 = vadd.f32 %v2187_v35, %v7368_v45  ;;  %5232 = vrot.lane.b32.xlu0 %v7489_v31, %s5799_s23  ;;  %v7500_v19 = vpop.f32.mrf.mxu1 }
 0x262   :  { %v2191_v7 = vpop.f32.mrf.mxu0 }
 0x263   :  { %2438 = vst.msk [vmem:[#allocation2 + $0x3f8] sm:$0xff] %vm2313_vm2, %v2188_v11  ;;  %v2192_v8 = vadd.f32 %v2191_v7, %v7376_v63  ;;  %v7505_v45 = vpop.f32.mrf.mxu1 }
 0x264   :  { %v2193_v22 = vpop.f32.mrf.mxu0 }
 0x265   :  { %v2194_v47 = vadd.f32 %v2193_v22, %v7381_v18  ;;  %v7503_v21 = vmax.f32 %v3077_v20, %v2192_v8  ;;  %v7513_v39 = vpop.f32.mrf.mxu1  ;;  %v3033_v18 = vmax.f32 %v7387_v32, %v7414_v38  ;;  %v3026_v38 = vld [vmem:[#allocation2 + $0x338] sm:$0xff] }
 0x266   :  { %v2195_v35 = vpop.f32.mrf.mxu0  ;;  %v3070_v11 = vld [vmem:[#allocation2 + $0x3d8] sm:$0xff] }
 0x267   :  { %2442 = vst.msk [vmem:[#allocation2 + $0x418] sm:$0xff] %vm2313_vm2, %v2194_v47  ;;  %v7509_v50 = vadd.f32 %v2195_v35, %v7389_v49  ;;  %v5236_v63 = vpack.i.bf16 %v7503_v21, %v6880_v29  ;;  %v7519_v7 = vpop.f32.mrf.mxu1  ;;  %v3078_v9 = vmax.f32 %v3062_v16, %v3070_v11  ;;  %v3049_v47 = vmax.f32 %v3033_v18, %v7442_v25  ;;  %v3266_v11 = vld [vmem:[#allocation2 + $0x488] sm:$0xff] }
 0x268   :  { %v2197_v28 = vpop.f32.mrf.mxu0 }
 0x269   :  { %v2198_v20 = vadd.f32 %v2197_v28, %v7394_v56  ;;  %5237 = vrot.lane.b32.xlu0 %v5236_v63, %s5797_s13  ;;  %v7525_v22 = vpop.f32.mrf.mxu1  ;;  %v3018_v56 = vld [vmem:[#allocation2 + $0x2f8] sm:$0xff] }
 0x26a   :  { %v2201_v8 = vpop.f32.mrf.mxu0  ;;  %v3034_v18 = vmax.f32 %v3018_v56, %v3026_v38 }
 0x26b   :  { %2446 = vst.msk [vmem:[#allocation2 + $0x438] sm:$0xff] %vm2313_vm2, %v2198_v20  ;;  %v7523_v49 = vadd.f32 %v2201_v8, %v7404_v51  ;;  %v7530_v35 = vpop.f32.mrf.mxu1  ;;  %v7532_v20 = vpop.permute.xlu1 %5032 }
 0x26c   :  { %v2203_v2 = vpop.f32.mrf.mxu0  ;;  %9334 = vst [vmem:[#allocation4_spill] sm:$0xff] %v7532_v20  ;;  %v3050_v38 = vmax.f32 %v3034_v18, %v3042_v13  ;;  %v3330_v18 = vld [vmem:[#allocation2 + $0x588] sm:$0xff] }
 0x26d   :  { %v2204_v32 = vadd.f32 %v2203_v2, %v7410_v48  ;;  %5242 = vrot.lane.b32.xlu0 %v5236_v63, %s5798_s16  ;;  %v7538_v25 = vpop.f32.mrf.mxu1  ;;  %v3065_v2 = vmax.f32 %v3049_v47, %v7467_v58 }
 0x26e   :  { %v2205_v28 = vpop.f32.mrf.mxu0  ;;  %v3086_v41 = vld [vmem:[#allocation2 + $0x418] sm:$0xff] }
 0x26f   :  { %2450 = vst.msk [vmem:[#allocation2 + $0x458] sm:$0xff] %vm2313_vm2, %v2204_v32  ;;  %v7536_v51 = vadd.f32 %v2205_v28, %v7421_v55  ;;  %v3094_v16 = vmax.f32 %v3078_v9, %v3086_v41  ;;  %v7545_v32 = vpop.f32.mrf.mxu1  ;;  %v3274_v28 = vmax.f32 %v3258_v54, %v3266_v11  ;;  %v7555_v47 = vpop.permute.xlu1 %5037  ;;  %v3081_v11 = vmax.f32 %v3065_v2, %v7486_v5 }
 0x270   :  { %v2207_v48 = vpop.f32.mrf.mxu0  ;;  %9335 = vst [vmem:[#allocation9_spill] sm:$0xff] %v7555_v47  ;;  %v3269_v47 = vld [vmem:[#allocation2 + $0x4a0] sm:$0xff]  ;;  %v7567_v5 = vpop.permute.xlu0 %5042 }
 0x271   :  { %v2208_v63 = vadd.f32 %v2207_v48, %v7428_v3  ;;  %v7542_v8 = vpack.i.bf16 %v3094_v16, %v6766_v52  ;;  %v3298_v3 = vld [vmem:[#allocation2 + $0x508] sm:$0xff]  ;;  %v3290_v56 = vmax.f32 %v3274_v28, %v3282_v33  ;;  %v7553_v58 = vpop.f32.mrf.mxu1  ;;  %v5271_v54 = vpack.i.bf16 %v7426_v34, %v3094_v16  ;;  %9337 = vst [vmem:[#allocation5_spill] sm:$0xff] %v7567_v5 }
 0x272   :  { %v2211_v55 = vpop.f32.mrf.mxu0 }
 0x273   :  { %2454 = vst.msk [vmem:[#allocation2 + $0x478] sm:$0xff] %vm2313_vm2, %v2208_v63  ;;  %v7549_v41 = vadd.f32 %v2211_v55, %v7434_v12  ;;  %5267 = vrot.lane.b32.xlu0 %v7542_v8, %s5798_s16  ;;  %v3314_v63 = vld [vmem:[#allocation2 + $0x548] sm:$0xff]  ;;  %v3058_v12 = vld [vmem:[#allocation2 + $0x3b8] sm:$0xff]  ;;  %v3306_v20 = vmax.f32 %v3290_v56, %v3298_v3  ;;  %v7565_v16 = vpop.permute.xlu1 %5047 }
 0x274   :  { %v2213_v9 = vpop.f32.mrf.mxu0  ;;  %v3066_v28 = vmax.f32 %v3050_v38, %v3058_v12  ;;  %9336 = vst [vmem:[#allocation10_spill] sm:$0xff] %v7565_v16  ;;  %v3074_v56 = vld [vmem:[#allocation2 + $0x3f8] sm:$0xff] }
 0x275   :  { %v2214_v48 = vadd.f32 %v2213_v9, %v7438_v61  ;;  %v3322_v33 = vmax.f32 %v3306_v20, %v3314_v63  ;;  %v7563_v61 = vpop.f32.mrf.mxu1  ;;  %v7572_v9 = vmax.f32 %v3081_v11, %v7509_v50  ;;  %v3285_v20 = vld [vmem:[#allocation2 + $0x4e0] sm:$0xff] }
 0x276   :  { %v2215_v55 = vpop.f32.mrf.mxu0 }
 0x277   :  { %2458 = vst.msk [vmem:[#allocation2 + $0x498] sm:$0xff] %vm2313_vm2, %v2214_v48  ;;  %v2216_v37 = vadd.f32 %v2215_v55, %v7444_v1  ;;  %5272 = vrot.lane.b32.xlu0 %v5271_v54, %s5800_s24  ;;  %9338 = vst [vmem:[#allocation11_spill] sm:$0xff] %v7572_v9  ;;  %v3261_v48 = vld [vmem:[#allocation2 + $0x460] sm:$0xff]  ;;  %v7577_v63 = vmax.f32 %v3322_v33, %v3330_v18  ;;  %v3090_v33 = vld [vmem:[#allocation2 + $0x438] sm:$0xff] }
 0x278   :  { %v2217_v13 = vpop.f32.mrf.mxu0  ;;  %v3277_v12 = vmax.f32 %v3261_v48, %v3269_v47  ;;  %v3317_v18 = vld [vmem:[#allocation2 + $0x560] sm:$0xff] }
 0x279   :  { %v3279_v2 = vmax.f32 %v7536_v51, %v2216_v37  ;;  %v2218_v3 = vadd.f32 %v2217_v13, %v7448_v46  ;;  %9339 = vst [vmem:[#allocation12_spill] sm:$0xff] %v7577_v63  ;;  %v3301_v37 = vld [vmem:[#allocation2 + $0x520] sm:$0xff]  ;;  %v7579_v51 = vpop.f32.mrf.mxu1  ;;  %v7581_v46 = vpop.permute.xlu0 %5052  ;;  %v7588_v13 = vpack.i.bf16 %v7577_v63, %v7572_v9 }
 0x27a   :  { %v2221_v1 = vpop.f32.mrf.mxu0  ;;  %9340 = vst [vmem:[#allocation13_spill] sm:$0xff] %v7581_v46  ;;  %v3333_v48 = vld [vmem:[#allocation2 + $0x5a0] sm:$0xff] }
 0x27b   :  { %2462 = vst.msk [vmem:[#allocation2 + $0x4b8] sm:$0xff] %vm2313_vm2, %v2218_v3  ;;  %v2222_v38 = vadd.f32 %v2221_v1, %v7456_v60  ;;  %5277 = vrot.lane.b32.xlu0 %v5271_v54, %s5799_s23  ;;  %v7584_v11 = vpop.permute.xlu1 %5057  ;;  %v3082_v60 = vmax.f32 %v3066_v28, %v3074_v56  ;;  %v3293_v3 = vmax.f32 %v3277_v12, %v3285_v20 }
 0x27c   :  { %v2223_v55 = vpop.f32.mrf.mxu0 }
 0x27d   :  { %v2224_v50 = vadd.f32 %v2223_v55, %v7463_v44  ;;  %v3309_v1 = vmax.f32 %v3293_v3, %v3301_v37  ;;  %v7594_v55 = vpop.f32.mrf.mxu1  ;;  %v7599_v56 = vpop.permute.xlu0 %5067  ;;  %v3098_v20 = vmax.f32 %v3082_v60, %v3090_v33 }
 0x27e   :  { %v2225_v54 = vpop.f32.mrf.mxu0 }
 0x27f   :  { %2466 = vst.msk [vmem:[#allocation2 + $0x4d8] sm:$0xff] %vm2313_vm2, %v2224_v50  ;;  %v2226_v47 = vadd.f32 %v2225_v54, %v7470_v26  ;;  %5287 = vrot.lane.b32.xlu0 %v7588_v13, %s5798_s16  ;;  %v3325_v12 = vmax.f32 %v3309_v1, %v3317_v18  ;;  %v7603_v50 = vpop.permute.xlu1 %5062  ;;  %v7609_v3 = vpop.f32.mrf.mxu1 }
 0x280   :  { %v2227_v44 = vpop.f32.mrf.mxu0 }
 0x281   :  { %v7596_v16 = vmax.f32 %v3279_v2, %v2226_v47  ;;  %v2228_v28 = vadd.f32 %v2227_v44, %v7474_v27  ;;  %v7607_v37 = vmax.f32 %v3325_v12, %v3333_v48  ;;  %v3275_v27 = vmax.f32 %v7523_v49, %v7549_v41  ;;  %v7625_v47 = vpop.f32.mrf.mxu1  ;;  %v3268_v12 = vld [vmem:[#allocation2 + $0x498] sm:$0xff] }
 0x282   :  { %v2231_v63 = vpop.f32.mrf.mxu0 }
 0x283   :  { %2470 = vst.msk [vmem:[#allocation2 + $0x4f8] sm:$0xff] %vm2313_vm2, %v2228_v28  ;;  %v2232_v26 = vadd.f32 %v2231_v63, %v7478_v36  ;;  %5297 = vrot.lane.b32.xlu0 %v7588_v13, %s5799_s23  ;;  %9341 = vst [vmem:[#allocation14_spill] sm:$0xff] %v7607_v37  ;;  %v7617_v33 = vpack.i.bf16 %v7607_v37, %v3098_v20  ;;  %v3291_v49 = vmax.f32 %v3275_v27, %v2222_v38  ;;  %v7630_v1 = vpop.permute.xlu1 %5072  ;;  %v7636_v28 = vpop.f32.mrf.mxu1  ;;  %v3260_v20 = vld [vmem:[#allocation2 + $0x458] sm:$0xff] }
 0x284   :  { %v2233_v2 = vpop.f32.mrf.mxu0 }
 0x285   :  { %v2234_v60 = vadd.f32 %v2233_v2, %v7482_v23  ;;  %v7614_v54 = vpop.permute.xlu0 %5087 }
 0x286   :  { %v2235_v36 = vpop.f32.mrf.mxu0 }
 0x287   :  { %2474 = vst.msk [vmem:[#allocation2 + $0x518] sm:$0xff] %vm2313_vm2, %v2234_v60  ;;  %v7621_v63 = vadd.f32 %v2235_v36, %v7491_v42  ;;  %5312 = vrot.lane.b32.xlu0 %v7617_v33, %s5798_s16  ;;  %v3276_v36 = vmax.f32 %v3260_v20, %v3268_v12 }
 0x288   :  { %v2237_v18 = vpop.f32.mrf.mxu0 }
 0x289   :  { %v2238_v23 = vadd.f32 %v2237_v18, %v7496_v14  ;;  %v7628_v41 = vpop.permute.xlu0 %5092  ;;  %v3307_v14 = vmax.f32 %v3291_v49, %v2232_v26 }
 0x28a   :  { %9342 = vst [vmem:[#allocation15_spill] sm:$0xff] %v7628_v41  ;;  %v2241_v44 = vpop.f32.mrf.mxu0  ;;  %v3559_v41 = vld [vmem:[#allocation2 + $0x6c0] sm:$0xff] }
 0x28b   :  { %2478 = vst.msk [vmem:[#allocation2 + $0x538] sm:$0xff] %vm2313_vm2, %v2238_v23  ;;  %v2242_v48 = vadd.f32 %v2241_v44, %v7500_v19  ;;  %5317 = vrot.lane.b32.xlu0 %v7617_v33, %s5800_s24  ;;  %v7645_v19 = vpop.permute.xlu1 %5077  ;;  %v7647_v23 = vpop.f32.mrf.mxu1  ;;  %v3284_v44 = vld [vmem:[#allocation2 + $0x4d8] sm:$0xff] }
 0x28c   :  { %v2243_v42 = vpop.f32.mrf.mxu0  ;;  %v3292_v49 = vmax.f32 %v3276_v36, %v3284_v44  ;;  %v3503_v44 = vld [vmem:[#allocation2 + $0x5c0] sm:$0xff] }
 0x28d   :  { %v2244_v38 = vadd.f32 %v2243_v42, %v7505_v45  ;;  %v7643_v60 = vpop.permute.xlu0 %5097  ;;  %v3323_v9 = vmax.f32 %v3307_v14, %v2242_v48  ;;  %v3511_v48 = vld [vmem:[#allocation2 + $0x600] sm:$0xff] }
 0x28e   :  { %v2245_v2 = vpop.f32.mrf.mxu0  ;;  %9343 = vst [vmem:[#allocation16_spill] sm:$0xff] %v7643_v60  ;;  %v3300_v42 = vld [vmem:[#allocation2 + $0x518] sm:$0xff] }
 0x28f   :  { %2482 = vst.msk [vmem:[#allocation2 + $0x558] sm:$0xff] %vm2313_vm2, %v2244_v38  ;;  %v7641_v27 = vadd.f32 %v2245_v2, %v7513_v39  ;;  %v7652_v38 = vpop.f32.mrf.mxu1  ;;  %v7656_v20 = vpop.permute.xlu1 %5082  ;;  %v3308_v14 = vmax.f32 %v3292_v49, %v3300_v42 }
 0x290   :  { %v2247_v18 = vpop.f32.mrf.mxu0 }
 0x291   :  { %v2248_v37 = vadd.f32 %v2247_v18, %v7519_v7  ;;  %v7654_v2 = vpop.permute.xlu0 %5102 }
 0x292   :  { %v2251_v45 = vpop.f32.mrf.mxu0  ;;  %9344 = vst [vmem:[#allocation17_spill] sm:$0xff] %v7654_v2  ;;  %v1970_v2 = vpop.f32.mrf.mxu1 }
 0x293   :  { %2486 = vst.msk [vmem:[#allocation2 + $0x578] sm:$0xff] %vm2313_vm2, %v2248_v37  ;;  %v2252_v26 = vadd.f32 %v2251_v45, %v7525_v22  ;;  %v3527_v45 = vld [vmem:[#allocation2 + $0x640] sm:$0xff] }
 0x294   :  { %v2253_v39 = vpop.f32.mrf.mxu0  ;;  %v1972_v5 = vpop.f32.mrf.mxu1 }
 0x295   :  { %v2254_v12 = vadd.f32 %v2253_v39, %v7530_v35  ;;  %v7659_v60 = vmax.f32 %v3323_v9, %v2252_v26  ;;  %v3519_v9 = vmax.f32 %v3503_v44, %v3511_v48  ;;  %v3543_v39 = vld [vmem:[#allocation2 + $0x680] sm:$0xff] }
 0x296   :  { %v2255_v7 = vpop.f32.mrf.mxu0  ;;  %v3316_v18 = vld [vmem:[#allocation2 + $0x558] sm:$0xff] }
 0x297   :  { %2490 = vst.msk [vmem:[#allocation2 + $0x598] sm:$0xff] %vm2313_vm2, %v2254_v12  ;;  %v7663_v37 = vadd.f32 %v2255_v7, %v7538_v25  ;;  %v7667_v22 = vpack.i.bf16 %v7305_v4, %v7659_v60  ;;  %v7672_v25 = vpop.permute.xlu0 %5112  ;;  %v7674_v12 = vpop.permute.xlu1 %5107  ;;  %v3324_v42 = vmax.f32 %v3308_v14, %v3316_v18  ;;  %v3535_v7 = vmax.f32 %v3519_v9, %v3527_v45 }
 0x298   :  { %v2257_v36 = vpop.f32.mrf.mxu0  ;;  %9345 = vst [vmem:[#allocation18_spill] sm:$0xff] %v7672_v25  ;;  %9346 = vst [vmem:[#allocation19_spill] sm:$0xff] %v7674_v12  ;;  %v1974_v14 = vpop.f32.mrf.mxu1 }
 0x299   :  { %v2258_v35 = vadd.f32 %v2257_v36, %v7545_v32  ;;  %5332 = vrot.lane.b32.xlu0 %v7667_v22, %s5798_s16  ;;  %v3551_v48 = vmax.f32 %v3535_v7, %v3543_v39 }
 0x29a   :  { %v2261_v26 = vpop.f32.mrf.mxu0 }
 0x29b   :  { %2494 = vst.msk [vmem:[#allocation2 + $0x5b8] sm:$0xff] %vm2313_vm2, %v2258_v35  ;;  %v2262_v49 = vadd.f32 %v2261_v26, %v7553_v58  ;;  %v7683_v25 = vmax.f32 %v3551_v48, %v3559_v41  ;;  %v7685_v18 = vpop.permute.xlu0 %5122  ;;  %v7687_v45 = vpop.permute.xlu1 %5117 }
 0x29c   :  { %v2263_v4 = vpop.f32.mrf.mxu0  ;;  %9348 = vst [vmem:[#allocation21_spill] sm:$0xff] %v7685_v18  ;;  %9349 = vst [vmem:[#allocation22_spill] sm:$0xff] %v7687_v45  ;;  %v1978_v41 = vpop.f32.mrf.mxu1 }
 0x29d   :  { %v2264_v32 = vadd.f32 %v2263_v4, %v7563_v61  ;;  %5347 = vrot.lane.b32.xlu0 %v7667_v22, %s5801_s0  ;;  %9347 = vst [vmem:[#allocation20_spill] sm:$0xff] %v7683_v25 }
 0x29e   :  { %v2265_v36 = vpop.f32.mrf.mxu0  ;;  %v3332_v44 = vld [vmem:[#allocation2 + $0x598] sm:$0xff] }
 0x29f   :  { %2498 = vst.msk [vmem:[#allocation2 + $0x5d8] sm:$0xff] %vm2313_vm2, %v2264_v32  ;;  %v2266_v12 = vadd.f32 %v2265_v36, %v7579_v51  ;;  %v3340_v35 = vmax.f32 %v3324_v42, %v3332_v44  ;;  %v7698_v32 = vpop.permute.xlu0 %5132  ;;  %v1980_v44 = vpop.f32.mrf.mxu1 }
 0x2a0   :  { %v2267_v58 = vpop.f32.mrf.mxu0  ;;  %9350 = vst [vmem:[#allocation23_spill] sm:$0xff] %v7698_v32 }
 0x2a1   :  { %v2268_v4 = vadd.f32 %v2267_v58, %v7594_v55  ;;  %v7691_v61 = vpack.i.bf16 %v7683_v25, %v3340_v35  ;;  %v7700_v55 = vpop.permute.xlu1 %5127 }
 0x2a2   :  { %v2271_v9 = vpop.f32.mrf.mxu0  ;;  %9351 = vst [vmem:[#allocation24_spill] sm:$0xff] %v7700_v55 }
 0x2a3   :  { %2502 = vst.msk [vmem:[#allocation2 + $0x5f8] sm:$0xff] %vm2313_vm2, %v2268_v4  ;;  %v2272_v26 = vadd.f32 %v2271_v9, %v7609_v3  ;;  %5367 = vrot.lane.b32.xlu0 %v7691_v61, %s5799_s23 }
 0x2a4   :  { %v2273_v51 = vpop.f32.mrf.mxu0 }
 0x2a5   :  { %v3521_v39 = vmax.f32 %v2262_v49, %v2272_v26  ;;  %v2274_v42 = vadd.f32 %v2273_v51, %v7625_v47  ;;  %v1982_v51 = vpop.f32.mrf.mxu1 }
 0x2a6   :  { %v2275_v7 = vpop.f32.mrf.mxu0 }
 0x2a7   :  { %2506 = vst.msk [vmem:[#allocation2 + $0x618] sm:$0xff] %vm2313_vm2, %v2274_v42  ;;  %v2276_v48 = vadd.f32 %v2275_v7, %v7636_v28  ;;  %v1984_v25 = vpop.f32.mrf.mxu1 }
 0x2a8   :  { %v2277_v36 = vpop.f32.mrf.mxu0 }
 0x2a9   :  { %v3525_v3 = vmax.f32 %v2266_v12, %v2276_v48  ;;  %v2278_v35 = vadd.f32 %v2277_v36, %v7647_v23 }
 0x2aa   :  { %v2281_v58 = vpop.f32.mrf.mxu0 }
 0x2ab   :  { %2510 = vst.msk [vmem:[#allocation2 + $0x638] sm:$0xff] %vm2313_vm2, %v2278_v35  ;;  %v2282_v49 = vadd.f32 %v2281_v58, %v7652_v38  ;;  %v7707_v47 = vpop.permute.xlu0 %5137  ;;  %v7709_v4 = vpop.permute.xlu1 %5142 }
 0x2ac   :  { %v2283_v9 = vpop.f32.mrf.mxu0  ;;  %v5140_v26 = vunpack.i.h.bf16 %v7707_v47  ;;  %v5145_v23 = vunpack.i.h.bf16 %v7709_v4 }
 0x2ad   :  { %v2284_v42 = vadd.f32 %v2283_v9, %v1970_v2  ;;  %v3537_v28 = vmax.f32 %v3521_v39, %v2282_v49 }
 0x2ae   :  { %v2285_v7 = vpop.f32.mrf.mxu0  ;;  %v2615_v12 = vmax.f32 %v6627_v6, %v5140_v26 }
 0x2af   :  { %2514 = vst.msk [vmem:[#allocation2 + $0x658] sm:$0xff] %vm2313_vm2, %v2284_v42  ;;  %v2286_v48 = vadd.f32 %v2285_v7, %v1972_v5  ;;  %v7715_v36 = vpop.permute.xlu0 %5147  ;;  %v7721_v49 = vpop.permute.xlu1 %5157 }
 0x2b0   :  { %v2287_v38 = vpop.f32.mrf.mxu0  ;;  %v7717_v35 = vmax.f32 %v2615_v12, %v5145_v23  ;;  %v9264_v58 = vunpack.i.h.bf16 %v7715_v36  ;;  %v1988_v42 = vpop.f32.mrf.mxu1 }
 0x2b1   :  { %v2288_v32 = vadd.f32 %v2287_v38, %v1974_v14  ;;  %v3541_v55 = vmax.f32 %v3525_v3, %v2286_v48  ;;  %v5160_v3 = vunpack.i.h.bf16 %v7721_v49 }
 0x2b2   :  { %v2291_v2 = vpop.f32.mrf.mxu0  ;;  %v2649_v5 = vmax.f32 %v7717_v35, %v9264_v58  ;;  %v3311_v58 = vmax.f32 %v7596_v16, %v7621_v63 }
 0x2b3   :  { %2518 = vst.msk [vmem:[#allocation2 + $0x678] sm:$0xff] %vm2313_vm2, %v2288_v32  ;;  %v2292_v39 = vadd.f32 %v2291_v2, %v1978_v41  ;;  %v7723_v9 = vpop.permute.xlu0 %5152  ;;  %v1990_v2 = vpop.f32.mrf.mxu1 }
 0x2b4   :  { %v2293_v26 = vpop.f32.mrf.mxu0  ;;  %v9267_v7 = vunpack.i.h.bf16 %v7723_v9 }
 0x2b5   :  { %v2294_v12 = vadd.f32 %v2293_v26, %v1980_v44  ;;  %v3553_v23 = vmax.f32 %v3537_v28, %v2292_v39  ;;  %v3327_v39 = vmax.f32 %v3311_v58, %v7641_v27 }
 0x2b6   :  { %v2295_v14 = vpop.f32.mrf.mxu0  ;;  %v2657_v41 = vmax.f32 %v2649_v5, %v9267_v7  ;;  %v1992_v5 = vpop.f32.mrf.mxu1 }
 0x2b7   :  { %2522 = vst.msk [vmem:[#allocation2 + $0x698] sm:$0xff] %vm2313_vm2, %v2294_v12  ;;  %v2296_v32 = vadd.f32 %v2295_v14, %v1982_v51  ;;  %v7740_v12 = vmax.f32 %v3327_v39, %v7663_v37 }
 0x2b8   :  { %v2297_v48 = vpop.f32.mrf.mxu0  ;;  %v2665_v38 = vmax.f32 %v2657_v41, %v5160_v3  ;;  %v3272_v3 = vld [vmem:[#allocation2 + $0x4b8] sm:$0xff] }
 0x2b9   :  { %v2298_v18 = vadd.f32 %v2297_v48, %v1984_v25  ;;  %v3557_v45 = vmax.f32 %v3541_v55, %v2296_v32  ;;  %v1994_v55 = vpop.f32.mrf.mxu1  ;;  %v5054_v48 = vunpack.i.l.bf16 %v7581_v46 }
 0x2ba   :  { %v2301_v34 = vpop.f32.mrf.mxu0  ;;  %v5161_v44 = vpack.i.bf16 %v2665_v38, %v6627_v6  ;;  %v3288_v38 = vld [vmem:[#allocation2 + $0x4f8] sm:$0xff] }
 0x2bb   :  { %2526 = vst.msk [vmem:[#allocation2 + $0x6b8] sm:$0xff] %vm2313_vm2, %v2298_v18  ;;  %v2302_v28 = vadd.f32 %v2301_v34, %v1988_v42  ;;  %v5168_v34 = vpop.permute.xlu0 %5167 }
 0x2bc   :  { %v2303_v26 = vpop.f32.mrf.mxu0  ;;  %5162 = vrot.lane.b32.xlu1 %v5161_v44, %s5799_s23  ;;  %v5170_v44 = vunpack.i.h.bf16 %v5168_v34 }
 0x2bd   :  { %v2304_v51 = vadd.f32 %v2303_v26, %v1990_v2  ;;  %v7742_v25 = vmax.f32 %v3553_v23, %v2302_v28  ;;  %v5139_v2 = vunpack.i.l.bf16 %v7707_v47  ;;  %v5169_v28 = vunpack.i.l.bf16 %v5168_v34 }
 0x2be   :  { %v2305_v16 = vpop.f32.mrf.mxu0  ;;  %v2985_v34 = vmax.f32 %v7353_v10, %v5170_v44 }
 0x2bf   :  { %9352 = vst [vmem:[#allocation28_spill] sm:$0xff] %v7742_v25  ;;  %2530 = vst.msk [vmem:[#allocation2 + $0x6d8] sm:$0xff] %vm2313_vm2, %v2304_v51  ;;  %v2306_v63 = vadd.f32 %v2305_v16, %v1992_v5  ;;  %v7751_v27 = vpop.permute.xlu0 %5182  ;;  %v2631_v5 = vmax.f32 %v7717_v35, %v5054_v48  ;;  %v5059_v51 = vunpack.i.l.bf16 %v7584_v11  ;;  %v2949_v47 = vmax.f32 %v7353_v10, %v5139_v2  ;;  %v3320_v10 = vld [vmem:[#allocation2 + $0x578] sm:$0xff] }
 0x2c0   :  { %5172 = vrot.lane.b32.xlu1 %v7401_v15, %s5798_s16  ;;  %v2307_v58 = vpop.f32.mrf.mxu0  ;;  %v2673_v7 = vmax.f32 %v7366_v59, %v5169_v28  ;;  %v5079_v59 = vunpack.i.l.bf16 %v7645_v19 }
 0x2c1   :  { %v7747_v6 = vmax.f32 %v3557_v45, %v2306_v63  ;;  %v2308_v42 = vadd.f32 %v2307_v58, %v1994_v55 }
 0x2c3   :  { %v7753_v18 = vpop.permute.xlu0 %5192  ;;  %2534 = vst.msk [vmem:[#allocation2 + $0x6f8] sm:$0xff] %vm2313_vm2, %v2308_v42 }
 0x2c4   :  { %5177 = vrot.lane.b32.xlu1 %v7417_v43, %s5800_s24  ;;  %v3264_v43 = vld [vmem:[#allocation2 + $0x478] sm:$0xff] }
 0x2c5   :  { %v3280_v32 = vmax.f32 %v3264_v43, %v3272_v3  ;;  %v3304_v43 = vld [vmem:[#allocation2 + $0x538] sm:$0xff]  ;;  %v5064_v3 = vunpack.i.l.bf16 %v7603_v50 }
 0x2c7   :  { %v7755_v37 = vpop.permute.xlu0 %5197  ;;  %v3296_v63 = vmax.f32 %v3280_v32, %v3288_v38 }
 0x2cb   :  { %v7757_v23 = vpop.permute.xlu0 %5207 }
 0x2cc   :  { %9353 = vst [vmem:[#allocation29_spill] sm:$0xff] %v7757_v23 }
 0x2cf   :  { %v7760_v15 = vpop.permute.xlu0 %5217 }
 0x2d3   :  { %v7762_v45 = vpop.permute.xlu0 %5222 }
 0x2d7   :  { %v7764_v14 = vpop.permute.xlu0 %5232 }
 0x2db   :  { %v7766_v41 = vpop.permute.xlu0 %5237 }
 0x2dc   :  { %9354 = vst [vmem:[#allocation30_spill] sm:$0xff] %v7766_v41  ;;  %v5239_v55 = vunpack.i.l.bf16 %v7766_v41 }
 0x2de   :  { %v3165_v23 = vmax.f32 %v6880_v29, %v5239_v55  ;;  %v5185_v29 = vunpack.i.h.bf16 %v7751_v27 }
 0x2df   :  { %v7772_v16 = vpop.permute.xlu0 %5242 }
 0x2e0   :  { %v5244_v48 = vunpack.i.l.bf16 %v7772_v16 }
 0x32e   :  { %v5163_v39 = vpop.permute.xlu1 %5162 }
 0x32f   :  { %v5164_v26 = vunpack.i.l.bf16 %v5163_v39  ;;  %v5165_v58 = vunpack.i.h.bf16 %v5163_v39  ;;  %v3107_v39 = vmax.f32 %v6873_v24, %v5059_v51 }
 0x331   :  { %v2639_v42 = vmax.f32 %v2631_v5, %v5164_v26  ;;  %v5144_v26 = vunpack.i.l.bf16 %v7709_v4  ;;  %v3312_v5 = vmax.f32 %v3296_v63, %v3304_v43  ;;  %v7786_v44 = vmax.f32 %v3107_v39, %v5064_v3 }
 0x332   :  { %v5173_v35 = vpop.permute.xlu1 %5172  ;;  %v5154_v63 = vunpack.i.l.bf16 %v7723_v9  ;;  %v9357_v43 = vunpack.i.h.bf16 %v7723_v9 }
 0x333   :  { %v7781_v46 = vsel %vm3853_vm3, %v2639_v42, %v5165_v58  ;;  %v5175_v32 = vunpack.i.h.bf16 %v5173_v35  ;;  %v5174_v38 = vunpack.i.l.bf16 %v5173_v35  ;;  %v2957_v28 = vmax.f32 %v2949_v47, %v5144_v26 }
 0x334   :  { %9355 = vst [vmem:[#allocation31_spill] sm:$0xff] %v7781_v46  ;;  %v5149_v58 = vunpack.i.l.bf16 %v7715_v36  ;;  %v3173_v46 = vmax.f32 %v3165_v23, %v5244_v48  ;;  %v9356_v35 = vunpack.i.h.bf16 %v7715_v36  ;;  %v3328_v55 = vmax.f32 %v3312_v5, %v3320_v10 }
 0x335   :  { %v2993_v2 = vmax.f32 %v2985_v34, %v5175_v32  ;;  %v2681_v41 = vmax.f32 %v2673_v7, %v5174_v38  ;;  %v5184_v7 = vunpack.i.l.bf16 %v7751_v27  ;;  %v5080_v23 = vunpack.i.h.bf16 %v7645_v19 }
 0x336   :  { %v5178_v42 = vpop.permute.xlu1 %5177  ;;  %v2965_v36 = vmax.f32 %v2957_v28, %v5149_v58  ;;  %v9273_v10 = vunpack.i.l.bf16 %v7721_v49 }
 0x337   :  { %v2683_v24 = vmax.f32 %v2681_v41, %v9356_v35  ;;  %v5180_v51 = vunpack.i.h.bf16 %v5178_v42  ;;  %v5179_v4 = vunpack.i.l.bf16 %v5178_v42  ;;  %v3336_v41 = vld [vmem:[#allocation2 + $0x5b8] sm:$0xff]  ;;  %v3504_v42 = vld [vmem:[#allocation2 + $0x5c8] sm:$0xff] }
 0x338   :  { %v2973_v27 = vmax.f32 %v2965_v36, %v5154_v63  ;;  %v3528_v35 = vld [vmem:[#allocation2 + $0x648] sm:$0xff]  ;;  %v4023_v36 = vld [vmem:[%s9210_s2 + $0x1e0] sm:$0xff] }
 0x339   :  { %v2685_v3 = vmax.f32 %v2683_v24, %v9357_v43  ;;  %v3175_v47 = vmax.f32 %v3173_v46, %v5180_v51  ;;  %v3001_v34 = vmax.f32 %v2993_v2, %v5179_v4  ;;  %v3141_v32 = vmax.f32 %v7786_v44, %v5180_v51  ;;  %v3512_v2 = vld [vmem:[#allocation2 + $0x608] sm:$0xff] }
 0x33a   :  { %v7806_v46 = vmax.f32 %v3328_v55, %v3336_v41  ;;  %v2975_v24 = vmax.f32 %v2973_v27, %v9273_v10  ;;  %v3520_v51 = vmax.f32 %v3504_v42, %v3512_v2  ;;  %v3544_v4 = vld [vmem:[#allocation2 + $0x688] sm:$0xff]  ;;  %v3530_v41 = vld [vmem:[#allocation2 + $0x658] sm:$0xff]  ;;  %v4019_v2 = vld [vmem:[%s9210_s2 + $0x1c0] sm:$0xff] }
 0x33b   :  { %v7799_v48 = vmax.f32 %v3001_v34, %v5184_v7  ;;  %v3149_v38 = vmax.f32 %v3141_v32, %v5185_v29  ;;  %v2695_v39 = vmax.f32 %v2685_v3, %v5079_v59  ;;  %v7803_v26 = vmax.f32 %v3175_v47, %v5185_v29  ;;  %v3560_v29 = vld [vmem:[#allocation2 + $0x6c8] sm:$0xff]  ;;  %v3506_v3 = vld [vmem:[#allocation2 + $0x5d8] sm:$0xff] }
 0x33c   :  { %v5376_v58 = vpack.i.bf16 %v7806_v46, %v7740_v12  ;;  %v3536_v63 = vmax.f32 %v3520_v51, %v3528_v35  ;;  %v5386_v7 = vpack.i.bf16 %v2975_v24, %v7022_v53  ;;  %v3514_v47 = vld [vmem:[#allocation2 + $0x618] sm:$0xff]  ;;  %v4012_v35 = vld [vmem:[%s9210_s2 + $0x188] sm:$0xff]  ;;  %v4011_v24 = vld [vmem:[%s9210_s2 + $0x180] sm:$0xff] }
 0x33d   :  { %v5371_v9 = vpack.i.bf16 %v2695_v39, %v7740_v12  ;;  %v3157_v5 = vmax.f32 %v3149_v38, %v5080_v23  ;;  %v3522_v32 = vmax.f32 %v3506_v3, %v3514_v47  ;;  %v4024_v23 = vld [vmem:[%s9210_s2 + $0x1e8] sm:$0xff]  ;;  %v5246_v38 = vpack.i.bf16 %v7241_v30, %v7503_v21  ;;  %v3546_v27 = vld [vmem:[#allocation2 + $0x698] sm:$0xff]  ;;  %v4007_v51 = vld [vmem:[%s9210_s2 + $0x160] sm:$0xff] }
 0x33e   :  { %v3552_v55 = vmax.f32 %v3536_v63, %v3544_v4  ;;  %4189 = vmatprep.subr.mxu1 %v4024_v23  ;;  %v4016_v30 = vld [vmem:[%s9210_s2 + $0x1a8] sm:$0xff]  ;;  %v3507_v3 = vld [vmem:[#allocation2 + $0x5e0] sm:$0xff] }
 0x33f   :  { %5372 = vrot.lane.b32.xlu0 %v5371_v9, %s5797_s13  ;;  %v5186_v28 = vpack.i.bf16 %v3157_v5, %v7022_v53  ;;  %4190 = vmatpush1.msra.mxu1 %v4023_v36  ;;  %v3538_v39 = vmax.f32 %v3522_v32, %v3530_v41  ;;  %v3562_v9 = vld [vmem:[#allocation2 + $0x6d8] sm:$0xff]  ;;  %v5421_v5 = vpack.i.bf16 %v7022_v53, %v7742_v25  ;;  %v4004_v4 = vld [vmem:[%s9210_s2 + $0x148] sm:$0xff]  ;;  %v3531_v47 = vld [vmem:[#allocation2 + $0x660] sm:$0xff] }
 0x340   :  { %v7821_v43 = vmax.f32 %v3552_v55, %v3560_v29  ;;  %v4000_v63 = vld [vmem:[%s9210_s2 + $0x128] sm:$0xff]  ;;  %v3999_v29 = vld [vmem:[%s9210_s2 + $0x120] sm:$0xff] }
 0x341   :  { %5187 = vrot.lane.b32.xlu1 %v5186_v28, %s5798_s16  ;;  %v4015_v28 = vld [vmem:[%s9210_s2 + $0x1a0] sm:$0xff]  ;;  %v3992_v32 = vld [vmem:[%s9210_s2 + $0xe8] sm:$0xff] }
 0x342   :  { %v7827_v34 = vpack.i.bf16 %v7742_v25, %v7821_v43  ;;  %v3995_v55 = vld [vmem:[%s9210_s2 + $0x100] sm:$0xff] }
 0x343   :  { %5377 = vrot.lane.b32.xlu0 %v5376_v58, %s5798_s16  ;;  %v5256_v58 = vpack.i.bf16 %v6766_v52, %v7503_v21  ;;  %v3991_v23 = vld [vmem:[%s9210_s2 + $0xe0] sm:$0xff] }
 0x344   :  { %v3547_v41 = vld [vmem:[#allocation2 + $0x6a0] sm:$0xff] }
 0x345   :  { %5202 = vrot.lane.b32.xlu1 %v7454_v17, %s5800_s24 }
 0x347   :  { %5387 = vrot.lane.b32.xlu0 %v5386_v7, %s5797_s13  ;;  %v5336_v7 = vpack.i.bf16 %v7291_v40, %v7659_v60 }
 0x349   :  { %5212 = vrot.lane.b32.xlu1 %v7454_v17, %s5801_s0  ;;  %v4020_v17 = vld [vmem:[%s9210_s2 + $0x1c8] sm:$0xff] }
 0x34a   :  { %4191 = vmatprep.subr.mxu1 %v4020_v17 }
 0x34b   :  { %5402 = vrot.lane.b32.xlu0 %v7827_v34, %s5797_s13  ;;  %4192 = vmatpush1.msra.mxu1 %v4019_v2 }
 0x34c   :  { %4193 = vmatprep.subr.mxu1 %v4016_v30 }
 0x34d   :  { %5227 = vrot.lane.b32.xlu1 %v7489_v31, %s5800_s24  ;;  %v3554_v31 = vmax.f32 %v3538_v39, %v3546_v27  ;;  %4194 = vmatpush1.msra.mxu1 %v4015_v28  ;;  %v5070_v39 = vunpack.i.h.bf16 %v7599_v56 }
 0x34e   :  { %4195 = vmatprep.subr.mxu1 %v4012_v35  ;;  %v4026_v35 = vld [vmem:[%s9210_s2 + $0x1f8] sm:$0xff] }
 0x34f   :  { %5407 = vrot.lane.b32.xlu0 %v7827_v34, %s5798_s16  ;;  %v7864_v42 = vmax.f32 %v3554_v31, %v3562_v9  ;;  %4196 = vmatpush1.msra.mxu1 %v4011_v24  ;;  %v3988_v31 = vld [vmem:[%s9210_s2 + $0xc8] sm:$0xff]  ;;  %v3987_v9 = vld [vmem:[%s9210_s2 + $0xc0] sm:$0xff]  ;;  %v3123_v2 = vmax.f32 %v7786_v44, %v5070_v39  ;;  %v4005_v39 = vld [vmem:[%s9210_s2 + $0x150] sm:$0xff] }
 0x350   :  { %v3984_v44 = vld [vmem:[%s9210_s2 + $0xa8] sm:$0xff]  ;;  %4343 = vmatprep.subr.mxu0 %v4026_v35  ;;  %v3983_v24 = vld [vmem:[%s9210_s2 + $0xa0] sm:$0xff]  ;;  %v3997_v35 = vld [vmem:[%s9210_s2 + $0x110] sm:$0xff] }
 0x351   :  { %5247 = vrot.lane.b32.xlu1 %v5246_v38, %s5800_s24 }
 0x353   :  { %5417 = vrot.lane.b32.xlu0 %v7827_v34, %s5799_s23 }
 0x355   :  { %5252 = vrot.lane.b32.xlu1 %v5246_v38, %s5799_s23  ;;  %v3563_v38 = vld [vmem:[#allocation2 + $0x6e0] sm:$0xff] }
 0x357   :  { %5422 = vrot.lane.b32.xlu0 %v5421_v5, %s5801_s0  ;;  %v5075_v5 = vunpack.i.h.bf16 %v7630_v1 }
 0x359   :  { %5257 = vrot.lane.b32.xlu1 %v5256_v58, %s5801_s0  ;;  %v3131_v58 = vmax.f32 %v3123_v2, %v5075_v5  ;;  %v4001_v5 = vld [vmem:[%s9210_s2 + $0x130] sm:$0xff]  ;;  %v4087_v2 = vld [vmem:[%s9210_s2 + $0x3e0] sm:$0xff] }
 0x35b   :  { %3701 = vrot.lane.b32.xlu0 %v7864_v42, %s5797_s13 }
 0x35d   :  { %5262 = vrot.lane.b32.xlu1 %v7542_v8, %s5797_s13  ;;  %v4008_v8 = vld [vmem:[%s9210_s2 + $0x168] sm:$0xff] }
 0x35e   :  { %4197 = vmatprep.subr.mxu1 %v4008_v8  ;;  %v5391_v8 = vpack.i.bf16 %v3131_v58, %v7799_v48  ;;  %v3979_v48 = vld [vmem:[%s9210_s2 + $0x80] sm:$0xff]  ;;  %v3998_v58 = vld [vmem:[%s9210_s2 + $0x118] sm:$0xff] }
 0x35f   :  { %4198 = vmatpush1.msra.mxu1 %v4007_v51  ;;  %v4022_v51 = vld [vmem:[%s9210_s2 + $0x1d8] sm:$0xff] }
 0x360   :  { %4199 = vmatprep.subr.mxu1 %v4004_v4  ;;  %v3980_v4 = vld [vmem:[%s9210_s2 + $0x88] sm:$0xff] }
 0x361   :  { %5282 = vrot.lane.b32.xlu1 %v7588_v13, %s5797_s13 }
 0x365   :  { %5292 = vrot.lane.b32.xlu1 %v7588_v13, %s5800_s24 }
 0x369   :  { %5302 = vrot.lane.b32.xlu1 %v7588_v13, %s5801_s0  ;;  %v4003_v13 = vld [vmem:[%s9210_s2 + $0x140] sm:$0xff] }
 0x36a   :  { %4200 = vmatpush1.msra.mxu1 %v4003_v13  ;;  %v4021_v13 = vld [vmem:[%s9210_s2 + $0x1d0] sm:$0xff] }
 0x36b   :  { %4201 = vmatprep.subr.mxu1 %v4000_v63  ;;  %v4018_v63 = vld [vmem:[%s9210_s2 + $0x1b8] sm:$0xff] }
 0x36c   :  { %4202 = vmatpush1.msra.mxu1 %v3999_v29  ;;  %v3976_v29 = vld [vmem:[%s9210_s2 + $0x68] sm:$0xff] }
 0x36d   :  { %5307 = vrot.lane.b32.xlu1 %v7617_v33, %s5797_s13 }
 0x371   :  { %5322 = vrot.lane.b32.xlu1 %v7617_v33, %s5799_s23  ;;  %v3996_v33 = vld [vmem:[%s9210_s2 + $0x108] sm:$0xff] }
 0x372   :  { %4203 = vmatprep.subr.mxu1 %v3996_v33  ;;  %v3975_v33 = vld [vmem:[%s9210_s2 + $0x60] sm:$0xff] }
 0x373   :  { %4204 = vmatpush1.msra.mxu1 %v3995_v55  ;;  %v4014_v55 = vld [vmem:[%s9210_s2 + $0x198] sm:$0xff] }
 0x374   :  { %4205 = vmatprep.subr.mxu1 %v3992_v32  ;;  %v4010_v32 = vld [vmem:[%s9210_s2 + $0x178] sm:$0xff] }
 0x375   :  { %5327 = vrot.lane.b32.xlu1 %v7667_v22, %s5797_s13  ;;  %v3515_v22 = vld [vmem:[#allocation2 + $0x620] sm:$0xff]  ;;  %4206 = vmatpush1.msra.mxu1 %v3991_v23  ;;  %v3968_v23 = vld [vmem:[%s9210_s2 + $0x28] sm:$0xff] }
 0x376   :  { %v3523_v36 = vmax.f32 %v3507_v3, %v3515_v22  ;;  %4207 = vmatprep.subr.mxu1 %v3988_v31  ;;  %v3972_v22 = vld [vmem:[%s9210_s2 + $0x48] sm:$0xff]  ;;  %v4013_v3 = vld [vmem:[%s9210_s2 + $0x190] sm:$0xff]  ;;  %v4002_v31 = vld [vmem:[%s9210_s2 + $0x138] sm:$0xff] }
 0x377   :  { %4208 = vmatpush1.msra.mxu1 %v3987_v9  ;;  %v4088_v9 = vld [vmem:[%s9210_s2 + $0x3e8] sm:$0xff] }
 0x378   :  { %v3539_v17 = vmax.f32 %v3523_v36, %v3531_v47  ;;  %4209 = vmatprep.subr.mxu1 %v3984_v44  ;;  %v3971_v47 = vld [vmem:[%s9210_s2 + $0x40] sm:$0xff]  ;;  %v4009_v36 = vld [vmem:[%s9210_s2 + $0x170] sm:$0xff]  ;;  %v3994_v44 = vld [vmem:[%s9210_s2 + $0xf8] sm:$0xff] }
 0x379   :  { %5337 = vrot.lane.b32.xlu1 %v5336_v7, %s5800_s24  ;;  %4210 = vmatpush1.msra.mxu1 %v3983_v24 }
 0x37a   :  { %v3555_v27 = vmax.f32 %v3539_v17, %v3547_v41  ;;  %4211 = vmatprep.subr.mxu1 %v3980_v4  ;;  %v3967_v41 = vld [vmem:[%s9210_s2 + $0x20] sm:$0xff]  ;;  %v4006_v17 = vld [vmem:[%s9210_s2 + $0x158] sm:$0xff] }
 0x37b   :  { %4212 = vmatpush1.msra.mxu1 %v3979_v48 }
 0x37c   :  { %v7938_v30 = vmax.f32 %v3555_v27, %v3563_v38  ;;  %4213 = vmatprep.subr.mxu1 %v3976_v29  ;;  %v3964_v38 = vld [vmem:[%s9210_s2 + $0x8] sm:$0xff]  ;;  %v3963_v27 = vld [vmem:[%s9210_s2] sm:$0xff] }
 0x37d   :  { %5342 = vrot.lane.b32.xlu1 %v5336_v7, %s5799_s23  ;;  %v4017_v7 = vld [vmem:[%s9210_s2 + $0x1b0] sm:$0xff]  ;;  %4214 = vmatpush1.msra.mxu1 %v3975_v33  ;;  %v5069_v33 = vunpack.i.l.bf16 %v7599_v56  ;;  %v5074_v56 = vunpack.i.l.bf16 %v7630_v1 }
 0x37e   :  { %9358 = vst [vmem:[#allocation32_spill] sm:$0xff] %v7938_v30  ;;  %v7942_v28 = vpack.i.bf16 %v7938_v30, %v7806_v46  ;;  %4215 = vmatprep.subr.mxu1 %v3972_v22  ;;  %v3986_v22 = vld [vmem:[%s9210_s2 + $0xb8] sm:$0xff]  ;;  %v3981_v1 = vld [vmem:[%s9210_s2 + $0x90] sm:$0xff] }
 0x37f   :  { %4216 = vmatpush1.msra.mxu1 %v3971_v47 }
 0x380   :  { %4217 = vmatprep.subr.mxu1 %v3968_v23 }
 0x381   :  { %5352 = vrot.lane.b32.xlu1 %v7691_v61, %s5797_s13  ;;  %4218 = vmatpush1.msra.mxu1 %v3967_v41 }
 0x382   :  { %4219 = vmatprep.subr.mxu1 %v3964_v38 }
 0x383   :  { %4220 = vmatpush1.msra.mxu1 %v3963_v27  ;;  %v3516_v27 = vld [vmem:[#allocation2 + $0x628] sm:$0xff] }
 0x384   :  { %4221 = vmatprep.subr.mxu1 %v4088_v9 }
 0x385   :  { %5357 = vrot.lane.b32.xlu1 %v7691_v61, %s5798_s16  ;;  %4222 = vmatpush2.msra.mxu1 %v4087_v2 }
 0x389   :  { %5362 = vrot.lane.b32.xlu1 %v7691_v61, %s5800_s24  ;;  %v4025_v61 = vld [vmem:[%s9210_s2 + $0x1f0] sm:$0xff] }
 0x38a   :  { %4344 = vmatpush1.msra.mxu0 %v4025_v61  ;;  %v3993_v61 = vld [vmem:[%s9210_s2 + $0xf0] sm:$0xff] }
 0x38b   :  { %4345 = vmatprep.subr.mxu0 %v4022_v51  ;;  %v5065_v51 = vunpack.i.h.bf16 %v7603_v50  ;;  %v5084_v50 = vunpack.i.l.bf16 %v7656_v20 }
 0x38c   :  { %4346 = vmatpush1.msra.mxu0 %v4021_v13 }
 0x38d   :  { %5382 = vrot.lane.b32.xlu1 %v7942_v28, %s5797_s13  ;;  %4347 = vmatprep.subr.mxu0 %v4018_v63  ;;  %v5219_v63 = vunpack.i.l.bf16 %v7760_v15 }
 0x38e   :  { %4348 = vmatpush1.msra.mxu0 %v4017_v7  ;;  %v3990_v7 = vld [vmem:[%s9210_s2 + $0xd8] sm:$0xff] }
 0x38f   :  { %4349 = vmatprep.subr.mxu0 %v4014_v55  ;;  %v5224_v55 = vunpack.i.l.bf16 %v7762_v45 }
 0x390   :  { %4350 = vmatpush1.msra.mxu0 %v4013_v3  ;;  %v3985_v3 = vld [vmem:[%s9210_s2 + $0xb0] sm:$0xff] }
 0x391   :  { %5392 = vrot.lane.b32.xlu1 %v5391_v8, %s5802_s15  ;;  %4351 = vmatprep.subr.mxu0 %v4010_v32  ;;  %v5060_v8 = vunpack.i.h.bf16 %v7584_v11  ;;  %v3989_v11 = vld [vmem:[%s9210_s2 + $0xd0] sm:$0xff]  ;;  %v2986_v32 = vmax.f32 %v7419_v57, %v5219_v63 }
 0x392   :  { %4352 = vmatpush1.msra.mxu0 %v4009_v36  ;;  %v3982_v36 = vld [vmem:[%s9210_s2 + $0x98] sm:$0xff] }
 0x393   :  { %4353 = vmatprep.subr.mxu0 %v4006_v17  ;;  %v2703_v13 = vmax.f32 %v7208_v62, %v5060_v8  ;;  %v2994_v41 = vmax.f32 %v2986_v32, %v5224_v55  ;;  %v8076_v17 = vpop.permute.xlu0 %5267  ;;  %v3973_v55 = vld [vmem:[%s9210_s2 + $0x50] sm:$0xff]  ;;  %v3564_v32 = vld [vmem:[#allocation2 + $0x6e8] sm:$0xff] }
 0x394   :  { %4354 = vmatpush1.msra.mxu0 %v4005_v39  ;;  %v2739_v39 = vmax.f32 %v7208_v62, %v5084_v50  ;;  %v5089_v62 = vunpack.i.l.bf16 %v7614_v54  ;;  %v3548_v50 = vld [vmem:[#allocation2 + $0x6a8] sm:$0xff] }
 0x395   :  { %4355 = vmatprep.subr.mxu0 %v4002_v31  ;;  %v2711_v48 = vmax.f32 %v2703_v13, %v5065_v51  ;;  %v3978_v31 = vld [vmem:[%s9210_s2 + $0x78] sm:$0xff]  ;;  %v4084_v51 = vld [vmem:[%s9210_s2 + $0x3c8] sm:$0xff]  ;;  %v4083_v13 = vld [vmem:[%s9210_s2 + $0x3c0] sm:$0xff] }
 0x396   :  { %4356 = vmatpush1.msra.mxu0 %v4001_v5  ;;  %v5234_v5 = vunpack.i.l.bf16 %v7764_v14  ;;  %4223 = vmatprep.subr.mxu1 %v4084_v51  ;;  %v5199_v51 = vunpack.i.l.bf16 %v7755_v37 }
 0x397   :  { %4357 = vmatprep.subr.mxu0 %v3998_v58  ;;  %v2719_v47 = vmax.f32 %v2711_v48, %v5069_v33  ;;  %v3974_v48 = vld [vmem:[%s9210_s2 + $0x58] sm:$0xff]  ;;  %4224 = vmatpush2.msra.mxu1 %v4083_v13  ;;  %v8112_v19 = vpop.permute.xlu0 %5272 }
 0x398   :  { %4358 = vmatpush1.msra.mxu0 %v3997_v35  ;;  %v3508_v35 = vld [vmem:[#allocation2 + $0x5e8] sm:$0xff] }
 0x399   :  { %4359 = vmatprep.subr.mxu0 %v3994_v44  ;;  %v2727_v9 = vmax.f32 %v2719_v47, %v5074_v56  ;;  %v3532_v44 = vld [vmem:[#allocation2 + $0x668] sm:$0xff]  ;;  %v3524_v33 = vmax.f32 %v3508_v35, %v3516_v27  ;;  %v3965_v27 = vld [vmem:[%s9210_s2 + $0x10] sm:$0xff] }
 0x39a   :  { %4360 = vmatpush1.msra.mxu0 %v3993_v61  ;;  %v3977_v61 = vld [vmem:[%s9210_s2 + $0x70] sm:$0xff] }
 0x39b   :  { %4361 = vmatprep.subr.mxu0 %v3990_v7  ;;  %v2729_v63 = vmax.f32 %v2727_v9, %v5079_v59  ;;  %v3540_v47 = vmax.f32 %v3524_v33, %v3532_v44  ;;  %v5225_v9 = vunpack.i.h.bf16 %v7762_v45  ;;  %v4090_v44 = vld [vmem:[%s9210_s2 + $0x3f8] sm:$0xff]  ;;  %v4089_v45 = vld [vmem:[%s9210_s2 + $0x3f0] sm:$0xff]  ;;  %v8156_v33 = vpop.permute.xlu0 %5277 }
 0x39c   :  { %4362 = vmatpush1.msra.mxu0 %v3989_v11  ;;  %v2747_v11 = vmax.f32 %v2739_v39, %v5089_v62  ;;  %v3966_v39 = vld [vmem:[%s9210_s2 + $0x18] sm:$0xff] }
 0x39d   :  { %4363 = vmatprep.subr.mxu0 %v3986_v22  ;;  %v3970_v22 = vld [vmem:[%s9210_s2 + $0x38] sm:$0xff] }
 0x39e   :  { %4364 = vmatpush1.msra.mxu0 %v3985_v3  ;;  %v5220_v3 = vunpack.i.h.bf16 %v7760_v15  ;;  %v4079_v15 = vld [vmem:[%s9210_s2 + $0x3a0] sm:$0xff] }
 0x39f   :  { %4365 = vmatprep.subr.mxu0 %v3982_v36  ;;  %v4080_v36 = vld [vmem:[%s9210_s2 + $0x3a8] sm:$0xff] }
 0x3a0   :  { %4366 = vmatpush1.msra.mxu0 %v3981_v1  ;;  %4225 = vmatprep.subr.mxu1 %v4080_v36  ;;  %v4076_v36 = vld [vmem:[%s9210_s2 + $0x388] sm:$0xff] }
 0x3a1   :  { %4367 = vmatprep.subr.mxu0 %v3978_v31  ;;  %v5085_v31 = vunpack.i.h.bf16 %v7656_v20  ;;  %4226 = vmatpush2.msra.mxu1 %v4079_v15 }
 0x3a2   :  { %4368 = vmatpush1.msra.mxu0 %v3977_v61  ;;  %v3108_v61 = vmax.f32 %v7277_v0, %v5220_v3  ;;  %v4086_v0 = vld [vmem:[%s9210_s2 + $0x3d8] sm:$0xff]  ;;  %4227 = vmatprep.subr.mxu1 %v4076_v36 }
 0x3a3   :  { %4369 = vmatprep.subr.mxu0 %v3974_v48  ;;  %v9360_v48 = vld [vmem:[#allocation27_spill] sm:$0xff]  ;;  %v4082_v3 = vld [vmem:[%s9210_s2 + $0x3b8] sm:$0xff] }
 0x3a4   :  { %4370 = vmatpush1.msra.mxu0 %v3973_v55  ;;  %v4085_v55 = vld [vmem:[%s9210_s2 + $0x3d0] sm:$0xff] }
 0x3a5   :  { %4371 = vmatprep.subr.mxu0 %v3970_v22  ;;  %v5275_v22 = vunpack.i.h.bf16 %v8112_v19 }
 0x3b3   :  { %v8044_v24 = vpop.permute.xlu1 %5187 }
 0x3b4   :  { %9359 = vst [vmem:[#allocation33_spill] sm:$0xff] %v8044_v24 }
 0x3b7   :  { %v8048_v4 = vpop.permute.xlu1 %5202 }
 0x3bb   :  { %v8052_v29 = vpop.permute.xlu1 %5212 }
 0x3bf   :  { %v8071_v23 = vpop.permute.xlu1 %5227 }
 0x3c0   :  { %v5229_v38 = vunpack.i.l.bf16 %v8071_v23  ;;  %v9272_v62 = vunpack.i.h.bf16 %v8071_v23 }
 0x3c2   :  { %v3002_v2 = vmax.f32 %v2994_v41, %v5229_v38  ;;  %v3969_v41 = vld [vmem:[%s9210_s2 + $0x30] sm:$0xff] }
 0x3c3   :  { %v8087_v58 = vpop.permute.xlu1 %5247  ;;  %4372 = vmatpush1.msra.mxu0 %v3969_v41  ;;  %v4075_v41 = vld [vmem:[%s9210_s2 + $0x380] sm:$0xff] }
 0x3c4   :  { %v5250_v8 = vunpack.i.h.bf16 %v8087_v58  ;;  %v3010_v7 = vmax.f32 %v3002_v2, %v5234_v5  ;;  %v3556_v5 = vmax.f32 %v3540_v47, %v3548_v50  ;;  %v5194_v2 = vunpack.i.l.bf16 %v7753_v18  ;;  %4373 = vmatprep.subr.mxu0 %v3966_v39  ;;  %v4081_v39 = vld [vmem:[%s9210_s2 + $0x3b0] sm:$0xff]  ;;  %4228 = vmatpush2.msra.mxu1 %v4075_v41 }
 0x3c5   :  { %4374 = vmatpush1.msra.mxu0 %v3965_v27 }
 0x3c6   :  { %v5396_v56 = vpack.i.bf16 %v3010_v7, %v2729_v63  ;;  %v2755_v38 = vmax.f32 %v2747_v11, %v5250_v8  ;;  %v8143_v20 = vmax.f32 %v3556_v5, %v3564_v32  ;;  %4375 = vmatprep.subr.mxu0 %v4090_v44  ;;  %v2861_v63 = vmax.f32 %v9360_v48, %v5085_v31  ;;  %v9361_v11 = vld [vmem:[#allocation8_spill] sm:$0xff]  ;;  %v4077_v44 = vld [vmem:[%s9210_s2 + $0x390] sm:$0xff] }
 0x3c7   :  { %v8114_v59 = vpop.permute.xlu1 %5252  ;;  %v8154_v7 = vmax.f32 %v3108_v61, %v5225_v9  ;;  %4376 = vmatpush2.msra.mxu0 %v4089_v45  ;;  %v3353_v50 = vmax.f32 %v9361_v11, %v5194_v2  ;;  %v9271_v31 = vunpack.i.h.bf16 %v7764_v14  ;;  %v4078_v9 = vld [vmem:[%s9210_s2 + $0x398] sm:$0xff]  ;;  %v5269_v5 = vunpack.i.l.bf16 %v8076_v17  ;;  %v4072_v61 = vld [vmem:[%s9210_s2 + $0x368] sm:$0xff]  ;;  %v9362_v45 = vld [vmem:[#allocation5_spill] sm:$0xff] }
 0x3c8   :  { %v5255_v1 = vunpack.i.h.bf16 %v8114_v59  ;;  %5397 = vrot.lane.b32.xlu1 %v5396_v56, %s5802_s15  ;;  %v5090_v56 = vunpack.i.h.bf16 %v7614_v54  ;;  %v5441_v32 = vpack.i.bf16 %v8143_v20, %v7938_v30  ;;  %4377 = vmatprep.subr.mxu0 %v4086_v0  ;;  %v5280_v54 = vunpack.i.h.bf16 %v8156_v33 }
 0x3c9   :  { %4378 = vmatpush2.msra.mxu0 %v4085_v55  ;;  %4229 = vmatprep.subr.mxu1 %v4072_v61 }
 0x3ca   :  { %v2763_v35 = vmax.f32 %v2755_v38, %v5255_v1  ;;  %v8181_v38 = vmax.f32 %v3353_v50, %v5199_v51  ;;  %v2869_v27 = vmax.f32 %v2861_v63, %v5090_v56  ;;  %4379 = vmatprep.subr.mxu0 %v4082_v3  ;;  %v5045_v51 = vunpack.i.h.bf16 %v9362_v45  ;;  %v4068_v3 = vld [vmem:[%s9210_s2 + $0x348] sm:$0xff] }
 0x3cb   :  { %v8141_v8 = vpop.permute.xlu1 %5257  ;;  %4380 = vmatpush2.msra.mxu0 %v4081_v39  ;;  %v5044_v63 = vunpack.i.l.bf16 %v9362_v45  ;;  %v9363_v56 = vld [vmem:[#allocation4_spill] sm:$0xff] }
 0x3cc   :  { %v5426_v13 = vpack.i.bf16 %v7740_v12, %v2763_v35  ;;  %5412 = vrot.lane.b32.xlu1 %v7827_v34, %s5800_s24  ;;  %v3142_v34 = vmax.f32 %v8154_v7, %v9272_v62  ;;  %v3369_v2 = vmax.f32 %v8181_v38, %v5275_v22  ;;  %4381 = vmatprep.subr.mxu0 %v4078_v9  ;;  %v4074_v22 = vld [vmem:[%s9210_s2 + $0x378] sm:$0xff]  ;;  %v5274_v62 = vunpack.i.l.bf16 %v8112_v19 }
 0x3cd   :  { %v2877_v41 = vmax.f32 %v2869_v27, %v5045_v51  ;;  %4382 = vmatpush2.msra.mxu0 %v4077_v44  ;;  %v2895_v39 = vmax.f32 %v2869_v27, %v5044_v63  ;;  %v3510_v19 = vld [vmem:[#allocation2 + $0x5f8] sm:$0xff]  ;;  %v9371_v30 = vunpack.i.l.bf16 %v8141_v8 }
 0x3ce   :  { %5427 = vrot.lane.b32.xlu0 %v5426_v13, %s5800_s24  ;;  %v8204_v13 = vpop.permute.xlu0 %5287  ;;  %v3150_v0 = vmax.f32 %v3142_v34, %v9271_v31  ;;  %v3377_v55 = vmax.f32 %v3369_v2, %v5280_v54  ;;  %v5034_v34 = vunpack.i.l.bf16 %v9363_v56  ;;  %v4073_v54 = vld [vmem:[%s9210_s2 + $0x370] sm:$0xff]  ;;  %v5035_v2 = vunpack.i.h.bf16 %v9363_v56  ;;  %4383 = vmatprep.subr.mxu0 %v4074_v22  ;;  %v9367_v56 = vld [vmem:[#allocation15_spill] sm:$0xff] }
 0x3cf   :  { %v5263_v47 = vpop.permute.xlu1 %5262  ;;  %4384 = vmatpush2.msra.mxu0 %v4073_v54  ;;  %v9366_v22 = vld [vmem:[#allocation25_spill] sm:$0xff]  ;;  %v4063_v54 = vld [vmem:[%s9210_s2 + $0x320] sm:$0xff]  ;;  %v5095_v31 = vunpack.i.h.bf16 %v9367_v56 }
 0x3d0   :  { %v5265_v1 = vunpack.i.h.bf16 %v5263_v47  ;;  %v5264_v15 = vunpack.i.l.bf16 %v5263_v47  ;;  %3709 = vrot.lane.b32.xlu1 %v7864_v42, %s5798_s16  ;;  %v9364_v47 = vld [vmem:[#allocation18_spill] sm:$0xff] }
 0x3d1   :  { %v5115_v36 = vunpack.i.h.bf16 %v9364_v47 }
 0x3d2   :  { %v2919_v35 = vmax.f32 %v6766_v52, %v5264_v15  ;;  %5442 = vrot.lane.b32.xlu0 %v5441_v32, %s5798_s16  ;;  %v4071_v52 = vld [vmem:[%s9210_s2 + $0x360] sm:$0xff]  ;;  %v3231_v11 = vmax.f32 %v7503_v21, %v5265_v1  ;;  %v5270_v15 = vunpack.i.h.bf16 %v8076_v17  ;;  %v4069_v17 = vld [vmem:[%s9210_s2 + $0x350] sm:$0xff] }
 0x3d3   :  { %v8208_v48 = vpop.permute.xlu1 %5282  ;;  %4230 = vmatpush2.msra.mxu1 %v4071_v52  ;;  %v4067_v1 = vld [vmem:[%s9210_s2 + $0x340] sm:$0xff]  ;;  %v3158_v51 = vmax.f32 %v3150_v0, %v5115_v36  ;;  %v4066_v0 = vld [vmem:[%s9210_s2 + $0x338] sm:$0xff]  ;;  %v5094_v36 = vunpack.i.l.bf16 %v9367_v56  ;;  %v9370_v56 = vunpack.i.l.bf16 %v7721_v49 }
 0x3d4   :  { %v2927_v50 = vmax.f32 %v2919_v35, %v5269_v5  ;;  %3717 = vrot.lane.b32.xlu1 %v7864_v42, %s5800_s24  ;;  %v4070_v5 = vld [vmem:[%s9210_s2 + $0x358] sm:$0xff]  ;;  %4231 = vmatprep.subr.mxu1 %v4068_v3  ;;  %v3239_v52 = vmax.f32 %v3231_v11, %v5270_v15  ;;  %v2616_v3 = vmax.f32 %v9366_v22, %v5034_v34  ;;  %v9368_v15 = vld [vmem:[#allocation9_spill] sm:$0xff]  ;;  %v4059_v49 = vld [vmem:[%s9210_s2 + $0x300] sm:$0xff] }
 0x3d5   :  { %v9365_v35 = vld [vmem:[#allocation10_spill] sm:$0xff]  ;;  %4232 = vmatpush2.msra.mxu1 %v4067_v1  ;;  %4385 = vmatprep.subr.mxu0 %v4070_v5  ;;  %v4065_v1 = vld [vmem:[%s9210_s2 + $0x330] sm:$0xff]  ;;  %v5039_v34 = vunpack.i.l.bf16 %v9368_v15  ;;  %v5466_v10 = vpack.i.bf16 %v3158_v51, %v7747_v6 }
 0x3d6   :  { %v2929_v9 = vmax.f32 %v2927_v50, %v5044_v63  ;;  %5447 = vrot.lane.b32.xlu0 %v5441_v32, %s5800_s24  ;;  %v5050_v44 = vunpack.i.h.bf16 %v9365_v35  ;;  %v5049_v61 = vunpack.i.l.bf16 %v9365_v35  ;;  %v5260_v32 = vunpack.i.h.bf16 %v8141_v8  ;;  %v4064_v50 = vld [vmem:[%s9210_s2 + $0x328] sm:$0xff]  ;;  %v8255_v35 = vpop.permute.xlu0 %5297  ;;  %4386 = vmatpush2.msra.mxu0 %v4069_v17  ;;  %v4061_v51 = vld [vmem:[%s9210_s2 + $0x310] sm:$0xff] }
 0x3d7   :  { %v8239_v45 = vpop.permute.xlu1 %5292  ;;  %v5456_v63 = vpack.i.bf16 %v3377_v55, %v7747_v6  ;;  %4233 = vmatprep.subr.mxu1 %v4064_v50  ;;  %4387 = vmatprep.subr.mxu0 %v4066_v0  ;;  %v5040_v17 = vunpack.i.h.bf16 %v9368_v15  ;;  %v9372_v50 = vld [vmem:[#allocation26_spill] sm:$0xff] }
 0x3d8   :  { %3725 = vrot.lane.b32.xlu1 %v7864_v42, %s5799_s23  ;;  %v2885_v55 = vmax.f32 %v2877_v41, %v5050_v44  ;;  %v2931_v11 = vmax.f32 %v2929_v9, %v5049_v61  ;;  %v2903_v27 = vmax.f32 %v2895_v39, %v5049_v61  ;;  %v4060_v42 = vld [vmem:[%s9210_s2 + $0x308] sm:$0xff]  ;;  %v3518_v39 = vld [vmem:[#allocation2 + $0x638] sm:$0xff]  ;;  %4234 = vmatpush2.msra.mxu1 %v4063_v54  ;;  %v4055_v54 = vld [vmem:[%s9210_s2 + $0x2e0] sm:$0xff] }
 0x3d9   :  { %v9369_v41 = vld [vmem:[#allocation16_spill] sm:$0xff]  ;;  %v4062_v61 = vld [vmem:[%s9210_s2 + $0x318] sm:$0xff]  ;;  %4388 = vmatpush2.msra.mxu0 %v4065_v1  ;;  %v2674_v0 = vmax.f32 %v9372_v50, %v5035_v2  ;;  %4235 = vmatprep.subr.mxu1 %v4060_v42  ;;  %v5195_v2 = vunpack.i.h.bf16 %v7753_v18 }
 0x3da   :  { %5457 = vrot.lane.b32.xlu0 %v5456_v63, %s5797_s13  ;;  %v5099_v9 = vunpack.i.l.bf16 %v9369_v41  ;;  %v5431_v44 = vpack.i.bf16 %v7806_v46, %v2885_v55  ;;  %v2941_v24 = vmax.f32 %v2931_v11, %v9370_v56  ;;  %v2911_v63 = vmax.f32 %v2903_v27, %v5260_v32  ;;  %v9373_v11 = vld [vmem:[#allocation3_spill] sm:$0xff]  ;;  %v9374_v27 = vld [vmem:[#allocation17_spill] sm:$0xff]  ;;  %4389 = vmatprep.subr.mxu0 %v4062_v61  ;;  %v9375_v1 = vld [vmem:[#allocation6_spill] sm:$0xff]  ;;  %v8313_v25 = vpop.permute.xlu0 %5312 }
 0x3db   :  { %v8273_v5 = vpop.permute.xlu1 %5302  ;;  %v3187_v46 = vmax.f32 %v7803_v26, %v9371_v30  ;;  %v3247_v55 = vmax.f32 %v3239_v52, %v5274_v62  ;;  %v2704_v15 = vmax.f32 %v9373_v11, %v5094_v36  ;;  %v5100_v32 = vunpack.i.h.bf16 %v9369_v41  ;;  %v4056_v26 = vld [vmem:[%s9210_s2 + $0x2e8] sm:$0xff]  ;;  %v4058_v30 = vld [vmem:[%s9210_s2 + $0x2f8] sm:$0xff]  ;;  %4236 = vmatpush2.msra.mxu1 %v4059_v49  ;;  %4390 = vmatpush2.msra.mxu0 %v4061_v51 }
 0x3dc   :  { %v5104_v56 = vunpack.i.l.bf16 %v9374_v27  ;;  %5432 = vrot.lane.b32.xlu1 %v5431_v44, %s5800_s24  ;;  %v8303_v62 = vmax.f32 %v2616_v3, %v5039_v34  ;;  %v5279_v52 = vunpack.i.l.bf16 %v8156_v33  ;;  %v3526_v36 = vmax.f32 %v3510_v19, %v3518_v39  ;;  %v9376_v44 = vld [vmem:[#allocation30_spill] sm:$0xff]  ;;  %4237 = vmatprep.subr.mxu1 %v4056_v26 }
 0x3dd   :  { %v3166_v42 = vmax.f32 %v9375_v1, %v5095_v31  ;;  %v2712_v41 = vmax.f32 %v2704_v15, %v5099_v9  ;;  %v5240_v50 = vunpack.i.h.bf16 %v9376_v44  ;;  %v5436_v18 = vpack.i.bf16 %v2941_v24, %v7740_v12  ;;  %v3534_v33 = vld [vmem:[#allocation2 + $0x678] sm:$0xff]  ;;  %4391 = vmatprep.subr.mxu0 %v4058_v30  ;;  %v4052_v31 = vld [vmem:[%s9210_s2 + $0x2c8] sm:$0xff]  ;;  %4238 = vmatpush2.msra.mxu1 %v4055_v54 }
 0x3de   :  { %5467 = vrot.lane.b32.xlu0 %v5466_v10, %s5798_s16  ;;  %v4057_v10 = vld [vmem:[%s9210_s2 + $0x2f0] sm:$0xff]  ;;  %v2682_v34 = vmax.f32 %v2674_v0, %v5040_v17  ;;  %v5471_v19 = vpack.i.bf16 %v2911_v63, %v3187_v46  ;;  %v3255_v39 = vmax.f32 %v3247_v55, %v5279_v52  ;;  %v4054_v24 = vld [vmem:[%s9210_s2 + $0x2d8] sm:$0xff]  ;;  %v5200_v49 = vunpack.i.h.bf16 %v7755_v37  ;;  %v4051_v17 = vld [vmem:[%s9210_s2 + $0x2c0] sm:$0xff]  ;;  %4239 = vmatprep.subr.mxu1 %v4052_v31 }
 0x3df   :  { %v8315_v3 = vpop.permute.xlu1 %5307  ;;  %v8327_v9 = vmax.f32 %v3166_v42, %v5100_v32  ;;  %v2720_v61 = vmax.f32 %v2712_v41, %v5104_v56  ;;  %v5245_v51 = vunpack.i.h.bf16 %v7772_v16  ;;  %v4053_v63 = vld [vmem:[%s9210_s2 + $0x2d0] sm:$0xff]  ;;  %v9377_v46 = vld [vmem:[#allocation19_spill] sm:$0xff]  ;;  %v2950_v0 = vmax.f32 %v7419_v57, %v5195_v2  ;;  %4392 = vmatpush2.msra.mxu0 %v4057_v10  ;;  %v4048_v16 = vld [vmem:[%s9210_s2 + $0x2a8] sm:$0xff]  ;;  %4240 = vmatpush2.msra.mxu1 %v4051_v17 }
 0x3e0   :  { %5437 = vrot.lane.b32.xlu1 %v5436_v18, %s5799_s23  ;;  %v8341_v37 = vmax.f32 %v3526_v36, %v3534_v33  ;;  %v3195_v15 = vmax.f32 %v7503_v21, %v5240_v50  ;;  %v5205_v32 = vunpack.i.h.bf16 %v8048_v4  ;;  %v5204_v56 = vunpack.i.l.bf16 %v8048_v4  ;;  %v3550_v57 = vld [vmem:[#allocation2 + $0x6b8] sm:$0xff]  ;;  %4393 = vmatprep.subr.mxu0 %v4054_v24  ;;  %v4049_v42 = vld [vmem:[%s9210_s2 + $0x2b0] sm:$0xff]  ;;  %v8366_v18 = vpop.permute.xlu0 %5317  ;;  %v4044_v10 = vld [vmem:[%s9210_s2 + $0x288] sm:$0xff] }
 0x3e1   :  { %v5249_v26 = vunpack.i.l.bf16 %v8087_v58  ;;  %v4050_v2 = vld [vmem:[%s9210_s2 + $0x2b8] sm:$0xff]  ;;  %v5109_v36 = vunpack.i.l.bf16 %v9377_v46  ;;  %v5481_v1 = vpack.i.bf16 %v3255_v39, %v8143_v20  ;;  %4394 = vmatpush2.msra.mxu0 %v4053_v63  ;;  %v4047_v58 = vld [vmem:[%s9210_s2 + $0x2a0] sm:$0xff]  ;;  %v2958_v44 = vmax.f32 %v2950_v0, %v5200_v49  ;;  %4241 = vmatprep.subr.mxu1 %v4048_v16  ;;  %v9379_v31 = vld [vmem:[#allocation21_spill] sm:$0xff] }
 0x3e2   :  { %5472 = vrot.lane.b32.xlu0 %v5471_v19, %s5803_s17  ;;  %v9378_v21 = vld [vmem:[#allocation22_spill] sm:$0xff]  ;;  %v3203_v50 = vmax.f32 %v3195_v15, %v5245_v51  ;;  %v5254_v33 = vunpack.i.l.bf16 %v8114_v59  ;;  %v5125_v24 = vunpack.i.h.bf16 %v9379_v31  ;;  %v5461_v59 = vpack.i.bf16 %v7747_v6, %v7740_v12  ;;  %4395 = vmatprep.subr.mxu0 %v4050_v2  ;;  %v4043_v49 = vld [vmem:[%s9210_s2 + $0x280] sm:$0xff] }
 0x3e3   :  { %v8350_v30 = vpop.permute.xlu1 %5322  ;;  %v5120_v54 = vunpack.i.h.bf16 %v9378_v21  ;;  %v5119_v41 = vunpack.i.l.bf16 %v9378_v21  ;;  %v4046_v19 = vld [vmem:[%s9210_s2 + $0x298] sm:$0xff]  ;;  %v8377_v39 = vmax.f32 %v2720_v61, %v5109_v36  ;;  %v9279_v51 = vunpack.i.l.bf16 %v9364_v47  ;;  %4242 = vmatpush2.msra.mxu1 %v4047_v58  ;;  %4396 = vmatpush2.msra.mxu0 %v4049_v42  ;;  %v9380_v36 = vld [vmem:[#allocation29_spill] sm:$0xff]  ;;  %v4039_v42 = vld [vmem:[%s9210_s2 + $0x260] sm:$0xff] }
 0x3e4   :  { %5452 = vrot.lane.b32.xlu1 %v7942_v28, %s5799_s23  ;;  %v3558_v28 = vmax.f32 %v8341_v37, %v3550_v57  ;;  %v2684_v61 = vmax.f32 %v2682_v34, %v5205_v32  ;;  %v2966_v17 = vmax.f32 %v2958_v44, %v5204_v56  ;;  %v3211_v63 = vmax.f32 %v3203_v50, %v5249_v26  ;;  %v3566_v16 = vld [vmem:[#allocation2 + $0x6f8] sm:$0xff]  ;;  %v4045_v37 = vld [vmem:[%s9210_s2 + $0x290] sm:$0xff]  ;;  %v4040_v56 = vld [vmem:[%s9210_s2 + $0x268] sm:$0xff] }
 0x3e5   :  { %v5124_v15 = vunpack.i.l.bf16 %v9379_v31  ;;  %v2862_v57 = vmax.f32 %v7291_v40, %v5120_v54  ;;  %v5486_v34 = vpack.i.bf16 %v9366_v22, %v7747_v6  ;;  %4243 = vmatprep.subr.mxu1 %v4044_v10  ;;  %4397 = vmatprep.subr.mxu0 %v4046_v19  ;;  %v4042_v26 = vld [vmem:[%s9210_s2 + $0x278] sm:$0xff]  ;;  %v5210_v21 = vunpack.i.h.bf16 %v9380_v36  ;;  %v8408_v40 = vpop.permute.xlu0 %5332  ;;  %v4041_v44 = vld [vmem:[%s9210_s2 + $0x270] sm:$0xff]  ;;  %v9381_v10 = vld [vmem:[#allocation24_spill] sm:$0xff] }
 0x3e6   :  { %5482 = vrot.lane.b32.xlu0 %v5481_v1, %s5797_s13  ;;  %v5209_v1 = vunpack.i.l.bf16 %v9380_v36  ;;  %v3219_v54 = vmax.f32 %v3211_v63, %v5254_v33  ;;  %v5284_v58 = vunpack.i.l.bf16 %v8208_v48  ;;  %4244 = vmatpush2.msra.mxu1 %v4043_v49  ;;  %v2740_v50 = vmax.f32 %v9373_v11, %v5119_v41 }
 0x3e7   :  { %v8390_v0 = vpop.permute.xlu1 %5327  ;;  %v9278_v19 = vunpack.i.h.bf16 %v9381_v10  ;;  %v8420_v31 = vmax.f32 %v2862_v57, %v5125_v24  ;;  %v8423_v33 = vmax.f32 %v3558_v28, %v3566_v16  ;;  %4398 = vmatpush2.msra.mxu0 %v4045_v37  ;;  %v2686_v49 = vmax.f32 %v2684_v61, %v5210_v21  ;;  %4245 = vmatprep.subr.mxu1 %v4040_v56  ;;  %v4038_v28 = vld [vmem:[%s9210_s2 + $0x258] sm:$0xff]  ;;  %v9383_v57 = vld [vmem:[#allocation7_spill] sm:$0xff] }
 0x3e8   :  { %v5330_v2 = vunpack.i.h.bf16 %v8390_v0  ;;  %5462 = vrot.lane.b32.xlu1 %v5461_v59, %s5801_s0  ;;  %v4036_v59 = vld [vmem:[%s9210_s2 + $0x248] sm:$0xff]  ;;  %v9281_v63 = vunpack.i.l.bf16 %v8052_v29  ;;  %v2974_v55 = vmax.f32 %v2966_v17, %v5209_v1  ;;  %v9382_v11 = vunpack.i.l.bf16 %v8141_v8  ;;  %4399 = vmatprep.subr.mxu0 %v4042_v26  ;;  %v4035_v8 = vld [vmem:[%s9210_s2 + $0x240] sm:$0xff]  ;;  %v4037_v17 = vld [vmem:[%s9210_s2 + $0x250] sm:$0xff] }
 0x3e9   :  { %v2748_v16 = vmax.f32 %v2740_v50, %v5124_v15  ;;  %v9280_v37 = vunpack.i.h.bf16 %v8239_v45  ;;  %v5491_v61 = vpack.i.bf16 %v7747_v6, %v8143_v20  ;;  %4246 = vmatpush2.msra.mxu1 %v4039_v42  ;;  %4400 = vmatpush2.msra.mxu0 %v4041_v44  ;;  %v9384_v56 = vld [vmem:[#allocation23_spill] sm:$0xff]  ;;  %v5129_v1 = vunpack.i.l.bf16 %v9381_v10  ;;  %v4032_v42 = vld [vmem:[%s9210_s2 + $0x228] sm:$0xff]  ;;  %v4034_v44 = vld [vmem:[%s9210_s2 + $0x238] sm:$0xff] }
 0x3ea   :  { %5487 = vrot.lane.b32.xlu0 %v5486_v34, %s5800_s24  ;;  %v3221_v41 = vmax.f32 %v3219_v54, %v9382_v11  ;;  %v2920_v34 = vmax.f32 %v9383_v57, %v5330_v2  ;;  %v5135_v26 = vunpack.i.h.bf16 %v9384_v56  ;;  %v9385_v2 = vld [vmem:[#allocation11_spill] sm:$0xff]  ;;  %4247 = vmatprep.subr.mxu1 %v4036_v59  ;;  %v2896_v50 = vmax.f32 %v8420_v31, %v9278_v19  ;;  %v8475_v19 = vpop.permute.xlu0 %5347 }
 0x3eb   :  { %v8433_v24 = vpop.permute.xlu1 %5337  ;;  %v3196_v54 = vmax.f32 %v9385_v2, %v5284_v58  ;;  %v5335_v11 = vunpack.i.h.bf16 %v8408_v40  ;;  %v2650_v58 = vmax.f32 %v8303_v62, %v5205_v32  ;;  %v9386_v59 = vunpack.i.h.bf16 %v8071_v23  ;;  %4401 = vmatprep.subr.mxu0 %v4038_v28  ;;  %v4031_v15 = vld [vmem:[%s9210_s2 + $0x220] sm:$0xff]  ;;  %4248 = vmatpush2.msra.mxu1 %v4035_v8  ;;  %v4033_v28 = vld [vmem:[%s9210_s2 + $0x230] sm:$0xff] }
 0x3ec   :  { %3703 = vrot.lane.b32.xlu1 %v8423_v33, %s5797_s13  ;;  %v5289_v52 = vunpack.i.l.bf16 %v8204_v13  ;;  %v2696_v4 = vmax.f32 %v2686_v49, %v9279_v51  ;;  %v2976_v32 = vmax.f32 %v2974_v55, %v9281_v63  ;;  %4402 = vmatpush2.msra.mxu0 %v4037_v17  ;;  %v5304_v49 = vunpack.i.l.bf16 %v8273_v5  ;;  %v4028_v55 = vld [vmem:[%s9210_s2 + $0x208] sm:$0xff] }
 0x3ed   :  { %v3176_v57 = vmax.f32 %v8327_v9, %v9386_v59  ;;  %v5476_v9 = vpack.i.bf16 %v7022_v53, %v3221_v41  ;;  %v3387_v59 = vmax.f32 %v8181_v38, %v9280_v37  ;;  %v2928_v51 = vmax.f32 %v2920_v34, %v5335_v11  ;;  %4249 = vmatprep.subr.mxu1 %v4032_v42  ;;  %v4030_v41 = vld [vmem:[%s9210_s2 + $0x218] sm:$0xff]  ;;  %v4027_v34 = vld [vmem:[%s9210_s2 + $0x200] sm:$0xff] }
 0x3ee   :  { %5492 = vrot.lane.b32.xlu0 %v5491_v61, %s5799_s23  ;;  %v8487_v61 = vmax.f32 %v2748_v16, %v5129_v1  ;;  %4403 = vmatprep.subr.mxu0 %v4034_v44  ;;  %v5300_v16 = vunpack.i.h.bf16 %v8255_v35  ;;  %v5294_v8 = vunpack.i.l.bf16 %v8239_v45  ;;  %v3204_v17 = vmax.f32 %v3196_v54, %v5289_v52  ;;  %v4029_v1 = vld [vmem:[%s9210_s2 + $0x210] sm:$0xff] }
 0x3ef   :  { %v8481_v23 = vpop.permute.xlu1 %5342  ;;  %v5310_v38 = vunpack.i.h.bf16 %v8315_v3  ;;  %4250 = vmatpush2.msra.mxu1 %v4031_v15  ;;  %v5350_v42 = vunpack.i.h.bf16 %v8475_v19  ;;  %v9387_v44 = vunpack.i.h.bf16 %v7764_v14  ;;  %v5309_v52 = vunpack.i.l.bf16 %v8315_v3  ;;  %4404 = vmatpush2.msra.mxu0 %v4033_v28 }
 0x3f0   :  { %5477 = vrot.lane.b32.xlu1 %v5476_v9, %s5799_s23  ;;  %v5329_v54 = vunpack.i.l.bf16 %v8390_v0  ;;  %v2904_v15 = vmax.f32 %v2896_v50, %v5135_v26  ;;  %v5215_v9 = vunpack.i.h.bf16 %v8052_v29  ;;  %v2658_v37 = vmax.f32 %v2650_v58, %v5210_v21  ;;  %4251 = vmatprep.subr.mxu1 %v4028_v55 }
 0x3f1   :  { %v3178_v11 = vmax.f32 %v3176_v57, %v9387_v44  ;;  %v5501_v63 = vpack.i.bf16 %v2696_v4, %v2976_v32  ;;  %4405 = vmatprep.subr.mxu0 %v4030_v41  ;;  %v5305_v14 = vunpack.i.h.bf16 %v8273_v5  ;;  %v3395_v3 = vmax.f32 %v3387_v59, %v5300_v16  ;;  %4252 = vmatpush2.msra.mxu1 %v4027_v34  ;;  %v9390_v32 = vld [vmem:[#allocation14_spill] sm:$0xff]  ;;  %v9392_v44 = vld [vmem:[#allocation12_spill] sm:$0xff] }
 0x3f2   :  { %3727 = vrot.lane.b32.xlu0 %v8423_v33, %s5799_s23  ;;  %v9388_v57 = vunpack.i.h.bf16 %v9381_v10  ;;  %4406 = vmatpush2.msra.mxu0 %v4029_v1  ;;  %v9389_v36 = vunpack.i.h.bf16 %v9374_v27  ;;  %v5285_v58 = vunpack.i.h.bf16 %v8208_v48  ;;  %v3212_v4 = vmax.f32 %v3204_v17, %v5294_v8 }
 0x3f3   :  { %v3188_v0 = vmax.f32 %v3178_v11, %v5304_v49  ;;  %v8528_v50 = vpop.permute.xlu1 %5352  ;;  %v3354_v55 = vmax.f32 %v9390_v32, %v5310_v38  ;;  %v5299_v59 = vunpack.i.l.bf16 %v8255_v35  ;;  %v2912_v10 = vmax.f32 %v2904_v15, %v5350_v42 }
 0x3f4   :  { %v2930_v28 = vmax.f32 %v2928_v51, %v9388_v57  ;;  %v3124_v21 = vmax.f32 %v8154_v7, %v9389_v36  ;;  %3711 = vrot.lane.b32.xlu1 %v8423_v33, %s5798_s16  ;;  %v3232_v51 = vmax.f32 %v9385_v2, %v5309_v52  ;;  %v3441_v41 = vmax.f32 %v7659_v60, %v5329_v54 }
 0x3f5   :  { %v5315_v27 = vunpack.i.h.bf16 %v8313_v25  ;;  %v5314_v7 = vunpack.i.l.bf16 %v8313_v25  ;;  %v5334_v48 = vunpack.i.l.bf16 %v8408_v40  ;;  %v2666_v8 = vmax.f32 %v2658_v37, %v5215_v9 }
 0x3f6   :  { %5502 = vrot.lane.b32.xlu0 %v5501_v63, %s5797_s13  ;;  %v3403_v17 = vmax.f32 %v3395_v3, %v5305_v14  ;;  %v5511_v38 = vpack.i.bf16 %v2912_v10, %v3188_v0  ;;  %v2932_v34 = vmax.f32 %v2930_v28, %v5135_v26  ;;  %v5340_v1 = vunpack.i.h.bf16 %v8433_v24 }
 0x3f7   :  { %v9391_v2 = vunpack.i.h.bf16 %v9377_v46  ;;  %v3411_v11 = vmax.f32 %v9392_v44, %v5285_v58  ;;  %v3220_v63 = vmax.f32 %v3212_v4, %v5299_v59  ;;  %v8550_v52 = vmax.f32 %v3354_v55, %v5315_v27  ;;  %v5358_v26 = vpop.permute.xlu1 %5357 }
 0x3f8   :  { %3719 = vrot.lane.b32.xlu1 %v8423_v33, %s5800_s24  ;;  %v3240_v25 = vmax.f32 %v3232_v51, %v5314_v7  ;;  %v5339_v40 = vunpack.i.l.bf16 %v8433_v24  ;;  %v3449_v37 = vmax.f32 %v3441_v41, %v5334_v48  ;;  %v5345_v54 = vunpack.i.h.bf16 %v8481_v23  ;;  %v9397_v48 = vld [vmem:[#allocation20_spill] sm:$0xff] }
 0x3f9   :  { %v3132_v42 = vmax.f32 %v3124_v21, %v9391_v2  ;;  %v5290_v46 = vunpack.i.h.bf16 %v8204_v13  ;;  %v5320_v15 = vunpack.i.h.bf16 %v8366_v18  ;;  %v5319_v9 = vunpack.i.l.bf16 %v8366_v18  ;;  %v5368_v2 = vpop.permute.xlu0 %5367 }
 0x3fa   :  { %5512 = vrot.lane.b32.xlu0 %v5511_v38, %s5803_s17  ;;  %v5496_v14 = vpack.i.bf16 %v2666_v8, %v9366_v22  ;;  %v5521_v3 = vpack.i.bf16 %v7821_v43, %v3403_v17  ;;  %v2878_v33 = vmax.f32 %v8420_v31, %v5340_v1  ;;  %v5344_v24 = vunpack.i.l.bf16 %v8481_v23 }
 0x3fb   :  { %v9393_v0 = vunpack.i.l.bf16 %v8052_v29  ;;  %v9394_v28 = vunpack.i.l.bf16 %v9364_v47  ;;  %v3419_v13 = vmax.f32 %v3411_v11, %v5290_v46  ;;  %v3222_v21 = vmax.f32 %v3220_v63, %v5304_v49  ;;  %v5363_v55 = vpop.permute.xlu1 %5362 }
 0x3fc   :  { %5497 = vrot.lane.b32.xlu1 %v5496_v14, %s5799_s23  ;;  %v3248_v22 = vmax.f32 %v3240_v25, %v5319_v9  ;;  %v3370_v18 = vmax.f32 %v8550_v52, %v5320_v15  ;;  %v3457_v58 = vmax.f32 %v3449_v37, %v5339_v40  ;;  %v2886_v31 = vmax.f32 %v2878_v33, %v5345_v54 }
 0x3fd   :  { %v2942_v57 = vmax.f32 %v2932_v34, %v9393_v0  ;;  %v2730_v36 = vmax.f32 %v8377_v39, %v9394_v28  ;;  %v9395_v29 = vunpack.i.l.bf16 %v9384_v56  ;;  %v5355_v47 = vunpack.i.h.bf16 %v8528_v50  ;;  %v8598_v46 = vpop.permute.xlu0 %5372 }
 0x3fe   :  { %5522 = vrot.lane.b32.xlu0 %v5521_v3, %s5801_s0  ;;  %v5354_v39 = vunpack.i.l.bf16 %v8528_v50  ;;  %v5325_v5 = vunpack.i.h.bf16 %v8350_v30  ;;  %v5324_v49 = vunpack.i.l.bf16 %v8350_v30  ;;  %v3465_v32 = vmax.f32 %v3457_v58, %v5344_v24 }
 0x3ff   :  { %v2764_v23 = vmax.f32 %v8487_v61, %v9395_v29  ;;  %v5506_v4 = vpack.i.bf16 %v2730_v36, %v3132_v42  ;;  %v5526_v59 = vpack.i.bf16 %v2942_v57, %v3222_v21  ;;  %v5349_v10 = vunpack.i.l.bf16 %v8475_v19  ;;  %v8604_v3 = vpop.permute.xlu1 %5382 }
 0x400   :  { %v5360_v51 = vunpack.i.h.bf16 %v5358_v26  ;;  %v5359_v41 = vunpack.i.l.bf16 %v5358_v26  ;;  %v9396_v56 = vunpack.i.h.bf16 %v8239_v45  ;;  %v3256_v27 = vmax.f32 %v3248_v22, %v5324_v49  ;;  %v4152_v45 = vld [vmem:[%s9210_s2 + $0x5e8] sm:$0xff] }
 0x401   :  { %5507 = vrot.lane.b32.xlu1 %v5506_v4, %s5802_s15  ;;  %v3378_v7 = vmax.f32 %v3370_v18, %v5325_v5  ;;  %v5516_v50 = vpack.i.bf16 %v2886_v31, %v2764_v23  ;;  %v3583_v8 = vmax.f32 %v9397_v48, %v5355_v47  ;;  %v3477_v30 = vmax.f32 %v7659_v60, %v5354_v39  ;;  %v8600_v35 = vpop.permute.xlu0 %5377  ;;  %v9398_v22 = vld [vmem:[#allocation28_spill] sm:$0xff] }
 0x402   :  { %v3421_v61 = vmax.f32 %v3419_v13, %v9396_v56  ;;  %5527 = vrot.lane.b32.xlu0 %v5526_v59, %s5799_s23  ;;  %v5365_v17 = vunpack.i.h.bf16 %v5363_v55  ;;  %v5364_v38 = vunpack.i.l.bf16 %v5363_v55  ;;  %v3467_v34 = vmax.f32 %v3465_v32, %v5349_v10  ;;  %4266 = vmatprep.subr.mxu1 %v4152_v45 }
 0x403   :  { %v3485_v19 = vmax.f32 %v3477_v30, %v5359_v41  ;;  %v3591_v1 = vmax.f32 %v3583_v8, %v5360_v51  ;;  %v5531_v44 = vpack.i.bf16 %v3378_v7, %v3256_v27  ;;  %v5370_v63 = vunpack.i.h.bf16 %v5368_v2  ;;  %v8608_v24 = vpop.permute.xlu1 %5392  ;;  %v9399_v30 = vld [vmem:[#allocation32_spill] sm:$0xff] }
 0x404   :  { %v3423_v42 = vmax.f32 %v3421_v61, %v5300_v16  ;;  %v5369_v25 = vunpack.i.l.bf16 %v5368_v2 }
 0x405   :  { %5517 = vrot.lane.b32.xlu1 %v5516_v50, %s5800_s24  ;;  %v3493_v11 = vmax.f32 %v3485_v19, %v5364_v38  ;;  %v3599_v60 = vmax.f32 %v3591_v1, %v5365_v17  ;;  %v8602_v16 = vpop.permute.xlu0 %5387 }
 0x406   :  { %3905 = vrot.lane.b32.xlu0 %v3467_v34, %s5803_s17  ;;  %v3433_v54 = vmax.f32 %v3423_v42, %v5349_v10  ;;  %v5385_v10 = vunpack.i.h.bf16 %v8604_v3 }
 0x407   :  { %v3501_v40 = vmax.f32 %v3493_v11, %v5369_v25  ;;  %v3607_v37 = vmax.f32 %v3599_v60, %v5370_v63  ;;  %v5389_v25 = vunpack.i.l.bf16 %v8602_v16 }
 0x408   :  { %v3584_v17 = vmax.f32 %v9399_v30, %v5385_v10 }
 0x409   :  { %5532 = vrot.lane.b32.xlu1 %v5531_v44, %s5797_s13  ;;  %v5536_v26 = vpack.i.bf16 %v3607_v37, %v3501_v40  ;;  %v5403_v15 = vpop.permute.xlu0 %5402 }
 0x40a   :  { %v5405_v0 = vunpack.i.h.bf16 %v5403_v15  ;;  %v5404_v57 = vunpack.i.l.bf16 %v5403_v15  ;;  %v5374_v15 = vunpack.i.l.bf16 %v8598_v46 }
 0x40c   :  { %v3671_v18 = vmax.f32 %v9398_v22, %v5405_v0  ;;  %v3641_v58 = vmax.f32 %v7821_v43, %v5404_v57  ;;  %v9400_v0 = vld [vmem:[#allocation33_spill] sm:$0xff] }
 0x40d   :  { %3897 = vrot.lane.b32.xlu1 %v3433_v54, %s5798_s16  ;;  %v5408_v9 = vpop.permute.xlu0 %5407  ;;  %v3412_v54 = vmax.f32 %v7022_v53, %v5389_v25  ;;  %v5189_v57 = vunpack.i.l.bf16 %v9400_v0 }
 0x40e   :  { %v5410_v36 = vunpack.i.h.bf16 %v5408_v9  ;;  %v5409_v13 = vunpack.i.l.bf16 %v5408_v9  ;;  %v5394_v9 = vunpack.i.l.bf16 %v8608_v24 }
 0x40f   :  { %v3420_v53 = vmax.f32 %v3412_v54, %v5189_v57 }
 0x410   :  { %v3649_v29 = vmax.f32 %v3641_v58, %v5409_v13  ;;  %v3679_v23 = vmax.f32 %v3671_v18, %v5410_v36  ;;  %v5379_v36 = vunpack.i.l.bf16 %v8600_v35  ;;  %v5390_v13 = vunpack.i.h.bf16 %v8602_v16 }
 0x411   :  { %5537 = vrot.lane.b32.xlu1 %v5536_v26, %s5799_s23  ;;  %v5418_v14 = vpop.permute.xlu0 %5417  ;;  %v5395_v18 = vunpack.i.h.bf16 %v8608_v24  ;;  %v5190_v16 = vunpack.i.h.bf16 %v9400_v0 }
 0x412   :  { %v5420_v5 = vunpack.i.h.bf16 %v5418_v14  ;;  %v5419_v49 = vunpack.i.l.bf16 %v5418_v14  ;;  %v5375_v14 = vunpack.i.h.bf16 %v8598_v46  ;;  %v3873_v46 = vsel %vm3853_vm3, %v5390_v13, %v5394_v9 }
 0x415   :  { %v8606_v33 = vpop.permute.xlu0 %5422 }
 0x416   :  { %v5424_v41 = vunpack.i.l.bf16 %v8606_v33 }
 0x419   :  { %v3702_v21 = vpop.permute.xlu0 %3701 }
 0x41a   :  { %v3707_v50 = vmax.f32 %v9398_v22, %v3702_v21  ;;  %v5384_v21 = vunpack.i.l.bf16 %v8604_v3  ;;  %v5380_v3 = vunpack.i.h.bf16 %v8600_v35 }
 0x41c   :  { %v3478_v24 = vmax.f32 %v7740_v12, %v5384_v21 }
 0x43a   :  { %v8610_v28 = vpop.permute.xlu1 %5397 }
 0x43e   :  { %v5413_v31 = vpop.permute.xlu1 %5412 }
 0x43f   :  { %v5415_v47 = vunpack.i.h.bf16 %v5413_v31  ;;  %v5414_v39 = vunpack.i.l.bf16 %v5413_v31  ;;  %v3442_v31 = vmax.f32 %v7740_v12, %v5374_v15 }
 0x440   :  { %v8614_v4 = vpop.permute.xlu0 %5427 }
 0x441   :  { %v3687_v32 = vmax.f32 %v3679_v23, %v5415_v47  ;;  %v3617_v55 = vmax.f32 %v3591_v1, %v5414_v39  ;;  %v3651_v59 = vmax.f32 %v3649_v29, %v5414_v39  ;;  %v9401_v29 = vld [vmem:[#allocation13_spill] sm:$0xff]  ;;  %v9402_v47 = vld [vmem:[#allocation31_spill] sm:$0xff] }
 0x442   :  { %v3710_v51 = vpop.permute.xlu1 %3709  ;;  %v5055_v23 = vunpack.i.h.bf16 %v9401_v29  ;;  %v3857_v39 = vsel %vm3856_vm4, %v9402_v47, %v5375_v14 }
 0x443   :  { %v3695_v56 = vmax.f32 %v3687_v32, %v5420_v5  ;;  %v3653_v61 = vmax.f32 %v3651_v59, %v5419_v49  ;;  %v8620_v27 = vmax.f32 %v3617_v55, %v5419_v49  ;;  %v3715_v34 = vmax.f32 %v3707_v50, %v3710_v51 }
 0x444   :  { %v8618_v43 = vpop.permute.xlu0 %5442  ;;  %v8664_v5 = vmax.f32 %v3442_v31, %v5379_v36  ;;  %v5399_v49 = vunpack.i.l.bf16 %v8610_v28  ;;  %v3875_v55 = vsel %vm3856_vm4, %v3873_v46, %v5395_v18  ;;  %v5429_v59 = vunpack.i.l.bf16 %v8614_v4 }
 0x445   :  { %v5444_v7 = vunpack.i.l.bf16 %v8618_v43  ;;  %v3697_v48 = vmax.f32 %v3695_v56, %v5424_v41  ;;  %v3663_v8 = vmax.f32 %v3653_v61, %v5424_v41  ;;  %v3422_v41 = vmax.f32 %v3420_v53, %v5055_v23 }
 0x446   :  { %v3718_v38 = vpop.permute.xlu1 %3717  ;;  %v5425_v56 = vunpack.i.h.bf16 %v8606_v33  ;;  %v3388_v50 = vmax.f32 %v8550_v52, %v5055_v23  ;;  %v3877_v30 = vsel %vm3859_vm5, %v3875_v55, %v5190_v16  ;;  %v5430_v33 = vunpack.i.h.bf16 %v8614_v4 }
 0x447   :  { %3937 = vrot.lane.b32.xlu1 %v3697_v48, %s5798_s16  ;;  %3929 = vrot.lane.b32.xlu0 %v3663_v8, %s5801_s0  ;;  %v3592_v1 = vmax.f32 %v3584_v17, %v5444_v7  ;;  %v3723_v45 = vmax.f32 %v3715_v34, %v3718_v38  ;;  %v3860_v48 = vsel %vm3859_vm5, %v3857_v39, %v5399_v49 }
 0x448   :  { %v8627_v19 = vpop.permute.xlu0 %5447  ;;  %v3486_v8 = vmax.f32 %v3478_v24, %v5380_v3  ;;  %v3862_v34 = vsel %vm2313_vm2, %v3860_v48, %v5429_v59 }
 0x449   :  { %v5450_v2 = vunpack.i.h.bf16 %v8627_v19  ;;  %v5449_v35 = vunpack.i.l.bf16 %v8627_v19 }
 0x44a   :  { %v3726_v44 = vpop.permute.xlu1 %3725 }
 0x44b   :  { %v8632_v42 = vmax.f32 %v3592_v1, %v5450_v2  ;;  %v3731_v11 = vmax.f32 %v3723_v45, %v3726_v44  ;;  %v5445_v45 = vunpack.i.h.bf16 %v8618_v43  ;;  %v3600_v52 = vmax.f32 %v3592_v1, %v5449_v35 }
 0x44c   :  { %v8634_v60 = vpop.permute.xlu0 %5457  ;;  %v3458_v35 = vmax.f32 %v8664_v5, %v5430_v33 }
 0x44d   :  { %3945 = vrot.lane.b32.xlu0 %v3731_v11, %s5803_s17  ;;  %v5459_v10 = vunpack.i.l.bf16 %v8634_v60  ;;  %v5460_v15 = vunpack.i.h.bf16 %v8634_v60 }
 0x44e   :  { %v5433_v63 = vpop.permute.xlu1 %5432 }
 0x44f   :  { %v5435_v12 = vunpack.i.h.bf16 %v5433_v63  ;;  %v5434_v61 = vunpack.i.l.bf16 %v5433_v63  ;;  %v3672_v44 = vmax.f32 %v7747_v6, %v5459_v10 }
 0x450   :  { %v8638_v40 = vpop.permute.xlu0 %5467 }
 0x451   :  { %v5469_v7 = vunpack.i.l.bf16 %v8638_v40  ;;  %v3494_v9 = vmax.f32 %v3486_v8, %v5435_v12  ;;  %v3865_v4 = vsel %vm3864_vm6, %v3862_v34, %v5434_v61  ;;  %v4148_v61 = vld [vmem:[%s9210_s2 + $0x5c8] sm:$0xff] }
 0x452   :  { %v8640_v37 = vpop.permute.xlu1 %5437  ;;  %v4144_v8 = vld [vmem:[%s9210_s2 + $0x5a8] sm:$0xff] }
 0x453   :  { %v3680_v14 = vmax.f32 %v3672_v44, %v5469_v7  ;;  %v5439_v13 = vunpack.i.l.bf16 %v8640_v37  ;;  %v4140_v44 = vld [vmem:[%s9210_s2 + $0x588] sm:$0xff] }
 0x454   :  { %v8643_v26 = vpop.permute.xlu0 %5472 }
 0x455   :  { %v5475_v63 = vunpack.i.h.bf16 %v8643_v26  ;;  %v5474_v25 = vunpack.i.l.bf16 %v8643_v26  ;;  %v5440_v26 = vunpack.i.h.bf16 %v8640_v37  ;;  %v3466_v48 = vmax.f32 %v3458_v35, %v5439_v13  ;;  %v4116_v35 = vld [vmem:[%s9210_s2 + $0x4c8] sm:$0xff] }
 0x456   :  { %v8652_v22 = vpop.permute.xlu1 %5452  ;;  %v5400_v13 = vunpack.i.h.bf16 %v8610_v28  ;;  %v4127_v28 = vld [vmem:[%s9210_s2 + $0x520] sm:$0xff] }
 0x457   :  { %v5455_v0 = vunpack.i.h.bf16 %v8652_v22  ;;  %v5454_v43 = vunpack.i.l.bf16 %v8652_v22  ;;  %v3868_v18 = vsel %vm3867_vm7, %v3865_v4, %v5475_v63  ;;  %v3879_v31 = vsel %vm2313_vm2, %v3877_v30, %v5474_v25  ;;  %v4136_v25 = vld [vmem:[%s9210_s2 + $0x568] sm:$0xff] }
 0x458   :  { %v8655_v58 = vpop.permute.xlu0 %5482  ;;  %v3871_v12 = vsel %vm3870_vm8, %v3868_v18, %v5440_v26  ;;  %v4131_v26 = vld [vmem:[%s9210_s2 + $0x540] sm:$0xff]  ;;  %v4128_v18 = vld [vmem:[%s9210_s2 + $0x528] sm:$0xff] }
 0x459   :  { %v5484_v17 = vunpack.i.l.bf16 %v8655_v58  ;;  %v5485_v22 = vunpack.i.h.bf16 %v8655_v58  ;;  %v3502_v39 = vmax.f32 %v3494_v9, %v5454_v43  ;;  %v3608_v37 = vmax.f32 %v3600_v52, %v5455_v0  ;;  %v4139_v52 = vld [vmem:[%s9210_s2 + $0x580] sm:$0xff] }
 0x45a   :  { %v8668_v32 = vpop.permute.xlu1 %5462 }
 0x45b   :  { %v3642_v57 = vmax.f32 %v8143_v20, %v5484_v17  ;;  %v5464_v46 = vunpack.i.l.bf16 %v8668_v32  ;;  %v5546_v30 = vpack.i.bf16 %v3608_v37, %v3502_v39 }
 0x45c   :  { %v8673_v51 = vpop.permute.xlu0 %5487 }
 0x45d   :  { %v3650_v16 = vmax.f32 %v3642_v57, %v5445_v45  ;;  %v5490_v17 = vunpack.i.h.bf16 %v8673_v51  ;;  %v4143_v45 = vld [vmem:[%s9210_s2 + $0x5a0] sm:$0xff] }
 0x45e   :  { %v8682_v38 = vpop.permute.xlu1 %3703 }
 0x45f   :  { %v3652_v33 = vmax.f32 %v3650_v16, %v5450_v2  ;;  %v3708_v19 = vmax.f32 %v7747_v6, %v8682_v38  ;;  %v4135_v38 = vld [vmem:[%s9210_s2 + $0x560] sm:$0xff] }
 0x460   :  { %v8688_v11 = vpop.permute.xlu0 %5492 }
 0x461   :  { %v5494_v54 = vunpack.i.l.bf16 %v8688_v11  ;;  %v5495_v49 = vunpack.i.h.bf16 %v8688_v11  ;;  %v3468_v11 = vmax.f32 %v3466_v48, %v5464_v46 }
 0x462   :  { %v5478_v36 = vpop.permute.xlu1 %5477 }
 0x463   :  { %v8699_v1 = vmax.f32 %v8632_v42, %v5494_v54  ;;  %v5480_v21 = vunpack.i.h.bf16 %v5478_v36  ;;  %v5479_v60 = vunpack.i.l.bf16 %v5478_v36  ;;  %v5489_v42 = vunpack.i.l.bf16 %v8673_v51 }
 0x464   :  { %v8703_v53 = vpop.permute.xlu0 %3727  ;;  %v5465_v51 = vunpack.i.h.bf16 %v8668_v32  ;;  %v3654_v2 = vmax.f32 %v3652_v33, %v5494_v54  ;;  %v2632_v32 = vmax.f32 %v8303_v62, %v5490_v17  ;;  %v4132_v62 = vld [vmem:[%s9210_s2 + $0x548] sm:$0xff]  ;;  %v4111_v17 = vld [vmem:[%s9210_s2 + $0x4a0] sm:$0xff] }
 0x465   :  { %v3396_v29 = vmax.f32 %v3388_v50, %v5480_v21  ;;  %v3424_v23 = vmax.f32 %v3422_v41, %v5480_v21  ;;  %v3881_v47 = vsel %vm3864_vm6, %v3879_v31, %v5479_v60  ;;  %v4151_v41 = vld [vmem:[%s9210_s2 + $0x5e0] sm:$0xff] }
 0x466   :  { %v3712_v3 = vpop.permute.xlu1 %3711  ;;  %v3883_v24 = vsel %vm3867_vm7, %v3881_v47, %v5485_v22  ;;  %v4147_v50 = vld [vmem:[%s9210_s2 + $0x5c0] sm:$0xff]  ;;  %v3664_v0 = vmax.f32 %v3654_v2, %v5465_v51 }
 0x467   :  { %v3404_v55 = vmax.f32 %v3396_v29, %v5425_v56  ;;  %v3434_v59 = vmax.f32 %v3424_v23, %v5464_v46  ;;  %v3885_v58 = vsel %vm3870_vm8, %v3883_v24, %v5460_v15  ;;  %v3688_v56 = vmax.f32 %v3680_v14, %v5489_v42  ;;  %v4124_v23 = vld [vmem:[%s9210_s2 + $0x508] sm:$0xff] }
 0x468   :  { %v8713_v10 = vpop.permute.xlu0 %5502  ;;  %4253 = vmatprep.mubr.f32.mxu1 %v3885_v58  ;;  %4407 = vmatprep.mubr.f32.mxu0 %v3885_v58  ;;  %v3716_v9 = vmax.f32 %v3708_v19, %v3712_v3 }
 0x469   :  { %3899 = vrot.lane.b32.xlu0 %v3434_v59, %s5798_s16  ;;  %4254 = vmatmul.mubr.f32.vlgmr.msra.gmra.mxu1 %v3871_v12  ;;  %v5541_v7 = vpack.i.bf16 %v8143_v20, %v3404_v55  ;;  %v3696_v34 = vmax.f32 %v3688_v56, %v5495_v49  ;;  %v5504_v54 = vunpack.i.l.bf16 %v8713_v10  ;;  %v5505_v31 = vunpack.i.h.bf16 %v8713_v10  ;;  %v4120_v49 = vld [vmem:[%s9210_s2 + $0x4e8] sm:$0xff]  ;;  %v4119_v10 = vld [vmem:[%s9210_s2 + $0x4e0] sm:$0xff] }
 0x46a   :  { %4408 = vmatmul.mubr.f32.vlgmr.msra.gmra.mxu0 %v3871_v12  ;;  %v3720_v5 = vpop.permute.xlu1 %3719  ;;  %4267 = vmatpush1.msra.mxu1 %v4151_v41  ;;  %v4115_v56 = vld [vmem:[%s9210_s2 + $0x4c0] sm:$0xff] }
 0x46b   :  { %5542 = vrot.lane.b32.xlu1 %v5541_v7, %s5801_s0  ;;  %4268 = vmatprep.subr.mxu1 %v4148_v61  ;;  %v3698_v15 = vmax.f32 %v3696_v34, %v5465_v51  ;;  %v3724_v43 = vmax.f32 %v3716_v9, %v3720_v5  ;;  %v3874_v42 = vsel %vm3853_vm3, %v5504_v54, %v5400_v13  ;;  %v4112_v5 = vld [vmem:[%s9210_s2 + $0x4a8] sm:$0xff]  ;;  %v4099_v54 = vld [vmem:[%s9210_s2 + $0x440] sm:$0xff] }
 0x46c   :  { %v8736_v20 = vpop.permute.xlu0 %5512  ;;  %4269 = vmatpush1.msra.mxu1 %v4147_v50  ;;  %v4100_v9 = vld [vmem:[%s9210_s2 + $0x448] sm:$0xff]  ;;  %v4091_v13 = vld [vmem:[%s9210_s2 + $0x400] sm:$0xff] }
 0x46d   :  { %5547 = vrot.lane.b32.xlu0 %v5546_v30, %s5799_s23  ;;  %4270 = vmatprep.subr.mxu1 %v4144_v8  ;;  %v3732_v47 = vmax.f32 %v3724_v43, %v8703_v53  ;;  %v5514_v53 = vunpack.i.l.bf16 %v8736_v20  ;;  %v5515_v7 = vunpack.i.h.bf16 %v8736_v20  ;;  %v4095_v43 = vld [vmem:[%s9210_s2 + $0x420] sm:$0xff] }
 0x46e   :  { %v5498_v63 = vpop.permute.xlu1 %5497  ;;  %4271 = vmatpush1.msra.mxu1 %v4143_v45 }
 0x46f   :  { %v5499_v4 = vunpack.i.l.bf16 %v5498_v63  ;;  %3907 = vrot.lane.b32.xlu1 %v3468_v11, %s5803_s17  ;;  %4272 = vmatprep.subr.mxu1 %v4140_v44  ;;  %v5500_v57 = vunpack.i.h.bf16 %v5498_v63  ;;  %v4108_v11 = vld [vmem:[%s9210_s2 + $0x488] sm:$0xff] }
 0x470   :  { %v8756_v6 = vpop.permute.xlu0 %5522  ;;  %4273 = vmatpush1.msra.mxu1 %v4139_v52  ;;  %v4107_v52 = vld [vmem:[%s9210_s2 + $0x480] sm:$0xff]  ;;  %v4104_v63 = vld [vmem:[%s9210_s2 + $0x468] sm:$0xff] }
 0x471   :  { %v5525_v14 = vunpack.i.h.bf16 %v8756_v6  ;;  %v2640_v36 = vmax.f32 %v2632_v32, %v5499_v4  ;;  %3939 = vrot.lane.b32.xlu0 %v3698_v15, %s5798_s16  ;;  %4274 = vmatprep.subr.mxu1 %v4136_v25  ;;  %v5524_v19 = vunpack.i.l.bf16 %v8756_v6  ;;  %v4103_v32 = vld [vmem:[%s9210_s2 + $0x460] sm:$0xff] }
 0x472   :  { %4275 = vmatpush1.msra.mxu1 %v4135_v38 }
 0x473   :  { %v8772_v21 = vmax.f32 %v8620_v27, %v5525_v14  ;;  %v5508_v60 = vpop.permute.xlu1 %5507  ;;  %v3855_v22 = vsel %vm3853_vm3, %v2640_v36, %v5500_v57  ;;  %3931 = vrot.lane.b32.xlu1 %v3664_v0, %s5801_s0  ;;  %4276 = vmatprep.subr.mxu1 %v4132_v62  ;;  %v5470_v27 = vunpack.i.h.bf16 %v8638_v40  ;;  %v4123_v40 = vld [vmem:[%s9210_s2 + $0x500] sm:$0xff]  ;;  %v4096_v62 = vld [vmem:[%s9210_s2 + $0x428] sm:$0xff] }
 0x474   :  { %v5509_v46 = vunpack.i.l.bf16 %v5508_v60  ;;  %v5510_v29 = vunpack.i.h.bf16 %v5508_v60  ;;  %4277 = vmatpush1.msra.mxu1 %v4131_v26  ;;  %v3858_v39 = vsel %vm3856_vm4, %v3855_v22, %v5505_v31  ;;  %v5528_v16 = vpop.permute.xlu0 %5527  ;;  %v4092_v36 = vld [vmem:[%s9210_s2 + $0x408] sm:$0xff]  ;;  %v4155_v31 = vld [vmem:[%s9210_s2 + $0x600] sm:$0xff]  ;;  %v4154_v22 = vld [vmem:[%s9210_s2 + $0x5f8] sm:$0xff] }
 0x475   :  { %4278 = vmatprep.subr.mxu1 %v4128_v18  ;;  %v5529_v41 = vunpack.i.l.bf16 %v5528_v16  ;;  %v5530_v20 = vunpack.i.h.bf16 %v5528_v16  ;;  %v4160_v60 = vld [vmem:[%s9210_s2 + $0x628] sm:$0xff]  ;;  %v4159_v18 = vld [vmem:[%s9210_s2 + $0x620] sm:$0xff]  ;;  %v4145_v16 = vld [vmem:[%s9210_s2 + $0x5b0] sm:$0xff] }
 0x476   :  { %v3876_v37 = vsel %vm3856_vm4, %v3874_v42, %v5509_v46  ;;  %4279 = vmatpush1.msra.mxu1 %v4127_v28  ;;  %v3861_v58 = vsel %vm3859_vm5, %v3858_v39, %v5510_v29  ;;  %v4153_v29 = vld [vmem:[%s9210_s2 + $0x5f0] sm:$0xff] }
 0x477   :  { %v3878_v3 = vsel %vm3859_vm5, %v3876_v37, %v5470_v27  ;;  %v5518_v24 = vpop.permute.xlu1 %5517  ;;  %3947 = vrot.lane.b32.xlu1 %v3732_v47, %s5803_s17  ;;  %4280 = vmatprep.subr.mxu1 %v4124_v23  ;;  %v4150_v47 = vld [vmem:[%s9210_s2 + $0x5d8] sm:$0xff]  ;;  %v4149_v39 = vld [vmem:[%s9210_s2 + $0x5d0] sm:$0xff] }
 0x478   :  { %v5520_v55 = vunpack.i.h.bf16 %v5518_v24  ;;  %v5519_v59 = vunpack.i.l.bf16 %v5518_v24  ;;  %4281 = vmatpush1.msra.mxu1 %v4123_v40  ;;  %v3880_v61 = vsel %vm2313_vm2, %v3878_v3, %v5514_v53  ;;  %v3906_v4 = vpop.permute.xlu0 %3905  ;;  %v4146_v37 = vld [vmem:[%s9210_s2 + $0x5b8] sm:$0xff]  ;;  %v4141_v53 = vld [vmem:[%s9210_s2 + $0x590] sm:$0xff] }
 0x479   :  { %4282 = vmatprep.subr.mxu1 %v4120_v49  ;;  %v3882_v33 = vsel %vm3864_vm6, %v3880_v61, %v5529_v41  ;;  %v4142_v40 = vld [vmem:[%s9210_s2 + $0x598] sm:$0xff]  ;;  %v4535_v49 = vld [vmem:[%s9211_s4 + $0xf0] sm:$0xff]  ;;  %v4518_v41 = vld [vmem:[%s9211_s4 + $0x68] sm:$0xff] }
 0x47a   :  { %v3863_v12 = vsel %vm2313_vm2, %v3861_v58, %v5519_v59  ;;  %4283 = vmatpush1.msra.mxu1 %v4119_v10  ;;  %v4536_v3 = vld [vmem:[%s9211_s4 + $0xf8] sm:$0xff]  ;;  %v4534_v10 = vld [vmem:[%s9211_s4 + $0xe8] sm:$0xff]  ;;  %v4137_v58 = vld [vmem:[%s9210_s2 + $0x570] sm:$0xff] }
 0x47b   :  { %v3866_v50 = vsel %vm3864_vm6, %v3863_v12, %v5520_v55  ;;  %v5533_v48 = vpop.permute.xlu1 %5532  ;;  %4284 = vmatprep.subr.mxu1 %v4116_v35  ;;  %v4520_v24 = vld [vmem:[%s9211_s4 + $0x78] sm:$0xff]  ;;  %4947 = vmatprep.subr.mxu0 %v4536_v3  ;;  %v4519_v55 = vld [vmem:[%s9211_s4 + $0x70] sm:$0xff]  ;;  %v4533_v12 = vld [vmem:[%s9211_s4 + $0xe0] sm:$0xff] }
 0x47c   :  { %v5535_v8 = vunpack.i.h.bf16 %v5533_v48  ;;  %v5534_v30 = vunpack.i.l.bf16 %v5533_v48  ;;  %v3869_v34 = vsel %vm3867_vm7, %v3866_v50, %v5515_v7  ;;  %4285 = vmatpush1.msra.mxu1 %v4115_v56  ;;  %v4138_v59 = vld [vmem:[%s9210_s2 + $0x578] sm:$0xff]  ;;  %4948 = vmatpush3.msra.mxu0 %v4520_v24  ;;  %v4133_v61 = vld [vmem:[%s9210_s2 + $0x550] sm:$0xff]  ;;  %v4517_v56 = vld [vmem:[%s9211_s4 + $0x60] sm:$0xff] }
 0x47d   :  { %4286 = vmatprep.subr.mxu1 %v4112_v5  ;;  %v3872_v2 = vsel %vm3870_vm8, %v3869_v34, %v5530_v20  ;;  %4949 = vmatprep.subr.mxu0 %v4535_v49  ;;  %v4134_v35 = vld [vmem:[%s9210_s2 + $0x558] sm:$0xff]  ;;  %v4129_v48 = vld [vmem:[%s9210_s2 + $0x530] sm:$0xff]  ;;  %v4530_v20 = vld [vmem:[%s9211_s4 + $0xc8] sm:$0xff] }
 0x47e   :  { %v3884_v45 = vsel %vm3867_vm7, %v3882_v33, %v5534_v30  ;;  %4287 = vmatpush1.msra.mxu1 %v4111_v17  ;;  %4950 = vmatpush3.msra.mxu0 %v4519_v55  ;;  %v4130_v7 = vld [vmem:[%s9210_s2 + $0x538] sm:$0xff]  ;;  %v4531_v30 = vld [vmem:[%s9211_s4 + $0xd0] sm:$0xff] }
 0x47f   :  { %v3898_v44 = vpop.permute.xlu1 %3897  ;;  %v3886_v51 = vsel %vm3870_vm8, %v3884_v45, %v5535_v8  ;;  %4288 = vmatprep.subr.mxu1 %v4108_v11  ;;  %4951 = vmatprep.subr.mxu0 %v4534_v10  ;;  %v4532_v50 = vld [vmem:[%s9211_s4 + $0xd8] sm:$0xff]  ;;  %v4125_v17 = vld [vmem:[%s9210_s2 + $0x510] sm:$0xff]  ;;  %v4529_v11 = vld [vmem:[%s9211_s4 + $0xc0] sm:$0xff] }
 0x480   :  { %4259 = vmatprep.mubr.f32.mxu1 %v3886_v51  ;;  %4413 = vmatprep.mubr.f32.mxu0 %v3886_v51  ;;  %v3949_v25 = vsel %vm3853_vm3, %v5524_v19, %v3898_v44  ;;  %v4516_v5 = vld [vmem:[%s9211_s4 + $0x58] sm:$0xff]  ;;  %v4515_v33 = vld [vmem:[%s9211_s4 + $0x50] sm:$0xff]  ;;  %v4514_v44 = vld [vmem:[%s9211_s4 + $0x48] sm:$0xff] }
 0x481   :  { %4260 = vmatmul.mubr.f32.gmra.mxu1 %v3872_v2  ;;  %4414 = vmatmul.mubr.f32.gmra.mxu0 %v3872_v2  ;;  %v3951_v14 = vsel %vm3856_vm4, %v3949_v25, %v3906_v4  ;;  %v4126_v8 = vld [vmem:[%s9210_s2 + $0x518] sm:$0xff]  ;;  %v4121_v45 = vld [vmem:[%s9210_s2 + $0x4f0] sm:$0xff]  ;;  %v4513_v2 = vld [vmem:[%s9211_s4 + $0x40] sm:$0xff] }
 0x482   :  { %4289 = vmatpush1.msra.mxu1 %v4107_v52  ;;  %4952 = vmatpush3.msra.mxu0 %v4518_v41  ;;  %v4122_v34 = vld [vmem:[%s9210_s2 + $0x4f8] sm:$0xff]  ;;  %v4117_v19 = vld [vmem:[%s9210_s2 + $0x4d0] sm:$0xff] }
 0x483   :  { %v5538_v15 = vpop.permute.xlu1 %5537  ;;  %4290 = vmatprep.subr.mxu1 %v4104_v63  ;;  %4953 = vmatprep.subr.mxu0 %v4533_v12  ;;  %v4118_v51 = vld [vmem:[%s9210_s2 + $0x4d8] sm:$0xff]  ;;  %v4113_v25 = vld [vmem:[%s9210_s2 + $0x4b0] sm:$0xff] }
 0x484   :  { %v5540_v6 = vunpack.i.h.bf16 %v5538_v15  ;;  %v5539_v38 = vunpack.i.l.bf16 %v5538_v15  ;;  %4291 = vmatpush1.msra.mxu1 %v4103_v32  ;;  %4954 = vmatpush3.msra.mxu0 %v4517_v56  ;;  %v4114_v52 = vld [vmem:[%s9210_s2 + $0x4b8] sm:$0xff]  ;;  %v4109_v4 = vld [vmem:[%s9210_s2 + $0x490] sm:$0xff] }
 0x485   :  { %4292 = vmatprep.subr.mxu1 %v4100_v9  ;;  %4955 = vmatprep.subr.mxu0 %v4532_v50  ;;  %v4528_v63 = vld [vmem:[%s9211_s4 + $0xb8] sm:$0xff]  ;;  %v4527_v9 = vld [vmem:[%s9211_s4 + $0xb0] sm:$0xff]  ;;  %v4521_v50 = vld [vmem:[%s9211_s4 + $0x80] sm:$0xff] }
 0x486   :  { %v3953_v0 = vsel %vm3859_vm5, %v3951_v14, %v5539_v38  ;;  %4293 = vmatpush1.msra.mxu1 %v4099_v54  ;;  %4956 = vmatpush3.msra.mxu0 %v4516_v5  ;;  %v4512_v32 = vld [vmem:[%s9211_s4 + $0x38] sm:$0xff]  ;;  %v4526_v54 = vld [vmem:[%s9211_s4 + $0xa8] sm:$0xff]  ;;  %v4105_v14 = vld [vmem:[%s9210_s2 + $0x470] sm:$0xff] }
 0x487   :  { %v3955_v57 = vsel %vm2313_vm2, %v3953_v0, %v5540_v6  ;;  %4294 = vmatprep.subr.mxu1 %v4096_v62  ;;  %4957 = vmatprep.subr.mxu0 %v4531_v30  ;;  %v4110_v15 = vld [vmem:[%s9210_s2 + $0x498] sm:$0xff]  ;;  %v4511_v6 = vld [vmem:[%s9211_s4 + $0x30] sm:$0xff]  ;;  %v4510_v62 = vld [vmem:[%s9211_s4 + $0x28] sm:$0xff] }
 0x488   :  { %v3957_v26 = vsel %vm3864_vm6, %v3955_v57, %v8772_v21  ;;  %4295 = vmatpush1.msra.mxu1 %v4095_v43  ;;  %v4156_v21 = vld [vmem:[%s9210_s2 + $0x608] sm:$0xff]  ;;  %4958 = vmatpush3.msra.mxu0 %v4515_v33  ;;  %v4106_v38 = vld [vmem:[%s9210_s2 + $0x478] sm:$0xff]  ;;  %v4525_v43 = vld [vmem:[%s9211_s4 + $0xa0] sm:$0xff] }
 0x489   :  { %4296 = vmatprep.subr.mxu1 %v4092_v36  ;;  %4959 = vmatprep.subr.mxu0 %v4530_v20  ;;  %v4102_v0 = vld [vmem:[%s9210_s2 + $0x458] sm:$0xff]  ;;  %v4101_v57 = vld [vmem:[%s9210_s2 + $0x450] sm:$0xff]  ;;  %v4509_v36 = vld [vmem:[%s9211_s4 + $0x20] sm:$0xff] }
 0x48a   :  { %4297 = vmatpush1.msra.mxu1 %v4091_v13  ;;  %4960 = vmatpush3.msra.mxu0 %v4514_v44  ;;  %v4523_v56 = vld [vmem:[%s9211_s4 + $0x90] sm:$0xff]  ;;  %v4568_v5 = vld [vmem:[%s9211_s4 + $0x1f8] sm:$0xff]  ;;  %v4566_v33 = vld [vmem:[%s9211_s4 + $0x1e8] sm:$0xff] }
 0x48b   :  { %4326 = vmatprep.subr.mxu1 %v4160_v60  ;;  %4961 = vmatprep.subr.mxu0 %v4529_v11  ;;  %v4097_v60 = vld [vmem:[%s9210_s2 + $0x430] sm:$0xff]  ;;  %v4565_v20 = vld [vmem:[%s9211_s4 + $0x1e0] sm:$0xff]  ;;  %v4564_v44 = vld [vmem:[%s9211_s4 + $0x1d8] sm:$0xff] }
 0x48c   :  { %4327 = vmatpush2.msra.mxu1 %v4159_v18  ;;  %4962 = vmatpush3.msra.mxu0 %v4513_v2  ;;  %v4094_v18 = vld [vmem:[%s9210_s2 + $0x418] sm:$0xff]  ;;  %v4567_v30 = vld [vmem:[%s9211_s4 + $0x1f0] sm:$0xff]  ;;  %v4562_v2 = vld [vmem:[%s9211_s4 + $0x1c8] sm:$0xff] }
 0x48d   :  { %4328 = vmatprep.subr.mxu1 %v4156_v21  ;;  %4963 = vmatprep.subr.mxu0 %v4528_v63  ;;  %v4563_v11 = vld [vmem:[%s9211_s4 + $0x1d0] sm:$0xff]  ;;  %v4561_v63 = vld [vmem:[%s9211_s4 + $0x1c0] sm:$0xff] }
 0x48e   :  { %4329 = vmatpush2.msra.mxu1 %v4155_v31  ;;  %4964 = vmatpush3.msra.mxu0 %v4512_v32  ;;  %v4093_v31 = vld [vmem:[%s9210_s2 + $0x410] sm:$0xff]  ;;  %v4560_v32 = vld [vmem:[%s9211_s4 + $0x1b8] sm:$0xff] }
 0x48f   :  { %4420 = vmatprep.subr.mxu1 %v4154_v22  ;;  %4965 = vmatprep.subr.mxu0 %v4527_v9  ;;  %v4559_v9 = vld [vmem:[%s9211_s4 + $0x1b0] sm:$0xff] }
 0x490   :  { %4966 = vmatpush3.msra.mxu0 %v4511_v6  ;;  %v4558_v6 = vld [vmem:[%s9211_s4 + $0x1a8] sm:$0xff] }
 0x491   :  { %4967 = vmatprep.subr.mxu0 %v4526_v54  ;;  %v4557_v54 = vld [vmem:[%s9211_s4 + $0x1a0] sm:$0xff] }
 0x492   :  { %4968 = vmatpush3.msra.mxu0 %v4510_v62  ;;  %v4556_v62 = vld [vmem:[%s9211_s4 + $0x198] sm:$0xff] }
 0x493   :  { %4969 = vmatprep.subr.mxu0 %v4525_v43  ;;  %v4555_v43 = vld [vmem:[%s9211_s4 + $0x190] sm:$0xff] }
 0x494   :  { %4970 = vmatpush3.msra.mxu0 %v4509_v36  ;;  %v4554_v36 = vld [vmem:[%s9211_s4 + $0x188] sm:$0xff] }
 0x4b9   :  { %v3930_v46 = vpop.permute.xlu0 %3929  ;;  %v3938_v28 = vpop.permute.xlu1 %3937 }
 0x4ba   :  { %v3959_v27 = vsel %vm3867_vm7, %v3957_v26, %v3930_v46  ;;  %v4098_v26 = vld [vmem:[%s9210_s2 + $0x438] sm:$0xff] }
 0x4bb   :  { %v8884_v23 = vsel %vm3870_vm8, %v3959_v27, %v3938_v28  ;;  %v4162_v46 = vld [vmem:[%s9210_s2 + $0x638] sm:$0xff] }
 0x4bf   :  { %v8878_v42 = vpop.permute.xlu0 %3945 }
 0x4c0   :  { %4942 = vmatprep.mubr.msk.f32.mxu1 %vm3853_vm3, %v8878_v42 }
 0x4c1   :  { %4331 = vmatmul.mubr.f32.vlgmr.msra.gmra.mxu1 %v8884_v23 }
 0x4c2   :  { %4421 = vmatpush1.msra.mxu1 %v4153_v29  ;;  %v4161_v29 = vld [vmem:[%s9210_s2 + $0x630] sm:$0xff] }
 0x4c3   :  { %4422 = vmatprep.subr.mxu1 %v4150_v47 }
 0x4c4   :  { %4423 = vmatpush1.msra.mxu1 %v4149_v39 }
 0x4c5   :  { %4424 = vmatprep.subr.mxu1 %v4146_v37  ;;  %v4158_v37 = vld [vmem:[%s9210_s2 + $0x618] sm:$0xff] }
 0x4c6   :  { %4425 = vmatpush1.msra.mxu1 %v4145_v16 }
 0x4c7   :  { %4426 = vmatprep.subr.mxu1 %v4142_v40  ;;  %v4157_v40 = vld [vmem:[%s9210_s2 + $0x610] sm:$0xff] }
 0x4c8   :  { %4427 = vmatpush1.msra.mxu1 %v4141_v53 }
 0x4c9   :  { %4428 = vmatprep.subr.mxu1 %v4138_v59 }
 0x4ca   :  { %4429 = vmatpush1.msra.mxu1 %v4137_v58 }
 0x4cb   :  { %4430 = vmatprep.subr.mxu1 %v4134_v35 }
 0x4cc   :  { %4431 = vmatpush1.msra.mxu1 %v4133_v61  ;;  %v4508_v61 = vld [vmem:[%s9211_s4 + $0x18] sm:$0xff] }
 0x4cd   :  { %4432 = vmatprep.subr.mxu1 %v4130_v7  ;;  %v4506_v7 = vld [vmem:[%s9211_s4 + $0x8] sm:$0xff] }
 0x4ce   :  { %4433 = vmatpush1.msra.mxu1 %v4129_v48  ;;  %v4505_v48 = vld [vmem:[%s9211_s4] sm:$0xff] }
 0x4cf   :  { %4434 = vmatprep.subr.mxu1 %v4126_v8  ;;  %v4552_v8 = vld [vmem:[%s9211_s4 + $0x178] sm:$0xff] }
 0x4d0   :  { %4435 = vmatpush1.msra.mxu1 %v4125_v17  ;;  %v4551_v17 = vld [vmem:[%s9211_s4 + $0x170] sm:$0xff] }
 0x4d1   :  { %4436 = vmatprep.subr.mxu1 %v4122_v34  ;;  %v4550_v34 = vld [vmem:[%s9211_s4 + $0x168] sm:$0xff] }
 0x4d2   :  { %4437 = vmatpush1.msra.mxu1 %v4121_v45  ;;  %v4549_v45 = vld [vmem:[%s9211_s4 + $0x160] sm:$0xff] }
 0x4d3   :  { %4438 = vmatprep.subr.mxu1 %v4118_v51  ;;  %v4548_v51 = vld [vmem:[%s9211_s4 + $0x158] sm:$0xff] }
 0x4d4   :  { %4439 = vmatpush1.msra.mxu1 %v4117_v19  ;;  %v4547_v19 = vld [vmem:[%s9211_s4 + $0x150] sm:$0xff] }
 0x4d5   :  { %4440 = vmatprep.subr.mxu1 %v4114_v52  ;;  %v4546_v52 = vld [vmem:[%s9211_s4 + $0x148] sm:$0xff] }
 0x4d6   :  { %4441 = vmatpush1.msra.mxu1 %v4113_v25  ;;  %v4545_v25 = vld [vmem:[%s9211_s4 + $0x140] sm:$0xff] }
 0x4d7   :  { %4442 = vmatprep.subr.mxu1 %v4110_v15  ;;  %v4544_v15 = vld [vmem:[%s9211_s4 + $0x138] sm:$0xff] }
 0x4d8   :  { %4443 = vmatpush1.msra.mxu1 %v4109_v4  ;;  %v4543_v4 = vld [vmem:[%s9211_s4 + $0x130] sm:$0xff] }
 0x4d9   :  { %4444 = vmatprep.subr.mxu1 %v4106_v38  ;;  %v4542_v38 = vld [vmem:[%s9211_s4 + $0x128] sm:$0xff] }
 0x4da   :  { %4445 = vmatpush1.msra.mxu1 %v4105_v14  ;;  %v4541_v14 = vld [vmem:[%s9211_s4 + $0x120] sm:$0xff] }
 0x4db   :  { %v3900_v13 = vpop.permute.xlu0 %3899  ;;  %4446 = vmatprep.subr.mxu1 %v4102_v0  ;;  %v4540_v0 = vld [vmem:[%s9211_s4 + $0x118] sm:$0xff] }
 0x4dc   :  { %4447 = vmatpush1.msra.mxu1 %v4101_v57  ;;  %v4539_v57 = vld [vmem:[%s9211_s4 + $0x110] sm:$0xff] }
 0x4dd   :  { %v5543_v21 = vpop.permute.xlu1 %5542  ;;  %4448 = vmatprep.subr.mxu1 %v4098_v26  ;;  %v4538_v26 = vld [vmem:[%s9211_s4 + $0x108] sm:$0xff] }
 0x4de   :  { %v5544_v22 = vunpack.i.l.bf16 %v5543_v21  ;;  %4449 = vmatpush1.msra.mxu1 %v4097_v60  ;;  %v5545_v28 = vunpack.i.h.bf16 %v5543_v21  ;;  %v4537_v60 = vld [vmem:[%s9211_s4 + $0x100] sm:$0xff] }
 0x4df   :  { %v5548_v27 = vpop.permute.xlu0 %5547  ;;  %4450 = vmatprep.subr.mxu1 %v4094_v18  ;;  %v4165_v18 = vlaneseq }
 0x4e0   :  { %v5549_v47 = vunpack.i.l.bf16 %v5548_v27  ;;  %v3950_v39 = vsel %vm3853_vm3, %v5544_v22, %v3900_v13  ;;  %4451 = vmatpush1.msra.mxu1 %v4093_v31  ;;  %v5550_v3 = vunpack.i.h.bf16 %v5548_v27  ;;  %v3634_v49 = vmax.f32 %v8699_v1, %v5545_v28  ;;  %v4524_v1 = vld [vmem:[%s9211_s4 + $0x98] sm:$0xff]  ;;  %v4553_v13 = vld [vmem:[%s9211_s4 + $0x180] sm:$0xff] }
 0x4e1   :  { %v3908_v16 = vpop.permute.xlu1 %3907  ;;  %4480 = vmatprep.subr.mxu1 %v4162_v46  ;;  %4971 = vmatprep.subr.mxu0 %v4524_v1  ;;  %v4166_v21 = vshrl.u32 %v4165_v18, 7  ;;  %v4163_v28 = vld [vmem:[%s9212_s3] sm:$0xf] }
 0x4e2   :  { %v3952_v24 = vsel %vm3856_vm4, %v3950_v39, %v3908_v16  ;;  %4481 = vmatpush2.msra.mxu1 %v4161_v29  ;;  %4972 = vmatpush3.msra.mxu0 %v4508_v61 }
 0x4e3   :  { %v3954_v53 = vsel %vm3859_vm5, %v3952_v24, %v5549_v47  ;;  %4482 = vmatprep.subr.mxu1 %v4158_v37  ;;  %v3940_v41 = vpop.permute.xlu0 %3939  ;;  %4973 = vmatprep.subr.mxu0 %v4523_v56  ;;  %v4167_v22 = vsub.s32 0, %v4166_v21  ;;  %v4171_v27 = vsub.s32 1, %v4166_v21 }
 0x4e4   :  { %v3956_v55 = vsel %vm2313_vm2, %v3954_v53, %v5550_v3  ;;  %4483 = vmatpush2.msra.mxu1 %v4157_v40 }
 0x4e5   :  { %v3932_v59 = vpop.permute.xlu1 %3931  ;;  %v3958_v10 = vsel %vm3864_vm6, %v3956_v55, %v3634_v49  ;;  %4985 = vmatprep.subr.mxu1 %v4568_v5  ;;  %v4168_v47 = vrot.slane %v4163_v28, %v4167_v22  ;;  %v4172_v39 = vrot.slane %v4163_v28, %v4171_v27 }
 0x4e6   :  { %v3960_v58 = vsel %vm3867_vm7, %v3958_v10, %v3932_v59  ;;  %v4175_v10 = vsub.s32 2, %v4166_v21 }
 0x4e7   :  { %v3962_v12 = vsel %vm3870_vm8, %v3960_v58, %v3940_v41  ;;  %v4179_v41 = vsub.s32 3, %v4166_v21 }
 0x4e9   :  { %v3948_v35 = vpop.permute.xlu1 %3947  ;;  %v4180_v56 = vrot.slane %v4163_v28, %v4179_v41 }
 0x4ea   :  { %4943 = vmatprep.mubr.msk.f32.mxu1 %vm3853_vm3, %v3948_v35 }
 0x4eb   :  { %4337 = vmatmul.mubr.f32.gmra.mxu1 %v3962_v12 }
 0x4ec   :  { %4944 = vmatprep.mubr.msk.f32.mxu1 %vm3853_vm3, %v8878_v42  ;;  %v4507_v42 = vld [vmem:[%s9211_s4 + $0x10] sm:$0xff] }
 0x4ed   :  { %4974 = vmatpush3.msra.mxu0 %v4507_v42 }
 0x4ef   :  { %4485 = vmatmul.mubr.f32.vlgmr.msra.gmra.mxu1 %v8884_v23  ;;  %v4522_v23 = vld [vmem:[%s9211_s4 + $0x88] sm:$0xff] }
 0x4f0   :  { %4945 = vmatprep.mubr.msk.f32.mxu1 %vm3853_vm3, %v3948_v35  ;;  %4975 = vmatprep.subr.mxu0 %v4522_v23  ;;  %v4176_v35 = vrot.slane %v4163_v28, %v4175_v10 }
 0x4f1   :  { %4976 = vmatpush3.msra.mxu0 %v4506_v7  ;;  %4986 = vmatpush3.msra.mxu1 %v4552_v8 }
 0x4f2   :  { %4977 = vmatprep.subr.mxu0 %v4521_v50  ;;  %4987 = vmatprep.subr.mxu1 %v4567_v30 }
 0x4f3   :  { %4491 = vmatmul.mubr.f32.gmra.mxu1 %v3962_v12  ;;  %4978 = vmatpush3.msra.mxu0 %v4505_v48 }
 0x4f4   :  { %4988 = vmatpush3.msra.mxu1 %v4551_v17 }
 0x4f5   :  { %4989 = vmatprep.subr.mxu1 %v4566_v33 }
 0x4f6   :  { %4990 = vmatpush3.msra.mxu1 %v4550_v34 }
 0x4f7   :  { %4991 = vmatprep.subr.mxu1 %v4565_v20 }
 0x4f8   :  { %4992 = vmatpush3.msra.mxu1 %v4549_v45 }
 0x4f9   :  { %4993 = vmatprep.subr.mxu1 %v4564_v44 }
 0x4fa   :  { %4994 = vmatpush3.msra.mxu1 %v4548_v51 }
 0x4fb   :  { %4995 = vmatprep.subr.mxu1 %v4563_v11 }
 0x4fc   :  { %4996 = vmatpush3.msra.mxu1 %v4547_v19 }
 0x4fd   :  { %4997 = vmatprep.subr.mxu1 %v4562_v2 }
 0x4fe   :  { %4998 = vmatpush3.msra.mxu1 %v4546_v52 }
 0x4ff   :  { %4999 = vmatprep.subr.mxu1 %v4561_v63 }
 0x500   :  { %5000 = vmatpush3.msra.mxu1 %v4545_v25 }
 0x501   :  { %5001 = vmatprep.subr.mxu1 %v4560_v32 }
 0x502   :  { %5002 = vmatpush3.msra.mxu1 %v4544_v15 }
 0x503   :  { %5003 = vmatprep.subr.mxu1 %v4559_v9 }
 0x504   :  { %5004 = vmatpush3.msra.mxu1 %v4543_v4 }
 0x505   :  { %5005 = vmatprep.subr.mxu1 %v4558_v6 }
 0x506   :  { %5006 = vmatpush3.msra.mxu1 %v4542_v38 }
 0x507   :  { %5007 = vmatprep.subr.mxu1 %v4557_v54 }
 0x508   :  { %5008 = vmatpush3.msra.mxu1 %v4541_v14  ;;  %v4946_v14 = vld [vmem:[%s9213_s5] ss:$0 sm:$0xff] }
 0x509   :  { %5009 = vmatprep.subr.mxu1 %v4556_v62 }
 0x50a   :  { %5010 = vmatpush3.msra.mxu1 %v4540_v0 }
 0x50b   :  { %5011 = vmatprep.subr.mxu1 %v4555_v43 }
 0x50c   :  { %5012 = vmatpush3.msra.mxu1 %v4539_v57 }
 0x50d   :  { %5013 = vmatprep.subr.mxu1 %v4554_v36 }
 0x50e   :  { %5014 = vmatpush3.msra.mxu1 %v4538_v26 }
 0x50f   :  { %5015 = vmatprep.subr.mxu1 %v4553_v13 }
 0x510   :  { %5016 = vmatpush3.msra.mxu1 %v4537_v60 }
 0x529   :  { %v4255_v31 = vpop.f32.mrf.mxu1 }
 0x52a   :  { %v4256_v16 = vadd.f32 %v4255_v31, %v4168_v47  ;;  %v4409_v58 = vpop.f32.mrf.mxu0 }
 0x52b   :  { %v4257_v46 = vpop.f32.mrf.mxu1  ;;  %v4410_v5 = vadd.f32 %v4409_v58, %v4176_v35 }
 0x52c   :  { %v4258_v3 = vadd.f32 %v4257_v46, %v4172_v39  ;;  %v4411_v12 = vpop.f32.mrf.mxu0 }
 0x52d   :  { %v4412_v30 = vadd.f32 %v4411_v12, %v4180_v56 }
 0x541   :  { %v4261_v29 = vpop.f32.mrf.mxu1  ;;  %v4415_v23 = vpop.f32.mrf.mxu0 }
 0x542   :  { %v4262_v1 = vadd.f32 %v4261_v29, %v4168_v47  ;;  %v4416_v51 = vadd.f32 %v4415_v23, %v4176_v35 }
 0x543   :  { %v4263_v37 = vpop.f32.mrf.mxu1  ;;  %v4417_v33 = vpop.f32.mrf.mxu0 }
 0x544   :  { %v4264_v42 = vadd.f32 %v4263_v37, %v4172_v39  ;;  %v4418_v19 = vadd.f32 %v4417_v33, %v4180_v56 }
 0x581   :  { %v4332_v40 = vpop.f32.mrf.mxu1 }
 0x582   :  { %v4333_v24 = vadd.f32 %v4332_v40, %v4256_v16 }
 0x583   :  { %v4334_v49 = vpop.f32.mrf.mxu1 }
 0x584   :  { %v4335_v53 = vadd.f32 %v4334_v49, %v4258_v3  ;;  %v4497_v59 = vmax.f32 %v4333_v24, 0.0 }
 0x586   :  { %v4498_v55 = vmax.f32 %v4335_v53, 0.0 }
 0x588   :  { %4640 = vmatprep.mubr.f32.mxu0 %v4498_v55 }
 0x589   :  { %4641 = vmatmul.mubr.f32.vlgmr.msra.gmra.mxu0 %v4497_v59 }
 0x5ab   :  { %v4338_v61 = vpop.f32.mrf.mxu1 }
 0x5ac   :  { %v4339_v7 = vadd.f32 %v4338_v61, %v4262_v1 }
 0x5ad   :  { %v4340_v50 = vpop.f32.mrf.mxu1 }
 0x5ae   :  { %v4341_v48 = vadd.f32 %v4340_v50, %v4264_v42  ;;  %v4501_v34 = vmax.f32 %v4339_v7, 0.0 }
 0x5af   :  { %v4486_v8 = vpop.f32.mrf.mxu1 }
 0x5b0   :  { %v4502_v17 = vmax.f32 %v4341_v48, 0.0  ;;  %v4487_v20 = vadd.f32 %v4486_v8, %v4410_v5 }
 0x5b1   :  { %v4488_v45 = vpop.f32.mrf.mxu1 }
 0x5b2   :  { %v4489_v44 = vadd.f32 %v4488_v45, %v4412_v30  ;;  %4645 = vmatprep.mubr.f32.mxu0 %v4502_v17  ;;  %v4499_v52 = vmax.f32 %v4487_v20, 0.0 }
 0x5b3   :  { %v4492_v11 = vpop.f32.mrf.mxu1  ;;  %4646 = vmatmul.mubr.f32.gmra.mxu0 %v4501_v34 }
 0x5b4   :  { %v4500_v2 = vmax.f32 %v4489_v44, 0.0  ;;  %v4493_v63 = vadd.f32 %v4492_v11, %v4416_v51 }
 0x5b5   :  { %v4494_v25 = vpop.f32.mrf.mxu1 }
 0x5b6   :  { %v4495_v32 = vadd.f32 %v4494_v25, %v4418_v19  ;;  %4715 = vmatprep.mubr.f32.mxu1 %v4500_v2  ;;  %v4503_v9 = vmax.f32 %v4493_v63, 0.0 }
 0x5b7   :  { %4716 = vmatmul.mubr.f32.vlgmr.msra.gmra.mxu1 %v4499_v52 }
 0x5b8   :  { %v4504_v15 = vmax.f32 %v4495_v32, 0.0 }
 0x5ba   :  { %4720 = vmatprep.mubr.f32.mxu1 %v4504_v15 }
 0x5bb   :  { %4721 = vmatmul.mubr.f32.gmra.mxu1 %v4503_v9 }
 0x649   :  { %v4979_v4 = vpop.f32.mrf.mxu0 }
 0x64b   :  { %v4980_v6 = vpop.f32.mrf.mxu0 }
 0x64c   :  { %v4981_v54 = vadd.f32 %v4980_v6, %v4979_v4 }
 0x64e   :  { %v4643_v57 = vadd.f32 %v4981_v54, %v4946_v14 }
 0x673   :  { %v4982_v38 = vpop.f32.mrf.mxu0 }
 0x675   :  { %v4983_v62 = vpop.f32.mrf.mxu0 }
 0x676   :  { %v4984_v36 = vadd.f32 %v4983_v62, %v4982_v38 }
 0x677   :  { %v5017_v0 = vpop.f32.mrf.mxu1 }
 0x678   :  { %v4648_v21 = vadd.f32 %v4984_v36, %v4946_v14 }
 0x679   :  { %v5018_v43 = vpop.f32.mrf.mxu1 }
 0x67a   :  { %v5019_v26 = vadd.f32 %v5018_v43, %v5017_v0 }
 0x67b   :  { %v5020_v13 = vpop.f32.mrf.mxu1 }
 0x67c   :  { %v4718_v60 = vadd.f32 %v5019_v26, %v4643_v57 }
 0x67d   :  { %v5021_v18 = vpop.f32.mrf.mxu1 }
 0x67e   :  { %4726 = vst [vmem:[%s9214_s6] sm:$0xff] %v4718_v60  ;;  %v5022_v31 = vadd.f32 %v5021_v18, %v5020_v13 }
 0x680   :  { %v4723_v22 = vadd.f32 %v5022_v31, %v4648_v21 }
 0x682   :  { %4727 = vst [vmem:[%s9214_s6 + $0x8] sm:$0xff] %v4723_v22 }

</bundles_post_ra>
